<compile_context>
chip_gen: v5e
topology: v5e:2x2
jax: 0.10.0
libtpu: 0.0.40
codegen_flags: <defaults>
</compile_context>

<pallas_src>
import math
import functools

import numpy as np
import jax
import jax.numpy as jnp
from jax import lax
from jax.experimental import pallas as pl
from jax.experimental.pallas import tpu as pltpu

# ---------------- model hyper-parameters (mirror the nn.Module __init__) -----
IN_DIM = 32          # in_dim
OUT_DIM = 4          # out_dim
D_MODEL = 64         # embedding_dimension
NHEAD = 4
HEAD_DIM = D_MODEL // NHEAD
DIM_FF = 64          # dim_feedforward
SEQ_LEN = 8          # pos_encoder vocab_size=8 -> max sequence length
LN_EPS = 1e-5
MAX_B_TILE = 128     # max sequences per grid step (M = 128*8 = 1024 rows)


# ------------------------------- Pallas kernel -------------------------------
def _policy_kernel(x_ref, pe_ref,
                   wd_ref, bd_ref,
                   wqkv_ref, bqkv_ref,
                   wo_ref, bo_ref,
                   g1_ref, be1_ref,
                   w1_ref, b1_ref, w2_ref, b2_ref,
                   g2_ref, be2_ref,
                   wpo_ref, bout_ref,
                   out_ref, *, b_tile):
    f32 = jnp.float32
    bf16 = jnp.bfloat16
    m_rows = b_tile * SEQ_LEN

    # ---- dense_layer (bf16 x bf16 -> f32) + sqrt(d_model) scale --------------
    x = x_ref[...]                                               # (M, IN) bf16
    h = jnp.dot(x, wd_ref[...], preferred_element_type=f32) + bd_ref[...]
    h = h * math.sqrt(D_MODEL)
    # positional encoding: pe is (SEQ_LEN, D), broadcast over the b_tile seqs
    h = (h.reshape(b_tile, SEQ_LEN, D_MODEL) + pe_ref[...]).reshape(m_rows, D_MODEL)

    # ---- fused Q/K/V projection: one (M, 64) @ (64, 192) MXU push ------------
    qkv = jnp.dot(h.astype(bf16), wqkv_ref[...],
                  preferred_element_type=f32) + bqkv_ref[...]    # (M, 192) f32

    # ---- per-sequence batched attention (no mask, no O(M^2) softmax) ---------
    inv_sqrt_hd = 1.0 / math.sqrt(HEAD_DIM)
    head_outs = []
    for hh in range(NHEAD):                                      # static unroll
        lo = hh * HEAD_DIM
        qh = qkv[:, lo:lo + HEAD_DIM].reshape(b_tile, SEQ_LEN, HEAD_DIM)
        kh = qkv[:, D_MODEL + lo:D_MODEL + lo + HEAD_DIM].reshape(
            b_tile, SEQ_LEN, HEAD_DIM)
        vh = qkv[:, 2 * D_MODEL + lo:2 * D_MODEL + lo + HEAD_DIM].reshape(
            b_tile, SEQ_LEN, HEAD_DIM)
        # (b, 8, 16) x (b, 8, 16) -> (b, 8, 8): attention stays inside each seq
        s = jnp.einsum("bqd,bkd->bqk", qh, kh,
                       preferred_element_type=f32) * inv_sqrt_hd
        s = s - jnp.max(s, axis=-1, keepdims=True)
        p = jnp.exp(s)
        p = p * pl.reciprocal(jnp.sum(p, axis=-1, keepdims=True), approx=True)
        oh = jnp.einsum("bqk,bkd->bqd", p, vh, preferred_element_type=f32)
        head_outs.append(oh.reshape(m_rows, HEAD_DIM))
    attn = jnp.concatenate(head_outs, axis=1)                    # (M, D)
    attn = jnp.dot(attn.astype(bf16), wo_ref[...],
                   preferred_element_type=f32) + bo_ref[...]

    # ---- residual + LayerNorm1 ------------------------------------------------
    h = h + attn
    mu = jnp.mean(h, axis=-1, keepdims=True)
    var = jnp.mean((h - mu) ** 2, axis=-1, keepdims=True)
    h = (h - mu) * lax.rsqrt(var + LN_EPS) * g1_ref[...] + be1_ref[...]

    # ---- feed-forward (relu) + residual + LayerNorm2 --------------------------
    f = jnp.dot(h.astype(bf16), w1_ref[...],
                preferred_element_type=f32) + b1_ref[...]
    f = jnp.maximum(f, 0.0)
    f = jnp.dot(f.astype(bf16), w2_ref[...],
                preferred_element_type=f32) + b2_ref[...]
    h = h + f
    mu = jnp.mean(h, axis=-1, keepdims=True)
    var = jnp.mean((h - mu) ** 2, axis=-1, keepdims=True)
    h = (h - mu) * lax.rsqrt(var + LN_EPS) * g2_ref[...] + be2_ref[...]

    # ---- SelfAttentionPooling fused with the output head ----------------------
    # wpo columns = [pooling score | output logits]; pooling the per-token
    # logits is identical to projecting the pooled representation.
    hw = jnp.dot(h.astype(bf16), wpo_ref[...],
                 preferred_element_type=f32)                     # (M, 1+OUT)
    hw3 = hw.reshape(b_tile, SEQ_LEN, 1 + OUT_DIM)
    sc = hw3[:, :, 0:1]               # pooling score; its bias is softmax-invariant
    sc = sc - jnp.max(sc, axis=1, keepdims=True)
    a = jnp.exp(sc)
    a = a * pl.reciprocal(jnp.sum(a, axis=1, keepdims=True), approx=True)
    logits = jnp.sum(hw3[:, :, 1:] * a, axis=1) + bout_ref[...]  # (b_tile, OUT)

    # ---- actor softmax: exact normalization on the tiny final head ------------
    mx = jnp.max(logits, axis=-1, keepdims=True)
    e = jnp.exp(logits - mx)
    probs = e / jnp.sum(e, axis=-1, keepdims=True)

    out_ref[...] = jnp.concatenate([logits, probs], axis=1)      # (b_tile, 2*OUT)


# --------------------------- one-time parameter packing -----------------------
def pack_params(params):
    """Fuse / cast weights once (hoisted out of the per-call forward path)."""
    bf16 = jnp.bfloat16
    packed = {
        "pe":   params["pe"],                                     # (8, 64) f32
        "wd":   params["wd"].astype(bf16),   "bd":  params["bd"],
        "wqkv": jnp.concatenate([params["wq"], params["wk"], params["wv"]],
                                axis=1).astype(bf16),
        "bqkv": jnp.concatenate([params["bq"], params["bk"], params["bv"]],
                                axis=1),
        "wo":   params["wo"].astype(bf16),   "bo":  params["bo"],
        "g1":   params["g1"],                "be1": params["be1"],
        "w1":   params["w1"].astype(bf16),   "b1":  params["b1"],
        "w2":   params["w2"].astype(bf16),   "b2":  params["b2"],
        "g2":   params["g2"],                "be2": params["be2"],
        # fused [pooling score | output head]; pooling-score bias dropped
        # (adding a constant to all scores does not change the softmax)
        "wpo":  jnp.concatenate([params["wp"], params["wout"]],
                                axis=1).astype(bf16),
        "bout": params["bout"],
    }
    return jax.tree_util.tree_map(jnp.asarray, packed)


# ------------------------------- wrapper --------------------------------------
def _choose_b_tile(n):
    # Largest tile <= MAX_B_TILE that still yields >= 2 grid steps when the
    # batch allows it (keeps both TensorCores busy on v7x); multiple of 8.
    bt = min(MAX_B_TILE, max(8, -(-n // 2)))
    return ((bt + 7) // 8) * 8


def _pallas_forward(x, packed, b_tile=None):
    N, T, F = x.shape
    assert T == SEQ_LEN and F == IN_DIM
    if b_tile is None:
        b_tile = _choose_b_tile(N)

    nb = -(-N // b_tile)                     # ceil div
    n_pad = nb * b_tile
    if n_pad != N:
        x = jnp.pad(x, ((0, n_pad - N), (0, 0), (0, 0)))
    x2d = x.reshape(n_pad * T, F).astype(jnp.bfloat16)   # halve HBM traffic of x

    ordered = [packed["pe"], packed["wd"], packed["bd"],
               packed["wqkv"], packed["bqkv"],
               packed["wo"], packed["bo"], packed["g1"], packed["be1"],
               packed["w1"], packed["b1"], packed["w2"], packed["b2"],
               packed["g2"], packed["be2"], packed["wpo"], packed["bout"]]

    in_specs = [pl.BlockSpec((b_tile * T, F), lambda i: (i, 0))]
    in_specs += [pl.BlockSpec(p.shape, lambda i: (0, 0)) for p in ordered]

    out = pl.pallas_call(
        functools.partial(_policy_kernel, b_tile=b_tile),
        out_shape=jax.ShapeDtypeStruct((n_pad, 2 * OUT_DIM), jnp.float32),
        grid_spec=pltpu.PrefetchScalarGridSpec(
            num_scalar_prefetch=0,
            grid=(nb,),
            in_specs=in_specs,
            out_specs=pl.BlockSpec((b_tile, 2 * OUT_DIM), lambda i: (i, 0))),
        compiler_params=pltpu.CompilerParams(
            dimension_semantics=("parallel",)),
    )(x2d, *ordered)

    logits = out[:N, :OUT_DIM]       # critic
    probs = out[:N, OUT_DIM:]        # actor
    return probs, logits


def transformer_policy_forward(x, packed, model=None):
    """Single pallas_call producing both heads; select afterwards."""
    probs, logits = _pallas_forward(x, packed)
    actor = jnp.squeeze(probs)                                   # .squeeze()
    critic = jnp.squeeze(logits, axis=1) if logits.shape[1] == 1 else logits
    if model == "actor":
        return actor
    if model == "critic":
        return critic
    return actor, critic


# --------------------------- parameter construction ---------------------------
def make_params(key):
    ks = jax.random.split(key, 16)

    def w(k, shape, scale=0.1):
        return (scale * jax.random.normal(k, shape)).astype(jnp.float32)

    # positional encoding buffer (vocab_size=8, /100), identical to the PyTorch code
    position = np.arange(SEQ_LEN, dtype=np.float32)[:, None]
    div_term = np.exp(np.arange(0, D_MODEL, 2, dtype=np.float32)
                      * (-math.log(10000.0) / D_MODEL))
    pe = np.zeros((SEQ_LEN, D_MODEL), np.float32)
    pe[:, 0::2] = np.sin(position * div_term)
    pe[:, 1::2] = np.cos(position * div_term)
    pe = pe / 100.0

    p = {
        "pe":   jnp.asarray(pe),
        # all linear weights stored pre-transposed: (in, out)
        "wd":   w(ks[0], (IN_DIM, D_MODEL)),  "bd":  w(ks[1], (1, D_MODEL)),
        "wq":   w(ks[2], (D_MODEL, D_MODEL)), "bq":  w(ks[3], (1, D_MODEL)),
        "wk":   w(ks[4], (D_MODEL, D_MODEL)), "bk":  w(ks[5], (1, D_MODEL)),
        "wv":   w(ks[6], (D_MODEL, D_MODEL)), "bv":  w(ks[7], (1, D_MODEL)),
        "wo":   w(ks[8], (D_MODEL, D_MODEL)), "bo":  w(ks[9], (1, D_MODEL)),
        "g1":   jnp.ones((1, D_MODEL), jnp.float32),
        "be1":  jnp.zeros((1, D_MODEL), jnp.float32),
        "w1":   w(ks[10], (D_MODEL, DIM_FF)), "b1":  w(ks[11], (1, DIM_FF)),
        "w2":   w(ks[12], (DIM_FF, D_MODEL)), "b2":  w(ks[13], (1, D_MODEL)),
        "g2":   jnp.ones((1, D_MODEL), jnp.float32),
        "be2":  jnp.zeros((1, D_MODEL), jnp.float32),
        "wp":   w(ks[14], (D_MODEL, 1)),      "bp":  jnp.full((1, 1), 0.01, jnp.float32),
        "wout": w(ks[15], (D_MODEL, OUT_DIM)),
        "bout": jnp.zeros((1, OUT_DIM), jnp.float32),
    }
    return p


# ------------------------------ pure-JAX reference ----------------------------
def reference_forward(x, p):
    """Full-f32 reference mirroring the PyTorch module."""
    def ln(h, g, b):
        mu = jnp.mean(h, -1, keepdims=True)
        var = jnp.mean((h - mu) ** 2, -1, keepdims=True)
        return (h - mu) / jnp.sqrt(var + LN_EPS) * g + b

    h = x @ p["wd"] + p["bd"]
    h = h * math.sqrt(D_MODEL) + p["pe"][None]
    q = h @ p["wq"] + p["bq"]
    k = h @ p["wk"] + p["bk"]
    v = h @ p["wv"] + p["bv"]
    outs = []
    for hh in range(NHEAD):
        sl = slice(hh * HEAD_DIM, (hh + 1) * HEAD_DIM)
        s = jnp.einsum("ntd,nsd->nts", q[..., sl], k[..., sl]) / math.sqrt(HEAD_DIM)
        pw = jax.nn.softmax(s, axis=-1)
        outs.append(jnp.einsum("nts,nsd->ntd", pw, v[..., sl]))
    attn = jnp.concatenate(outs, axis=-1) @ p["wo"] + p["bo"]
    h = ln(h + attn, p["g1"], p["be1"])
    f = jnp.maximum(h @ p["w1"] + p["b1"], 0.0) @ p["w2"] + p["b2"]
    h = ln(h + f, p["g2"], p["be2"])
    sc = (h @ p["wp"] + p["bp"])[..., 0]                          # (N, T)
    a = jax.nn.softmax(sc, axis=1)[..., None]
    pooled = jnp.sum(h * a, axis=1)
    logits = pooled @ p["wout"] + p["bout"]
    return jax.nn.softmax(logits, axis=-1), logits


# ----------------------------------- main --------------------------------------
if __name__ == "__main__":
    key = jax.random.PRNGKey(0)
    kx, kx2, kp = jax.random.split(key, 3)
    params = make_params(kp)
    packed = pack_params(params)     # one-time packing, hoisted off the call path

    # Tolerance vs. the full-f32 reference: the kernel runs its large matmuls
    # with bf16 operands (f32 accumulation) and uses the EUP approximate
    # reciprocal in the attention / pooling softmaxes.
    TOL = 2e-2

    # small-shape check (batch=2), single kernel invocation for actor+critic
    N = 2
    x = jax.random.normal(kx, (N, SEQ_LEN, IN_DIM), dtype=jnp.float32)
    actor, critic = transformer_policy_forward(x, packed)
    jax.block_until_ready((actor, critic))
    ref_actor, ref_critic = reference_forward(x, params)
    np.testing.assert_allclose(np.asarray(actor), np.asarray(jnp.squeeze(ref_actor)),
                               rtol=TOL, atol=TOL)
    np.testing.assert_allclose(np.asarray(critic), np.asarray(ref_critic),
                               rtol=TOL, atol=TOL)
    # exact final-softmax normalization (feedback: exact reciprocal on the head)
    np.testing.assert_allclose(np.asarray(actor).sum(-1), 1.0, rtol=0, atol=1e-4)

    # larger, non-multiple-of-tile batch: exercises padding + multi-step grid
    N2 = 50
    x2 = jax.random.normal(kx2, (N2, SEQ_LEN, IN_DIM), dtype=jnp.float32)
    actor2, critic2 = transformer_policy_forward(x2, packed)
    jax.block_until_ready((actor2, critic2))
    ref_actor2, ref_critic2 = reference_forward(x2, params)
    np.testing.assert_allclose(np.asarray(actor2), np.asarray(ref_actor2),
                               rtol=TOL, atol=TOL)
    np.testing.assert_allclose(np.asarray(critic2), np.asarray(ref_critic2),
                               rtol=TOL, atol=TOL)

    print("KERNEL_OK")
</pallas_src>

<mosaic_0001>
module attributes {stable_mosaic.version = 11 : i64} {
  func.func @_policy_kernel(%arg0: i32, %arg1: memref<64x32xbf16, #tpu.memory_space<vmem>>, %arg2: memref<8x64xf32, #tpu.memory_space<vmem>>, %arg3: memref<32x64xbf16, #tpu.memory_space<vmem>>, %arg4: memref<1x64xf32, #tpu.memory_space<vmem>>, %arg5: memref<64x192xbf16, #tpu.memory_space<vmem>>, %arg6: memref<1x192xf32, #tpu.memory_space<vmem>>, %arg7: memref<64x64xbf16, #tpu.memory_space<vmem>>, %arg8: memref<1x64xf32, #tpu.memory_space<vmem>>, %arg9: memref<1x64xf32, #tpu.memory_space<vmem>>, %arg10: memref<1x64xf32, #tpu.memory_space<vmem>>, %arg11: memref<64x64xbf16, #tpu.memory_space<vmem>>, %arg12: memref<1x64xf32, #tpu.memory_space<vmem>>, %arg13: memref<64x64xbf16, #tpu.memory_space<vmem>>, %arg14: memref<1x64xf32, #tpu.memory_space<vmem>>, %arg15: memref<1x64xf32, #tpu.memory_space<vmem>>, %arg16: memref<1x64xf32, #tpu.memory_space<vmem>>, %arg17: memref<64x5xbf16, #tpu.memory_space<vmem>>, %arg18: memref<1x4xf32, #tpu.memory_space<vmem>>, %arg19: memref<8x8xf32, #tpu.memory_space<vmem>>) attributes {dimension_semantics = [#tpu.dimension_semantics<parallel>], iteration_bounds = array<i64: 1>, scalar_prefetch = 0 : i64, scratch_operands = 0 : i64, tpu.core_type = #tpu.core_type<tc>, window_params = [{transform_indices = @transform_0, window_bounds = array<i64: 64, 32>}, {pipeline_mode = #tpu.pipeline_mode<synchronous>, transform_indices = @transform_1, window_bounds = array<i64: 8, 64>}, {pipeline_mode = #tpu.pipeline_mode<synchronous>, transform_indices = @transform_2, window_bounds = array<i64: 32, 64>}, {pipeline_mode = #tpu.pipeline_mode<synchronous>, transform_indices = @transform_3, window_bounds = array<i64: 1, 64>}, {pipeline_mode = #tpu.pipeline_mode<synchronous>, transform_indices = @transform_4, window_bounds = array<i64: 64, 192>}, {pipeline_mode = #tpu.pipeline_mode<synchronous>, transform_indices = @transform_5, window_bounds = array<i64: 1, 192>}, {pipeline_mode = #tpu.pipeline_mode<synchronous>, transform_indices = @transform_6, window_bounds = array<i64: 64, 64>}, {pipeline_mode = #tpu.pipeline_mode<synchronous>, transform_indices = @transform_7, window_bounds = array<i64: 1, 64>}, {pipeline_mode = #tpu.pipeline_mode<synchronous>, transform_indices = @transform_8, window_bounds = array<i64: 1, 64>}, {pipeline_mode = #tpu.pipeline_mode<synchronous>, transform_indices = @transform_9, window_bounds = array<i64: 1, 64>}, {pipeline_mode = #tpu.pipeline_mode<synchronous>, transform_indices = @transform_10, window_bounds = array<i64: 64, 64>}, {pipeline_mode = #tpu.pipeline_mode<synchronous>, transform_indices = @transform_11, window_bounds = array<i64: 1, 64>}, {pipeline_mode = #tpu.pipeline_mode<synchronous>, transform_indices = @transform_12, window_bounds = array<i64: 64, 64>}, {pipeline_mode = #tpu.pipeline_mode<synchronous>, transform_indices = @transform_13, window_bounds = array<i64: 1, 64>}, {pipeline_mode = #tpu.pipeline_mode<synchronous>, transform_indices = @transform_14, window_bounds = array<i64: 1, 64>}, {pipeline_mode = #tpu.pipeline_mode<synchronous>, transform_indices = @transform_15, window_bounds = array<i64: 1, 64>}, {pipeline_mode = #tpu.pipeline_mode<synchronous>, transform_indices = @transform_16, window_bounds = array<i64: 64, 5>}, {pipeline_mode = #tpu.pipeline_mode<synchronous>, transform_indices = @transform_17, window_bounds = array<i64: 1, 4>}, {transform_indices = @transform_18, window_bounds = array<i64: 8, 8>}]} {
    %c0 = arith.constant 0 : index
    %c0_0 = arith.constant 0 : index
    %0 = vector.load %arg1[%c0, %c0_0] : memref<64x32xbf16, #tpu.memory_space<vmem>>, vector<64x32xbf16>
    %c0_1 = arith.constant 0 : index
    %c0_2 = arith.constant 0 : index
    %1 = vector.load %arg3[%c0_1, %c0_2] : memref<32x64xbf16, #tpu.memory_space<vmem>>, vector<32x64xbf16>
    %cst = arith.constant dense<0.000000e+00> : vector<64x64xf32>
    %2 = tpu.matmul %0, %1, %cst {dimension_numbers = #tpu.dot_dimension_numbers<[1], [0], [0], [1], [0, 0, 1, 1], [], []>} : vector<64x32xbf16>, vector<32x64xbf16>, vector<64x64xf32> -> vector<64x64xf32>
    %c0_3 = arith.constant 0 : index
    %c0_4 = arith.constant 0 : index
    %3 = vector.load %arg4[%c0_3, %c0_4] : memref<1x64xf32, #tpu.memory_space<vmem>>, vector<1x64xf32>
    %4 = vector.broadcast %3 : vector<1x64xf32> to vector<64x64xf32>
    %5 = arith.addf %2, %4 : vector<64x64xf32>
    %cst_5 = arith.constant 8.000000e+00 : f32
    %6 = vector.broadcast %cst_5 : f32 to vector<64x64xf32>
    %7 = arith.mulf %5, %6 : vector<64x64xf32>
    %8 = vector.shape_cast %7 : vector<64x64xf32> to vector<8x8x64xf32>
    %c0_6 = arith.constant 0 : index
    %c0_7 = arith.constant 0 : index
    %9 = vector.load %arg2[%c0_6, %c0_7] : memref<8x64xf32, #tpu.memory_space<vmem>>, vector<8x64xf32>
    %10 = vector.shape_cast %9 : vector<8x64xf32> to vector<1x8x64xf32>
    %11 = vector.broadcast %10 : vector<1x8x64xf32> to vector<8x8x64xf32>
    %12 = arith.addf %8, %11 : vector<8x8x64xf32>
    %13 = vector.shape_cast %12 : vector<8x8x64xf32> to vector<64x64xf32>
    %14 = arith.truncf %13 : vector<64x64xf32> to vector<64x64xbf16>
    %c0_8 = arith.constant 0 : index
    %c0_9 = arith.constant 0 : index
    %15 = vector.load %arg5[%c0_8, %c0_9] : memref<64x192xbf16, #tpu.memory_space<vmem>>, vector<64x192xbf16>
    %cst_10 = arith.constant dense<0.000000e+00> : vector<64x192xf32>
    %16 = tpu.matmul %14, %15, %cst_10 {dimension_numbers = #tpu.dot_dimension_numbers<[1], [0], [0], [1], [0, 0, 1, 1], [], []>} : vector<64x64xbf16>, vector<64x192xbf16>, vector<64x192xf32> -> vector<64x192xf32>
    %c0_11 = arith.constant 0 : index
    %c0_12 = arith.constant 0 : index
    %17 = vector.load %arg6[%c0_11, %c0_12] : memref<1x192xf32, #tpu.memory_space<vmem>>, vector<1x192xf32>
    %18 = vector.broadcast %17 : vector<1x192xf32> to vector<64x192xf32>
    %19 = arith.addf %16, %18 : vector<64x192xf32>
    %20 = vector.extract_strided_slice %19 {offsets = [0, 0], sizes = [64, 16], strides = [1, 1]} : vector<64x192xf32> to vector<64x16xf32>
    %21 = vector.shape_cast %20 : vector<64x16xf32> to vector<8x8x16xf32>
    %22 = vector.extract_strided_slice %19 {offsets = [0, 64], sizes = [64, 16], strides = [1, 1]} : vector<64x192xf32> to vector<64x16xf32>
    %23 = vector.shape_cast %22 : vector<64x16xf32> to vector<8x8x16xf32>
    %24 = vector.extract_strided_slice %19 {offsets = [0, 128], sizes = [64, 16], strides = [1, 1]} : vector<64x192xf32> to vector<64x16xf32>
    %25 = vector.shape_cast %24 : vector<64x16xf32> to vector<8x8x16xf32>
    "tpu.trace_start"() <{level = 10 : i32, message = "bqd,bkd->bqk"}> : () -> ()
    %cst_13 = arith.constant dense<0.000000e+00> : vector<8x8x8xf32>
    %26 = tpu.matmul %21, %23, %cst_13 {dimension_numbers = #tpu.dot_dimension_numbers<[2], [2], [1], [1], [0, 0, 0, 1, 1, 1], [0], [0]>} : vector<8x8x16xf32>, vector<8x8x16xf32>, vector<8x8x8xf32> -> vector<8x8x8xf32>
    "tpu.trace_stop"() : () -> ()
    %cst_14 = arith.constant 2.500000e-01 : f32
    %27 = vector.broadcast %cst_14 : f32 to vector<8x8x8xf32>
    %28 = arith.mulf %26, %27 : vector<8x8x8xf32>
    %cst_15 = arith.constant dense<0xFF800000> : vector<8x8xf32>
    %29 = vector.multi_reduction <maximumf>, %28, %cst_15 [2] : vector<8x8x8xf32> to vector<8x8xf32>
    %30 = vector.shape_cast %29 : vector<8x8xf32> to vector<8x8x1xf32>
    %31 = vector.broadcast %30 : vector<8x8x1xf32> to vector<8x8x8xf32>
    %32 = arith.subf %28, %31 : vector<8x8x8xf32>
    %33 = math.exp %32 : vector<8x8x8xf32>
    %cst_16 = arith.constant dense<0.000000e+00> : vector<8x8xf32>
    %34 = vector.multi_reduction <add>, %33, %cst_16 [2] : vector<8x8x8xf32> to vector<8x8xf32>
    %35 = vector.shape_cast %34 : vector<8x8xf32> to vector<8x8x1xf32>
    %36 = tpu.reciprocal %35 {approx = true} : vector<8x8x1xf32> -> vector<8x8x1xf32>
    %37 = vector.broadcast %36 : vector<8x8x1xf32> to vector<8x8x8xf32>
    %38 = arith.mulf %33, %37 : vector<8x8x8xf32>
    "tpu.trace_start"() <{level = 10 : i32, message = "bqk,bkd->bqd"}> : () -> ()
    %cst_17 = arith.constant dense<0.000000e+00> : vector<8x8x16xf32>
    %39 = tpu.matmul %38, %25, %cst_17 {dimension_numbers = #tpu.dot_dimension_numbers<[2], [1], [1], [2], [0, 0, 0, 1, 1, 2], [0], [0]>} : vector<8x8x8xf32>, vector<8x8x16xf32>, vector<8x8x16xf32> -> vector<8x8x16xf32>
    "tpu.trace_stop"() : () -> ()
    %40 = vector.shape_cast %39 : vector<8x8x16xf32> to vector<64x16xf32>
    %41 = vector.extract_strided_slice %19 {offsets = [0, 16], sizes = [64, 16], strides = [1, 1]} : vector<64x192xf32> to vector<64x16xf32>
    %42 = vector.shape_cast %41 : vector<64x16xf32> to vector<8x8x16xf32>
    %43 = vector.extract_strided_slice %19 {offsets = [0, 80], sizes = [64, 16], strides = [1, 1]} : vector<64x192xf32> to vector<64x16xf32>
    %44 = vector.shape_cast %43 : vector<64x16xf32> to vector<8x8x16xf32>
    %45 = vector.extract_strided_slice %19 {offsets = [0, 144], sizes = [64, 16], strides = [1, 1]} : vector<64x192xf32> to vector<64x16xf32>
    %46 = vector.shape_cast %45 : vector<64x16xf32> to vector<8x8x16xf32>
    "tpu.trace_start"() <{level = 10 : i32, message = "bqd,bkd->bqk"}> : () -> ()
    %cst_18 = arith.constant dense<0.000000e+00> : vector<8x8x8xf32>
    %47 = tpu.matmul %42, %44, %cst_18 {dimension_numbers = #tpu.dot_dimension_numbers<[2], [2], [1], [1], [0, 0, 0, 1, 1, 1], [0], [0]>} : vector<8x8x16xf32>, vector<8x8x16xf32>, vector<8x8x8xf32> -> vector<8x8x8xf32>
    "tpu.trace_stop"() : () -> ()
    %cst_19 = arith.constant 2.500000e-01 : f32
    %48 = vector.broadcast %cst_19 : f32 to vector<8x8x8xf32>
    %49 = arith.mulf %47, %48 : vector<8x8x8xf32>
    %cst_20 = arith.constant dense<0xFF800000> : vector<8x8xf32>
    %50 = vector.multi_reduction <maximumf>, %49, %cst_20 [2] : vector<8x8x8xf32> to vector<8x8xf32>
    %51 = vector.shape_cast %50 : vector<8x8xf32> to vector<8x8x1xf32>
    %52 = vector.broadcast %51 : vector<8x8x1xf32> to vector<8x8x8xf32>
    %53 = arith.subf %49, %52 : vector<8x8x8xf32>
    %54 = math.exp %53 : vector<8x8x8xf32>
    %cst_21 = arith.constant dense<0.000000e+00> : vector<8x8xf32>
    %55 = vector.multi_reduction <add>, %54, %cst_21 [2] : vector<8x8x8xf32> to vector<8x8xf32>
    %56 = vector.shape_cast %55 : vector<8x8xf32> to vector<8x8x1xf32>
    %57 = tpu.reciprocal %56 {approx = true} : vector<8x8x1xf32> -> vector<8x8x1xf32>
    %58 = vector.broadcast %57 : vector<8x8x1xf32> to vector<8x8x8xf32>
    %59 = arith.mulf %54, %58 : vector<8x8x8xf32>
    "tpu.trace_start"() <{level = 10 : i32, message = "bqk,bkd->bqd"}> : () -> ()
    %cst_22 = arith.constant dense<0.000000e+00> : vector<8x8x16xf32>
    %60 = tpu.matmul %59, %46, %cst_22 {dimension_numbers = #tpu.dot_dimension_numbers<[2], [1], [1], [2], [0, 0, 0, 1, 1, 2], [0], [0]>} : vector<8x8x8xf32>, vector<8x8x16xf32>, vector<8x8x16xf32> -> vector<8x8x16xf32>
    "tpu.trace_stop"() : () -> ()
    %61 = vector.shape_cast %60 : vector<8x8x16xf32> to vector<64x16xf32>
    %62 = vector.extract_strided_slice %19 {offsets = [0, 32], sizes = [64, 16], strides = [1, 1]} : vector<64x192xf32> to vector<64x16xf32>
    %63 = vector.shape_cast %62 : vector<64x16xf32> to vector<8x8x16xf32>
    %64 = vector.extract_strided_slice %19 {offsets = [0, 96], sizes = [64, 16], strides = [1, 1]} : vector<64x192xf32> to vector<64x16xf32>
    %65 = vector.shape_cast %64 : vector<64x16xf32> to vector<8x8x16xf32>
    %66 = vector.extract_strided_slice %19 {offsets = [0, 160], sizes = [64, 16], strides = [1, 1]} : vector<64x192xf32> to vector<64x16xf32>
    %67 = vector.shape_cast %66 : vector<64x16xf32> to vector<8x8x16xf32>
    "tpu.trace_start"() <{level = 10 : i32, message = "bqd,bkd->bqk"}> : () -> ()
    %cst_23 = arith.constant dense<0.000000e+00> : vector<8x8x8xf32>
    %68 = tpu.matmul %63, %65, %cst_23 {dimension_numbers = #tpu.dot_dimension_numbers<[2], [2], [1], [1], [0, 0, 0, 1, 1, 1], [0], [0]>} : vector<8x8x16xf32>, vector<8x8x16xf32>, vector<8x8x8xf32> -> vector<8x8x8xf32>
    "tpu.trace_stop"() : () -> ()
    %cst_24 = arith.constant 2.500000e-01 : f32
    %69 = vector.broadcast %cst_24 : f32 to vector<8x8x8xf32>
    %70 = arith.mulf %68, %69 : vector<8x8x8xf32>
    %cst_25 = arith.constant dense<0xFF800000> : vector<8x8xf32>
    %71 = vector.multi_reduction <maximumf>, %70, %cst_25 [2] : vector<8x8x8xf32> to vector<8x8xf32>
    %72 = vector.shape_cast %71 : vector<8x8xf32> to vector<8x8x1xf32>
    %73 = vector.broadcast %72 : vector<8x8x1xf32> to vector<8x8x8xf32>
    %74 = arith.subf %70, %73 : vector<8x8x8xf32>
    %75 = math.exp %74 : vector<8x8x8xf32>
    %cst_26 = arith.constant dense<0.000000e+00> : vector<8x8xf32>
    %76 = vector.multi_reduction <add>, %75, %cst_26 [2] : vector<8x8x8xf32> to vector<8x8xf32>
    %77 = vector.shape_cast %76 : vector<8x8xf32> to vector<8x8x1xf32>
    %78 = tpu.reciprocal %77 {approx = true} : vector<8x8x1xf32> -> vector<8x8x1xf32>
    %79 = vector.broadcast %78 : vector<8x8x1xf32> to vector<8x8x8xf32>
    %80 = arith.mulf %75, %79 : vector<8x8x8xf32>
    "tpu.trace_start"() <{level = 10 : i32, message = "bqk,bkd->bqd"}> : () -> ()
    %cst_27 = arith.constant dense<0.000000e+00> : vector<8x8x16xf32>
    %81 = tpu.matmul %80, %67, %cst_27 {dimension_numbers = #tpu.dot_dimension_numbers<[2], [1], [1], [2], [0, 0, 0, 1, 1, 2], [0], [0]>} : vector<8x8x8xf32>, vector<8x8x16xf32>, vector<8x8x16xf32> -> vector<8x8x16xf32>
    "tpu.trace_stop"() : () -> ()
    %82 = vector.shape_cast %81 : vector<8x8x16xf32> to vector<64x16xf32>
    %83 = vector.extract_strided_slice %19 {offsets = [0, 48], sizes = [64, 16], strides = [1, 1]} : vector<64x192xf32> to vector<64x16xf32>
    %84 = vector.shape_cast %83 : vector<64x16xf32> to vector<8x8x16xf32>
    %85 = vector.extract_strided_slice %19 {offsets = [0, 112], sizes = [64, 16], strides = [1, 1]} : vector<64x192xf32> to vector<64x16xf32>
    %86 = vector.shape_cast %85 : vector<64x16xf32> to vector<8x8x16xf32>
    %87 = vector.extract_strided_slice %19 {offsets = [0, 176], sizes = [64, 16], strides = [1, 1]} : vector<64x192xf32> to vector<64x16xf32>
    %88 = vector.shape_cast %87 : vector<64x16xf32> to vector<8x8x16xf32>
    "tpu.trace_start"() <{level = 10 : i32, message = "bqd,bkd->bqk"}> : () -> ()
    %cst_28 = arith.constant dense<0.000000e+00> : vector<8x8x8xf32>
    %89 = tpu.matmul %84, %86, %cst_28 {dimension_numbers = #tpu.dot_dimension_numbers<[2], [2], [1], [1], [0, 0, 0, 1, 1, 1], [0], [0]>} : vector<8x8x16xf32>, vector<8x8x16xf32>, vector<8x8x8xf32> -> vector<8x8x8xf32>
    "tpu.trace_stop"() : () -> ()
    %cst_29 = arith.constant 2.500000e-01 : f32
    %90 = vector.broadcast %cst_29 : f32 to vector<8x8x8xf32>
    %91 = arith.mulf %89, %90 : vector<8x8x8xf32>
    %cst_30 = arith.constant dense<0xFF800000> : vector<8x8xf32>
    %92 = vector.multi_reduction <maximumf>, %91, %cst_30 [2] : vector<8x8x8xf32> to vector<8x8xf32>
    %93 = vector.shape_cast %92 : vector<8x8xf32> to vector<8x8x1xf32>
    %94 = vector.broadcast %93 : vector<8x8x1xf32> to vector<8x8x8xf32>
    %95 = arith.subf %91, %94 : vector<8x8x8xf32>
    %96 = math.exp %95 : vector<8x8x8xf32>
    %cst_31 = arith.constant dense<0.000000e+00> : vector<8x8xf32>
    %97 = vector.multi_reduction <add>, %96, %cst_31 [2] : vector<8x8x8xf32> to vector<8x8xf32>
    %98 = vector.shape_cast %97 : vector<8x8xf32> to vector<8x8x1xf32>
    %99 = tpu.reciprocal %98 {approx = true} : vector<8x8x1xf32> -> vector<8x8x1xf32>
    %100 = vector.broadcast %99 : vector<8x8x1xf32> to vector<8x8x8xf32>
    %101 = arith.mulf %96, %100 : vector<8x8x8xf32>
    "tpu.trace_start"() <{level = 10 : i32, message = "bqk,bkd->bqd"}> : () -> ()
    %cst_32 = arith.constant dense<0.000000e+00> : vector<8x8x16xf32>
    %102 = tpu.matmul %101, %88, %cst_32 {dimension_numbers = #tpu.dot_dimension_numbers<[2], [1], [1], [2], [0, 0, 0, 1, 1, 2], [0], [0]>} : vector<8x8x8xf32>, vector<8x8x16xf32>, vector<8x8x16xf32> -> vector<8x8x16xf32>
    "tpu.trace_stop"() : () -> ()
    %103 = vector.shape_cast %102 : vector<8x8x16xf32> to vector<64x16xf32>
    %104 = tpu.concatenate %40, %61, %82, %103 in 1 : vector<64x16xf32>, vector<64x16xf32>, vector<64x16xf32>, vector<64x16xf32> -> vector<64x64xf32>
    %105 = arith.truncf %104 : vector<64x64xf32> to vector<64x64xbf16>
    %c0_33 = arith.constant 0 : index
    %c0_34 = arith.constant 0 : index
    %106 = vector.load %arg7[%c0_33, %c0_34] : memref<64x64xbf16, #tpu.memory_space<vmem>>, vector<64x64xbf16>
    %cst_35 = arith.constant dense<0.000000e+00> : vector<64x64xf32>
    %107 = tpu.matmul %105, %106, %cst_35 {dimension_numbers = #tpu.dot_dimension_numbers<[1], [0], [0], [1], [0, 0, 1, 1], [], []>} : vector<64x64xbf16>, vector<64x64xbf16>, vector<64x64xf32> -> vector<64x64xf32>
    %c0_36 = arith.constant 0 : index
    %c0_37 = arith.constant 0 : index
    %108 = vector.load %arg8[%c0_36, %c0_37] : memref<1x64xf32, #tpu.memory_space<vmem>>, vector<1x64xf32>
    %109 = vector.broadcast %108 : vector<1x64xf32> to vector<64x64xf32>
    %110 = arith.addf %107, %109 : vector<64x64xf32>
    %111 = arith.addf %13, %110 : vector<64x64xf32>
    %cst_38 = arith.constant dense<0.000000e+00> : vector<64xf32>
    %112 = vector.multi_reduction <add>, %111, %cst_38 [1] : vector<64x64xf32> to vector<64xf32>
    %113 = vector.shape_cast %112 : vector<64xf32> to vector<64x1xf32>
    %cst_39 = arith.constant 6.400000e+01 : f32
    %114 = vector.broadcast %cst_39 : f32 to vector<64x1xf32>
    %115 = arith.divf %113, %114 : vector<64x1xf32>
    %116 = vector.broadcast %115 : vector<64x1xf32> to vector<64x64xf32>
    %117 = arith.subf %111, %116 : vector<64x64xf32>
    %118 = arith.mulf %117, %117 : vector<64x64xf32>
    %cst_40 = arith.constant dense<0.000000e+00> : vector<64xf32>
    %119 = vector.multi_reduction <add>, %118, %cst_40 [1] : vector<64x64xf32> to vector<64xf32>
    %120 = vector.shape_cast %119 : vector<64xf32> to vector<64x1xf32>
    %cst_41 = arith.constant 6.400000e+01 : f32
    %121 = vector.broadcast %cst_41 : f32 to vector<64x1xf32>
    %122 = arith.divf %120, %121 : vector<64x1xf32>
    %123 = vector.broadcast %115 : vector<64x1xf32> to vector<64x64xf32>
    %124 = arith.subf %111, %123 : vector<64x64xf32>
    %cst_42 = arith.constant 9.99999974E-6 : f32
    %125 = vector.broadcast %cst_42 : f32 to vector<64x1xf32>
    %126 = arith.addf %122, %125 : vector<64x1xf32>
    %127 = math.rsqrt %126 : vector<64x1xf32>
    %128 = vector.broadcast %127 : vector<64x1xf32> to vector<64x64xf32>
    %129 = arith.mulf %124, %128 : vector<64x64xf32>
    %c0_43 = arith.constant 0 : index
    %c0_44 = arith.constant 0 : index
    %130 = vector.load %arg9[%c0_43, %c0_44] : memref<1x64xf32, #tpu.memory_space<vmem>>, vector<1x64xf32>
    %131 = vector.broadcast %130 : vector<1x64xf32> to vector<64x64xf32>
    %132 = arith.mulf %129, %131 : vector<64x64xf32>
    %c0_45 = arith.constant 0 : index
    %c0_46 = arith.constant 0 : index
    %133 = vector.load %arg10[%c0_45, %c0_46] : memref<1x64xf32, #tpu.memory_space<vmem>>, vector<1x64xf32>
    %134 = vector.broadcast %133 : vector<1x64xf32> to vector<64x64xf32>
    %135 = arith.addf %132, %134 : vector<64x64xf32>
    %136 = arith.truncf %135 : vector<64x64xf32> to vector<64x64xbf16>
    %c0_47 = arith.constant 0 : index
    %c0_48 = arith.constant 0 : index
    %137 = vector.load %arg11[%c0_47, %c0_48] : memref<64x64xbf16, #tpu.memory_space<vmem>>, vector<64x64xbf16>
    %cst_49 = arith.constant dense<0.000000e+00> : vector<64x64xf32>
    %138 = tpu.matmul %136, %137, %cst_49 {dimension_numbers = #tpu.dot_dimension_numbers<[1], [0], [0], [1], [0, 0, 1, 1], [], []>} : vector<64x64xbf16>, vector<64x64xbf16>, vector<64x64xf32> -> vector<64x64xf32>
    %c0_50 = arith.constant 0 : index
    %c0_51 = arith.constant 0 : index
    %139 = vector.load %arg12[%c0_50, %c0_51] : memref<1x64xf32, #tpu.memory_space<vmem>>, vector<1x64xf32>
    %140 = vector.broadcast %139 : vector<1x64xf32> to vector<64x64xf32>
    %141 = arith.addf %138, %140 : vector<64x64xf32>
    %cst_52 = arith.constant 0.000000e+00 : f32
    %142 = vector.broadcast %cst_52 : f32 to vector<64x64xf32>
    %143 = arith.maximumf %141, %142 : vector<64x64xf32>
    %144 = arith.truncf %143 : vector<64x64xf32> to vector<64x64xbf16>
    %c0_53 = arith.constant 0 : index
    %c0_54 = arith.constant 0 : index
    %145 = vector.load %arg13[%c0_53, %c0_54] : memref<64x64xbf16, #tpu.memory_space<vmem>>, vector<64x64xbf16>
    %cst_55 = arith.constant dense<0.000000e+00> : vector<64x64xf32>
    %146 = tpu.matmul %144, %145, %cst_55 {dimension_numbers = #tpu.dot_dimension_numbers<[1], [0], [0], [1], [0, 0, 1, 1], [], []>} : vector<64x64xbf16>, vector<64x64xbf16>, vector<64x64xf32> -> vector<64x64xf32>
    %c0_56 = arith.constant 0 : index
    %c0_57 = arith.constant 0 : index
    %147 = vector.load %arg14[%c0_56, %c0_57] : memref<1x64xf32, #tpu.memory_space<vmem>>, vector<1x64xf32>
    %148 = vector.broadcast %147 : vector<1x64xf32> to vector<64x64xf32>
    %149 = arith.addf %146, %148 : vector<64x64xf32>
    %150 = arith.addf %135, %149 : vector<64x64xf32>
    %cst_58 = arith.constant dense<0.000000e+00> : vector<64xf32>
    %151 = vector.multi_reduction <add>, %150, %cst_58 [1] : vector<64x64xf32> to vector<64xf32>
    %152 = vector.shape_cast %151 : vector<64xf32> to vector<64x1xf32>
    %cst_59 = arith.constant 6.400000e+01 : f32
    %153 = vector.broadcast %cst_59 : f32 to vector<64x1xf32>
    %154 = arith.divf %152, %153 : vector<64x1xf32>
    %155 = vector.broadcast %154 : vector<64x1xf32> to vector<64x64xf32>
    %156 = arith.subf %150, %155 : vector<64x64xf32>
    %157 = arith.mulf %156, %156 : vector<64x64xf32>
    %cst_60 = arith.constant dense<0.000000e+00> : vector<64xf32>
    %158 = vector.multi_reduction <add>, %157, %cst_60 [1] : vector<64x64xf32> to vector<64xf32>
    %159 = vector.shape_cast %158 : vector<64xf32> to vector<64x1xf32>
    %cst_61 = arith.constant 6.400000e+01 : f32
    %160 = vector.broadcast %cst_61 : f32 to vector<64x1xf32>
    %161 = arith.divf %159, %160 : vector<64x1xf32>
    %162 = vector.broadcast %154 : vector<64x1xf32> to vector<64x64xf32>
    %163 = arith.subf %150, %162 : vector<64x64xf32>
    %cst_62 = arith.constant 9.99999974E-6 : f32
    %164 = vector.broadcast %cst_62 : f32 to vector<64x1xf32>
    %165 = arith.addf %161, %164 : vector<64x1xf32>
    %166 = math.rsqrt %165 : vector<64x1xf32>
    %167 = vector.broadcast %166 : vector<64x1xf32> to vector<64x64xf32>
    %168 = arith.mulf %163, %167 : vector<64x64xf32>
    %c0_63 = arith.constant 0 : index
    %c0_64 = arith.constant 0 : index
    %169 = vector.load %arg15[%c0_63, %c0_64] : memref<1x64xf32, #tpu.memory_space<vmem>>, vector<1x64xf32>
    %170 = vector.broadcast %169 : vector<1x64xf32> to vector<64x64xf32>
    %171 = arith.mulf %168, %170 : vector<64x64xf32>
    %c0_65 = arith.constant 0 : index
    %c0_66 = arith.constant 0 : index
    %172 = vector.load %arg16[%c0_65, %c0_66] : memref<1x64xf32, #tpu.memory_space<vmem>>, vector<1x64xf32>
    %173 = vector.broadcast %172 : vector<1x64xf32> to vector<64x64xf32>
    %174 = arith.addf %171, %173 : vector<64x64xf32>
    %175 = arith.truncf %174 : vector<64x64xf32> to vector<64x64xbf16>
    %c0_67 = arith.constant 0 : index
    %c0_68 = arith.constant 0 : index
    %176 = vector.load %arg17[%c0_67, %c0_68] : memref<64x5xbf16, #tpu.memory_space<vmem>>, vector<64x5xbf16>
    %cst_69 = arith.constant dense<0.000000e+00> : vector<64x5xf32>
    %177 = tpu.matmul %175, %176, %cst_69 {dimension_numbers = #tpu.dot_dimension_numbers<[1], [0], [0], [1], [0, 0, 1, 1], [], []>} : vector<64x64xbf16>, vector<64x5xbf16>, vector<64x5xf32> -> vector<64x5xf32>
    %178 = vector.shape_cast %177 : vector<64x5xf32> to vector<8x8x5xf32>
    %179 = vector.extract_strided_slice %178 {offsets = [0, 0, 0], sizes = [8, 8, 1], strides = [1, 1, 1]} : vector<8x8x5xf32> to vector<8x8x1xf32>
    %cst_70 = arith.constant dense<0xFF800000> : vector<8x1xf32>
    %180 = vector.multi_reduction <maximumf>, %179, %cst_70 [1] : vector<8x8x1xf32> to vector<8x1xf32>
    %181 = vector.shape_cast %180 : vector<8x1xf32> to vector<8x1x1xf32>
    %182 = vector.broadcast %181 : vector<8x1x1xf32> to vector<8x8x1xf32>
    %183 = arith.subf %179, %182 : vector<8x8x1xf32>
    %184 = math.exp %183 : vector<8x8x1xf32>
    %cst_71 = arith.constant dense<0.000000e+00> : vector<8x1xf32>
    %185 = vector.multi_reduction <add>, %184, %cst_71 [1] : vector<8x8x1xf32> to vector<8x1xf32>
    %186 = vector.shape_cast %185 : vector<8x1xf32> to vector<8x1x1xf32>
    %187 = tpu.reciprocal %186 {approx = true} : vector<8x1x1xf32> -> vector<8x1x1xf32>
    %188 = vector.broadcast %187 : vector<8x1x1xf32> to vector<8x8x1xf32>
    %189 = arith.mulf %184, %188 : vector<8x8x1xf32>
    %190 = vector.extract_strided_slice %178 {offsets = [0, 0, 1], sizes = [8, 8, 4], strides = [1, 1, 1]} : vector<8x8x5xf32> to vector<8x8x4xf32>
    %191 = vector.broadcast %189 : vector<8x8x1xf32> to vector<8x8x4xf32>
    %192 = arith.mulf %190, %191 : vector<8x8x4xf32>
    %cst_72 = arith.constant dense<0.000000e+00> : vector<8x4xf32>
    %193 = vector.multi_reduction <add>, %192, %cst_72 [1] : vector<8x8x4xf32> to vector<8x4xf32>
    %c0_73 = arith.constant 0 : index
    %c0_74 = arith.constant 0 : index
    %194 = vector.load %arg18[%c0_73, %c0_74] : memref<1x4xf32, #tpu.memory_space<vmem>>, vector<1x4xf32>
    %195 = vector.broadcast %194 : vector<1x4xf32> to vector<8x4xf32>
    %196 = arith.addf %193, %195 : vector<8x4xf32>
    %cst_75 = arith.constant dense<0xFF800000> : vector<8xf32>
    %197 = vector.multi_reduction <maximumf>, %196, %cst_75 [1] : vector<8x4xf32> to vector<8xf32>
    %198 = vector.shape_cast %197 : vector<8xf32> to vector<8x1xf32>
    %199 = vector.broadcast %198 : vector<8x1xf32> to vector<8x4xf32>
    %200 = arith.subf %196, %199 : vector<8x4xf32>
    %201 = math.exp %200 : vector<8x4xf32>
    %cst_76 = arith.constant dense<0.000000e+00> : vector<8xf32>
    %202 = vector.multi_reduction <add>, %201, %cst_76 [1] : vector<8x4xf32> to vector<8xf32>
    %203 = vector.shape_cast %202 : vector<8xf32> to vector<8x1xf32>
    %204 = vector.broadcast %203 : vector<8x1xf32> to vector<8x4xf32>
    %205 = arith.divf %201, %204 : vector<8x4xf32>
    %206 = tpu.concatenate %196, %205 in 1 : vector<8x4xf32>, vector<8x4xf32> -> vector<8x8xf32>
    %c0_77 = arith.constant 0 : index
    %c0_78 = arith.constant 0 : index
    %207 = vector.load %arg19[%c0_77, %c0_78] : memref<8x8xf32, #tpu.memory_space<vmem>>, vector<8x8xf32>
    tpu.vector_store %arg19[%c0_77, %c0_78], %206 {strides = array<i32>} : memref<8x8xf32, #tpu.memory_space<vmem>>, vector<8x8xf32>,
    return
  }
  func.func @transform_0(%arg0: i32) -> (i32, i32) {
    %c0_i32 = arith.constant 0 : i32
    %c0_i32_0 = arith.constant 0 : i32
    return %arg0, %c0_i32 : i32, i32
  }
  func.func @transform_1(%arg0: i32) -> (i32, i32) {
    %c0_i32 = arith.constant 0 : i32
    %c0_i32_0 = arith.constant 0 : i32
    %c0_i32_1 = arith.constant 0 : i32
    return %c0_i32, %c0_i32_0 : i32, i32
  }
  func.func @transform_2(%arg0: i32) -> (i32, i32) {
    %c0_i32 = arith.constant 0 : i32
    %c0_i32_0 = arith.constant 0 : i32
    %c0_i32_1 = arith.constant 0 : i32
    return %c0_i32, %c0_i32_0 : i32, i32
  }
  func.func @transform_3(%arg0: i32) -> (i32, i32) {
    %c0_i32 = arith.constant 0 : i32
    %c0_i32_0 = arith.constant 0 : i32
    %c0_i32_1 = arith.constant 0 : i32
    return %c0_i32, %c0_i32_0 : i32, i32
  }
  func.func @transform_4(%arg0: i32) -> (i32, i32) {
    %c0_i32 = arith.constant 0 : i32
    %c0_i32_0 = arith.constant 0 : i32
    %c0_i32_1 = arith.constant 0 : i32
    return %c0_i32, %c0_i32_0 : i32, i32
  }
  func.func @transform_5(%arg0: i32) -> (i32, i32) {
    %c0_i32 = arith.constant 0 : i32
    %c0_i32_0 = arith.constant 0 : i32
    %c0_i32_1 = arith.constant 0 : i32
    return %c0_i32, %c0_i32_0 : i32, i32
  }
  func.func @transform_6(%arg0: i32) -> (i32, i32) {
    %c0_i32 = arith.constant 0 : i32
    %c0_i32_0 = arith.constant 0 : i32
    %c0_i32_1 = arith.constant 0 : i32
    return %c0_i32, %c0_i32_0 : i32, i32
  }
  func.func @transform_7(%arg0: i32) -> (i32, i32) {
    %c0_i32 = arith.constant 0 : i32
    %c0_i32_0 = arith.constant 0 : i32
    %c0_i32_1 = arith.constant 0 : i32
    return %c0_i32, %c0_i32_0 : i32, i32
  }
  func.func @transform_8(%arg0: i32) -> (i32, i32) {
    %c0_i32 = arith.constant 0 : i32
    %c0_i32_0 = arith.constant 0 : i32
    %c0_i32_1 = arith.constant 0 : i32
    return %c0_i32, %c0_i32_0 : i32, i32
  }
  func.func @transform_9(%arg0: i32) -> (i32, i32) {
    %c0_i32 = arith.constant 0 : i32
    %c0_i32_0 = arith.constant 0 : i32
    %c0_i32_1 = arith.constant 0 : i32
    return %c0_i32, %c0_i32_0 : i32, i32
  }
  func.func @transform_10(%arg0: i32) -> (i32, i32) {
    %c0_i32 = arith.constant 0 : i32
    %c0_i32_0 = arith.constant 0 : i32
    %c0_i32_1 = arith.constant 0 : i32
    return %c0_i32, %c0_i32_0 : i32, i32
  }
  func.func @transform_11(%arg0: i32) -> (i32, i32) {
    %c0_i32 = arith.constant 0 : i32
    %c0_i32_0 = arith.constant 0 : i32
    %c0_i32_1 = arith.constant 0 : i32
    return %c0_i32, %c0_i32_0 : i32, i32
  }
  func.func @transform_12(%arg0: i32) -> (i32, i32) {
    %c0_i32 = arith.constant 0 : i32
    %c0_i32_0 = arith.constant 0 : i32
    %c0_i32_1 = arith.constant 0 : i32
    return %c0_i32, %c0_i32_0 : i32, i32
  }
  func.func @transform_13(%arg0: i32) -> (i32, i32) {
    %c0_i32 = arith.constant 0 : i32
    %c0_i32_0 = arith.constant 0 : i32
    %c0_i32_1 = arith.constant 0 : i32
    return %c0_i32, %c0_i32_0 : i32, i32
  }
  func.func @transform_14(%arg0: i32) -> (i32, i32) {
    %c0_i32 = arith.constant 0 : i32
    %c0_i32_0 = arith.constant 0 : i32
    %c0_i32_1 = arith.constant 0 : i32
    return %c0_i32, %c0_i32_0 : i32, i32
  }
  func.func @transform_15(%arg0: i32) -> (i32, i32) {
    %c0_i32 = arith.constant 0 : i32
    %c0_i32_0 = arith.constant 0 : i32
    %c0_i32_1 = arith.constant 0 : i32
    return %c0_i32, %c0_i32_0 : i32, i32
  }
  func.func @transform_16(%arg0: i32) -> (i32, i32) {
    %c0_i32 = arith.constant 0 : i32
    %c0_i32_0 = arith.constant 0 : i32
    %c0_i32_1 = arith.constant 0 : i32
    return %c0_i32, %c0_i32_0 : i32, i32
  }
  func.func @transform_17(%arg0: i32) -> (i32, i32) {
    %c0_i32 = arith.constant 0 : i32
    %c0_i32_0 = arith.constant 0 : i32
    %c0_i32_1 = arith.constant 0 : i32
    return %c0_i32, %c0_i32_0 : i32, i32
  }
  func.func @transform_18(%arg0: i32) -> (i32, i32) {
    %c0_i32 = arith.constant 0 : i32
    %c0_i32_0 = arith.constant 0 : i32
    return %arg0, %c0_i32 : i32, i32
  }
}

</mosaic_0001>

<bundles_post_ra>
// kernel: tpu_custom_call.1
= control target key start
LH: loop header
LB: loop body
LE: loop exit
PB: predicated region body
PF: predicated region fallthrough
CT: control target
= control target key end

     0   :  { %s6110_s0 = inlined_call_operand.vmem [shape: bf16[64,32], index: 0, kind: input, shape index: {}]   ;;  %s6111_s1 = inlined_call_operand.hbm [shape: f32[8,64], index: 1, kind: input, shape index: {}]   ;;  %s6112_s2 = inlined_call_operand.vmem [shape: bf16[32,64], index: 2, kind: input, shape index: {}]   ;;  %s6113_s3 = inlined_call_operand.hbm [shape: f32[1,64], index: 3, kind: input, shape index: {}]   ;;  %s6114_s4 = inlined_call_operand.vmem [shape: bf16[64,192], index: 4, kind: input, shape index: {}]   ;;  %s6115_s5 = inlined_call_operand.vmem [shape: f32[1,192], index: 5, kind: input, shape index: {}]   ;;  %s6116_s6 = inlined_call_operand.hbm [shape: bf16[64,64], index: 6, kind: input, shape index: {}]   ;;  %s6117_s7 = inlined_call_operand.vmem [shape: f32[1,64], index: 7, kind: input, shape index: {}]   ;;  %s6118_s8 = inlined_call_operand.vmem [shape: f32[1,64], index: 8, kind: input, shape index: {}]   ;;  %s6119_s9 = inlined_call_operand.vmem [shape: f32[1,64], index: 9, kind: input, shape index: {}]   ;;  %s6120_s10 = inlined_call_operand.hbm [shape: bf16[64,64], index: 10, kind: input, shape index: {}]   ;;  %s6121_s11 = inlined_call_operand.vmem [shape: f32[1,64], index: 11, kind: input, shape index: {}]   ;;  %s6122_s12 = inlined_call_operand.hbm [shape: bf16[64,64], index: 12, kind: input, shape index: {}]   ;;  %s6123_s13 = inlined_call_operand.vmem [shape: f32[1,64], index: 13, kind: input, shape index: {}]   ;;  %s6124_s14 = inlined_call_operand.vmem [shape: f32[1,64], index: 14, kind: input, shape index: {}]   ;;  %s6125_s15 = inlined_call_operand.vmem [shape: f32[1,64], index: 15, kind: input, shape index: {}]   ;;  %s6126_s16 = inlined_call_operand.vmem [shape: bf16[64,5], index: 16, kind: input, shape index: {}]   ;;  %s6127_s17 = inlined_call_operand.vmem [shape: f32[1,4], index: 17, kind: input, shape index: {}]   ;;  %s6128_s18 = inlined_call_operand.hbm [shape: f32[8,8], index: 18, kind: output, shape index: {}]  }
   0x1   :  { %6141 = sst [smem:[#allocation19_spill]] %s6110_s0 }
   0x2   :  { %6142 = sst [smem:[#allocation20_spill]] %s6111_s1 }
   0x3   :  { %6143 = sst [smem:[#allocation21_spill]] %s6112_s2 }
   0x4   :  { %23 = vsyncpa [#allocation3], 0 }
   0x5   :  { %24 = vsyncpa [#allocation6], 0 }
   0x6   :  { %25 = vsyncpa [#allocation9], 0  ;;  %s47_s29 = sshll.u32 %s6113_s3, 4  ;;  %s48_s29 = int_to_ptr.hbm [resolvable:$true] %s47_s29 }
   0x7   :  { %26 = vsyncpa [#allocation4], 0  ;;  %s4680_s30 = smov [#allocation5]   ;;  %s80_s20 = sshll.u32 %s6120_s10, 4  ;;  %s81_s20 = int_to_ptr.hbm [resolvable:$true] %s80_s20 }
   0x8   :  { %s49_s0 = sshll.u32 %s4680_s30, 4  ;;  %s4681_s21 = smov [#allocation8]   ;;  %s50_s0 = int_to_ptr.vmem [resolvable:$true] %s49_s0 }
   0x9   :  { %52 = dma.hbm_to_vmem [thread:$0]  %s48_s29, 16, %s50_s0, [#allocation6]  }
   0xa   :  { %s82_s22 = sshll.u32 %s4681_s21, 4  ;;  %s6144_s24 = sld [smem:[#allocation20_spill]]  ;;  %s83_s22 = int_to_ptr.vmem [resolvable:$true] %s82_s22 }
   0xb   :  { %s4682_s3 = smov 64   ;;  %s4683_s26 = smov 4  }
   0xc   :  { %88 = dma.hbm_to_vmem [thread:$0]  %s81_s20, 512, %s83_s22, [#allocation9], %s4682_s3, %s4682_s3, %s4683_s26  }
   0xd   :  { %s61_s29 = sshll.u32 %s6116_s6, 4  ;;  %s4684_s30 = smov [#allocation2]   ;;  %s62_s29 = int_to_ptr.hbm [resolvable:$true] %s61_s29 }
   0xe   :  { %s36_s10 = sshll.u32 %s4684_s30, 4  ;;  %s4685_s0 = smov [#allocation7]   ;;  %s37_s10 = int_to_ptr.vmem [resolvable:$true] %s36_s10 }
   0xf   :  { %s63_s19 = sshll.u32 %s4685_s0, 4  ;;  %s95_s2 = sshll.u32 %s6122_s12, 4  ;;  %s64_s19 = int_to_ptr.vmem [resolvable:$true] %s63_s19  ;;  %s96_s2 = int_to_ptr.hbm [resolvable:$true] %s95_s2 }
  0x10   :  { %s34_s25 = sshll.u32 %s6144_s24, 4  ;;  %s4686_s20 = smov [#allocation10]   ;;  %s35_s25 = int_to_ptr.hbm [resolvable:$true] %s34_s25 }
  0x11   :  { %39 = dma.hbm_to_vmem [thread:$0]  %s35_s25, 128, %s37_s10, [#allocation3]  }
  0x12   :  { %69 = dma.hbm_to_vmem [thread:$0]  %s62_s29, 512, %s64_s19, [#allocation6], %s4682_s3, %s4682_s3, %s4683_s26  }
  0x13   :  { %s97_s22 = sshll.u32 %s4686_s20, 4  ;;  %s98_s22 = int_to_ptr.vmem [resolvable:$true] %s97_s22 }
  0x14   :  { %103 = dma.hbm_to_vmem [thread:$0]  %s96_s2, 512, %s98_s22, [#allocation9], %s4682_s3, %s4682_s3, %s4683_s26  }
  0x15   :  { %4672 = dma.done.wait [#allocation3], 128  }
  0x16   :  { %4673 = vsyncadd [#allocation3], 4294967168 }
  0x17   :  { %4674 = dma.done.wait [#allocation6], 528  }
  0x18   :  { %4675 = vsyncadd [#allocation6], 4294966768 }
  0x19   :  { %4676 = dma.done.wait [#allocation9], 1024  }
  0x1a   :  { %4677 = vsyncadd [#allocation9], 4294966272  ;;  %s6145_s12 = sld [smem:[#allocation21_spill]]  ;;  %vm183_vm0 = vcmask 261120   ;;  %v3946_v6 = vld [vmem:[%s6114_s4 + $0x30] sm:$0xf] }
  0x1b   :  { %s6146_s29 = sld [smem:[#allocation19_spill]]  ;;  %v4149_v7 = vld [vmem:[%s6114_s4 + $0x34] sm:$0xf0]  ;;  %v4148_v8 = vld [vmem:[%s6114_s4 + $0x34] sm:$0xf]  ;;  %v233_v36 = vld [vmem:[#allocation2] sm:$0xff] }
  0x1c   :  { %v3947_v9 = vor.u32 %v4149_v7, %v3946_v6  ;;  %v3948_v10 = vld [vmem:[%s6114_s4 + $0x38] sm:$0xf0]  ;;  %v3938_v12 = vld [vmem:[%s6114_s4 + $0x20] sm:$0xf]  ;;  %v4147_v13 = vld [vmem:[%s6114_s4 + $0x24] sm:$0xf0] }
  0x1d   :  { %v3951_v11 = vor.u32 %v4148_v8, %v3948_v10  ;;  %v3939_v14 = vor.u32 %v4147_v13, %v3938_v12  ;;  %v4146_v15 = vld [vmem:[%s6114_s4 + $0x24] sm:$0xf]  ;;  %v3940_v16 = vld [vmem:[%s6114_s4 + $0x28] sm:$0xf0]  ;;  %v3930_v18 = vld [vmem:[%s6114_s4 + $0x10] sm:$0xf] }
  0x1e   :  { %317 = vmatpush.bf16.msra.mxu1 %v3947_v9  ;;  %v3943_v17 = vor.u32 %v4146_v15, %v3940_v16  ;;  %v4145_v19 = vld [vmem:[%s6114_s4 + $0x14] sm:$0xf0]  ;;  %v4144_v20 = vld [vmem:[%s6114_s4 + $0x14] sm:$0xf]  ;;  %v3932_v22 = vld [vmem:[%s6114_s4 + $0x18] sm:$0xf0] }
  0x1f   :  { %346 = vmatpush.bf16.msra.mxu2 %v3951_v11  ;;  %v3931_v21 = vor.u32 %v4145_v19, %v3930_v18  ;;  %v3935_v23 = vor.u32 %v4144_v20, %v3932_v22  ;;  %v3922_v24 = vld [vmem:[%s6114_s4] sm:$0xf]  ;;  %v4143_v25 = vld [vmem:[%s6114_s4 + $0x4] sm:$0xf0]  ;;  %v4142_v26 = vld [vmem:[%s6114_s4 + $0x4] sm:$0xf] }
  0x20   :  { %v4141_v0 = vld [vmem:[%s6145_s12 + $0x8] sm:$0xff]  ;;  %v4140_v1 = vld [vmem:[%s6145_s12] sm:$0xff]  ;;  %v3923_v27 = vor.u32 %v4143_v25, %v3922_v24  ;;  %vm300_vm1 = vcmask 523264   ;;  %s4688_s0 = smov 48   ;;  %vm374_vm2 = vcmask 130048   ;;  %vm6134_vm3 = vcmask 64512  }
  0x21   :  { %202 = vmatpush.bf16.msra.mxu0 %v4141_v0  ;;  %v4136_v2 = vld [vmem:[%s6146_s29] sm:$0xff]  ;;  %v4137_v3 = vld [vmem:[%s6146_s29 + $0x8] sm:$0xff]  ;;  %v4138_v4 = vld [vmem:[%s6146_s29 + $0x10] sm:$0xff]  ;;  %s4690_s19 = smov 96   ;;  %s4691_s1 = smov 16   ;;  %vm2573_vm4 = vcmask 392192  }
  0x22   :  { %v4139_v5 = vld [vmem:[%s6146_s29 + $0x18] sm:$0xff]  ;;  %318 = vmatpush.bf16.msra.mxu1 %v3939_v14  ;;  %v3924_v28 = vld [vmem:[%s6114_s4 + $0x8] sm:$0xf0]  ;;  %v4293_v31 = vld [vmem:[#allocation5] ss:$0 sm:$0xff]  ;;  %s4692_s21 = smov 80  }
  0x23   :  { %347 = vmatpush.bf16.msra.mxu2 %v3943_v17  ;;  %v3927_v29 = vor.u32 %v4142_v26, %v3924_v28  ;;  %s3880_s20 = sshll.u32 %s6128_s18, 4  ;;  %s3881_s20 = int_to_ptr.hbm [resolvable:$true] %s3880_s20 }
  0x25   :  { %203 = vmatpush.bf16.msra.mxu0 %v4140_v1 }
  0x26   :  { %319 = vmatpush.bf16.msra.mxu1 %v3931_v21 }
  0x27   :  { %348 = vmatpush.bf16.msra.mxu2 %v3935_v23 }
  0x28   :  { %3916 = vmatmul.msk.bf16.vlgmr.msra.gmra.mxu0 %vm183_vm0, %v4136_v2 }
  0x2a   :  { %320 = vmatpush.bf16.msra.mxu1 %v3923_v27 }
  0x2b   :  { %349 = vmatpush.bf16.msra.mxu2 %v3927_v29 }
  0x38   :  { %3917 = vmatmul.msk.bf16.gmra.mxu0 %vm183_vm0, %v4137_v3 }
  0x48   :  { %3918 = vmatmul.msk.bf16.gmra.mxu0 %vm183_vm0, %v4138_v4  ;;  %v254_v4 = vld [vmem:[%s6115_s5] sm:$0x3]  ;;  %s4687_s5 = smov 112  }
  0x49   :  { %v4930_v11 = vperm.slane %v254_v4, 1 }
  0x58   :  { %3919 = vmatmul.msk.bf16.gmra.mxu0 %vm183_vm0, %v4139_v5  ;;  %v256_v5 = vperm.slane %v254_v4, 0 }
  0xa5   :  { %v205_v30 = vpop.f32.mrf.mxu0 }
  0xa6   :  { %v206_v32 = vadd.f32 %v4293_v31, %v205_v30 }
  0xa8   :  { %v225_v34 = vmul.f32 8.0, %v206_v32 }
  0xaa   :  { %v4885_v38 = vadd.f32 %v233_v36, %v225_v34 }
  0xad   :  { %v207_v33 = vpop.f32.mrf.mxu0 }
  0xae   :  { %v208_v35 = vadd.f32 %v4293_v31, %v207_v33 }
  0xb0   :  { %v226_v37 = vmul.f32 8.0, %v208_v35 }
  0xb2   :  { %v4887_v39 = vadd.f32 %v233_v36, %v226_v37 }
  0xb4   :  { %v242_v40 = vpack.c.bf16 %v4887_v39, %v4885_v38 }
  0xb5   :  { %v210_v41 = vpop.f32.mrf.mxu0 }
  0xb6   :  { %3952 = vmatmul.msk.bf16.vlgmr.msra.gmra.mxu1 %vm300_vm1, %v242_v40  ;;  %3956 = vmatmul.msk.bf16.vlgmr.msra.gmra.mxu2 %vm300_vm1, %v242_v40  ;;  %v211_v42 = vadd.f32 %v4293_v31, %v210_v41 }
  0xb8   :  { %v227_v44 = vmul.f32 8.0, %v211_v42 }
  0xba   :  { %v4893_v47 = vadd.f32 %v233_v36, %v227_v44 }
  0xbd   :  { %v212_v43 = vpop.f32.mrf.mxu0 }
  0xbe   :  { %v213_v45 = vadd.f32 %v4293_v31, %v212_v43 }
  0xc0   :  { %v228_v46 = vmul.f32 8.0, %v213_v45 }
  0xc2   :  { %v4895_v48 = vadd.f32 %v233_v36, %v228_v46 }
  0xc4   :  { %v243_v49 = vpack.c.bf16 %v4895_v48, %v4893_v47 }
  0xc5   :  { %v215_v50 = vpop.f32.mrf.mxu0 }
  0xc6   :  { %3953 = vmatmul.msk.bf16.gmra.mxu1 %vm300_vm1, %v243_v49  ;;  %3957 = vmatmul.msk.bf16.gmra.mxu2 %vm300_vm1, %v243_v49  ;;  %v216_v51 = vadd.f32 %v4293_v31, %v215_v50 }
  0xc8   :  { %v229_v52 = vmul.f32 8.0, %v216_v51 }
  0xca   :  { %v4901_v55 = vadd.f32 %v233_v36, %v229_v52 }
  0xcd   :  { %v217_v53 = vpop.f32.mrf.mxu0 }
  0xce   :  { %v218_v54 = vadd.f32 %v4293_v31, %v217_v53 }
  0xd0   :  { %v230_v56 = vmul.f32 8.0, %v218_v54 }
  0xd2   :  { %v4903_v57 = vadd.f32 %v233_v36, %v230_v56 }
  0xd4   :  { %6147 = vst [vmem:[#allocation16_spill] sm:$0xff] %v4903_v57  ;;  %v244_v58 = vpack.c.bf16 %v4903_v57, %v4901_v55 }
  0xd5   :  { %v220_v59 = vpop.f32.mrf.mxu0 }
  0xd6   :  { %3954 = vmatmul.msk.bf16.gmra.mxu1 %vm300_vm1, %v244_v58  ;;  %3958 = vmatmul.msk.bf16.gmra.mxu2 %vm300_vm1, %v244_v58  ;;  %v221_v60 = vadd.f32 %v4293_v31, %v220_v59 }
  0xd8   :  { %v231_v61 = vmul.f32 8.0, %v221_v60 }
  0xda   :  { %v4909_v0 = vadd.f32 %v233_v36, %v231_v61 }
  0xdc   :  { %6148 = vst [vmem:[#allocation17_spill] sm:$0xff] %v4909_v0 }
  0xdd   :  { %v222_v62 = vpop.f32.mrf.mxu0 }
  0xde   :  { %v223_v63 = vadd.f32 %v4293_v31, %v222_v62 }
  0xe0   :  { %v232_v1 = vmul.f32 8.0, %v223_v63 }
  0xe2   :  { %v4911_v2 = vadd.f32 %v233_v36, %v232_v1 }
  0xe4   :  { %6149 = vst [vmem:[#allocation18_spill] sm:$0xff] %v4911_v2  ;;  %v245_v3 = vpack.c.bf16 %v4911_v2, %v4909_v0 }
  0xe6   :  { %3955 = vmatmul.msk.bf16.gmra.mxu1 %vm300_vm1, %v245_v3  ;;  %3959 = vmatmul.msk.bf16.gmra.mxu2 %vm300_vm1, %v245_v3 }
 0x133   :  { %v322_v6 = vpop.f32.mrf.mxu1 }
 0x134   :  { %v4920_v7 = vadd.f32 %v322_v6, %v256_v5 }
 0x136   :  { %372 = vrot.lane.b32.xlu0 %v4920_v7, %s4682_s3 }
 0x139   :  { %v4924_v8 = vpop.f32.mrf.mxu2 }
 0x13a   :  { %v5015_v44 = vadd.f32 %v4924_v8, %v4930_v11 }
 0x13b   :  { %v324_v9 = vpop.f32.mrf.mxu1 }
 0x13c   :  { %v4926_v10 = vadd.f32 %v324_v9, %v256_v5 }
 0x13e   :  { %400 = vrot.lane.b32.xlu0 %v4926_v10, %s4682_s3 }
 0x141   :  { %v353_v12 = vpop.f32.mrf.mxu2 }
 0x142   :  { %v4933_v13 = vadd.f32 %v353_v12, %v4930_v11 }
 0x143   :  { %v327_v14 = vpop.f32.mrf.mxu1 }
 0x144   :  { %v4935_v15 = vadd.f32 %v327_v14, %v256_v5  ;;  %726 = vmatpush.msrb.mxu0 %v4933_v13 }
 0x146   :  { %427 = vrot.lane.b32.xlu1 %v4935_v15, %s4682_s3 }
 0x149   :  { %v4940_v16 = vpop.f32.mrf.mxu2 }
 0x14a   :  { %v5022_v49 = vadd.f32 %v4940_v16, %v4930_v11 }
 0x14b   :  { %v329_v17 = vpop.f32.mrf.mxu1 }
 0x14c   :  { %v4942_v18 = vadd.f32 %v329_v17, %v256_v5 }
 0x14e   :  { %454 = vrot.lane.b32.xlu1 %v4942_v18, %s4682_s3 }
 0x151   :  { %v358_v19 = vpop.f32.mrf.mxu2 }
 0x152   :  { %v4947_v20 = vadd.f32 %v358_v19, %v4930_v11 }
 0x153   :  { %v332_v21 = vpop.f32.mrf.mxu1 }
 0x154   :  { %v4949_v22 = vadd.f32 %v332_v21, %v256_v5  ;;  %772 = vmatpush.msra.mxu0 %v4947_v20 }
 0x156   :  { %481 = vrot.lane.b32.xlu2 %v4949_v22, %s4682_s3 }
 0x159   :  { %v361_v23 = vpop.f32.mrf.mxu2 }
 0x15a   :  { %v4955_v24 = vadd.f32 %v361_v23, %v4930_v11 }
 0x15b   :  { %v334_v25 = vpop.f32.mrf.mxu1 }
 0x15c   :  { %v4957_v26 = vadd.f32 %v334_v25, %v256_v5  ;;  %795 = vmatpush.msrb.mxu1 %v4955_v24 }
 0x15e   :  { %508 = vrot.lane.b32.xlu2 %v4957_v26, %s4682_s3 }
 0x161   :  { %v363_v27 = vpop.f32.mrf.mxu2 }
 0x162   :  { %v4963_v28 = vadd.f32 %v363_v27, %v4930_v11 }
 0x163   :  { %v337_v29 = vpop.f32.mrf.mxu1 }
 0x164   :  { %v4965_v30 = vadd.f32 %v337_v29, %v256_v5  ;;  %818 = vmatpush.msrb.mxu2 %v4963_v28  ;;  %v4970_v31 = vpack.i.bf16 %v4963_v28, %v4933_v13 }
 0x166   :  { %897 = vrot.lane.b32.xlu2 %v4926_v10, %s4687_s5  ;;  %535 = vrot.lane.b32.xlu0 %v4965_v30, %s4682_s3 }
 0x16b   :  { %v339_v33 = vpop.f32.mrf.mxu1 }
 0x16c   :  { %v4978_v34 = vadd.f32 %v339_v33, %v256_v5 }
 0x16e   :  { %562 = vrot.lane.b32.xlu1 %v4978_v34, %s4682_s3  ;;  %899 = vrot.lane.b32.xlu0 %v4926_v10, %s4688_s0  ;;  %s4689_s3 = smov 32  }
 0x176   :  { %1011 = vrot.lane.b32.xlu1 %v4957_v26, %s4688_s0  ;;  %925 = vrot.lane.b32.xlu0 %v4935_v15, %s4687_s5 }
 0x17e   :  { %1009 = vrot.lane.b32.xlu1 %v4957_v26, %s4687_s5 }
 0x186   :  { %927 = vrot.lane.b32.xlu1 %v4935_v15, %s4688_s0 }
 0x1a8   :  { %v373_v35 = vpop.permute.xlu0 %372 }
 0x1a9   :  { %3960 = vmatpush.xpose.msk.msra.mxu3 %vm374_vm2, %v373_v35 }
 0x1ac   :  { %3961 = vmatmul.msk.f32.vlgmr.msra.gmra.mxu3 %vm374_vm2, %v4920_v7 }
 0x1b0   :  { %v401_v36 = vpop.permute.xlu0 %400  ;;  %v482_v40 = vpop.permute.xlu2 %481 }
 0x1b1   :  { %3962 = vmatpush.xpose.msk.msrb.mxu3 %vm374_vm2, %v401_v36 }
 0x1b4   :  { %3963 = vmatmul.msk.f32.vlgmr.msrb.gmra.mxu3 %vm374_vm2, %v4926_v10 }
 0x1b8   :  { %v428_v37 = vpop.permute.xlu1 %427  ;;  %v509_v42 = vpop.permute.xlu2 %508 }
 0x1b9   :  { %3964 = vmatpush.xpose.msk.msra.mxu3 %vm374_vm2, %v428_v37 }
 0x1bc   :  { %3965 = vmatmul.msk.f32.vlgmr.msra.gmra.mxu3 %vm374_vm2, %v4935_v15 }
 0x1c0   :  { %v455_v41 = vpop.permute.xlu1 %454  ;;  %v5043_v19 = vpop.permute.xlu2 %897 }
 0x1c1   :  { %3966 = vmatpush.xpose.msk.msrb.mxu3 %vm374_vm2, %v455_v41 }
 0x1c4   :  { %3967 = vmatmul.msk.f32.vlgmr.msrb.gmra.mxu3 %vm374_vm2, %v4942_v18 }
 0x1c5   :  { %3968 = vmatpush.xpose.msk.msra.mxu3 %vm374_vm2, %v482_v40 }
 0x1c9   :  { %3970 = vmatpush.xpose.msk.msrb.mxu3 %vm374_vm2, %v509_v42 }
 0x1cc   :  { %3969 = vmatmul.msk.f32.vlgmr.msra.gmra.mxu3 %vm374_vm2, %v4949_v22 }
 0x1d4   :  { %3971 = vmatmul.msk.f32.vlgmr.msrb.gmra.mxu3 %vm374_vm2, %v4957_v26 }
 0x1d8   :  { %v536_v43 = vpop.permute.xlu0 %535 }
 0x1d9   :  { %3972 = vmatpush.xpose.msk.msra.mxu3 %vm374_vm2, %v536_v43 }
 0x1dc   :  { %3973 = vmatmul.msk.f32.vlgmr.msra.gmra.mxu3 %vm374_vm2, %v4965_v30 }
 0x1e0   :  { %v563_v45 = vpop.permute.xlu1 %562  ;;  %v900_v46 = vpop.permute.xlu0 %899 }
 0x1e1   :  { %3974 = vmatpush.xpose.msk.msrb.mxu3 %vm374_vm2, %v563_v45  ;;  %3986 = vmatpush.xpose.msk.msra.mxu2 %vm374_vm2, %v900_v46 }
 0x1e4   :  { %3975 = vmatmul.msk.f32.vlgmr.msrb.gmra.mxu3 %vm374_vm2, %v4978_v34 }
 0x1e5   :  { %703 = vmatpush.msra.mxu3 %v5015_v44 }
 0x1e7   :  { %749 = vmatpush.msrb.mxu3 %v5022_v49 }
 0x1e8   :  { %v5041_v16 = vpop.permute.xlu1 %1011 }
 0x1f0   :  { %v5049_v25 = vpop.permute.xlu1 %1009 }
 0x1f8   :  { %v5051_v35 = vpop.permute.xlu1 %927 }
 0x22f   :  { %v396_v50 = vpop.f32.mrf.mxu3 }
 0x230   :  { %v588_v51 = vmul.f32 0.25, %v396_v50 }
 0x232   :  { %v597_v52 = vsel %vm6134_vm3, %v588_v51, -inf }
 0x233   :  { %598 = vmax.xlane.f32.xlu2 %v597_v52  ;;  %v5061_v52 = vpop.permute.xlu0 %925 }
 0x237   :  { %v423_v53 = vpop.f32.mrf.mxu3 }
 0x238   :  { %v589_v54 = vmul.f32 0.25, %v423_v53 }
 0x23a   :  { %v600_v56 = vsel %vm6134_vm3, %v589_v54, -inf }
 0x23b   :  { %601 = vmax.xlane.f32.xlu2 %v600_v56 }
 0x23f   :  { %v450_v58 = vpop.f32.mrf.mxu3 }
 0x240   :  { %v590_v59 = vmul.f32 0.25, %v450_v58 }
 0x242   :  { %v603_v60 = vsel %vm6134_vm3, %v590_v59, -inf }
 0x243   :  { %604 = vmax.xlane.f32.xlu1 %v603_v60 }
 0x247   :  { %v477_v61 = vpop.f32.mrf.mxu3 }
 0x248   :  { %v591_v62 = vmul.f32 0.25, %v477_v61 }
 0x24a   :  { %v606_v63 = vsel %vm6134_vm3, %v591_v62, -inf }
 0x24b   :  { %607 = vmax.xlane.f32.xlu1 %v606_v63 }
 0x24f   :  { %v504_v1 = vpop.f32.mrf.mxu3 }
 0x250   :  { %v592_v3 = vmul.f32 0.25, %v504_v1 }
 0x252   :  { %v609_v4 = vsel %vm6134_vm3, %v592_v3, -inf }
 0x253   :  { %610 = vmax.xlane.f32.xlu0 %v609_v4 }
 0x257   :  { %v531_v5 = vpop.f32.mrf.mxu3 }
 0x258   :  { %v593_v6 = vmul.f32 0.25, %v531_v5 }
 0x25a   :  { %v612_v8 = vsel %vm6134_vm3, %v593_v6, -inf }
 0x25b   :  { %613 = vmax.xlane.f32.xlu0 %v612_v8 }
 0x25f   :  { %v558_v9 = vpop.f32.mrf.mxu3 }
 0x260   :  { %v5033_v12 = vmul.f32 0.25, %v558_v9 }
 0x262   :  { %v615_v14 = vsel %vm6134_vm3, %v5033_v12, -inf }
 0x263   :  { %616 = vmax.xlane.f32.xlu2 %v615_v14 }
 0x267   :  { %v585_v17 = vpop.f32.mrf.mxu3 }
 0x268   :  { %v5045_v21 = vmul.f32 0.25, %v585_v17 }
 0x26a   :  { %v618_v23 = vsel %vm6134_vm3, %v5045_v21, -inf }
 0x26f   :  { %1039 = vrot.lane.b32.xlu0 %v4965_v30, %s4688_s0 }
 0x27b   :  { %871 = vrot.lane.b32.xlu2 %v4920_v7, %s4688_s0 }
 0x2a4   :  { %619 = vmax.xlane.f32.xlu2 %v618_v23 }
 0x2a6   :  { %v599_v27 = vpop.xlane.xlu2 %598 }
 0x2a7   :  { %v621_v29 = vsub.f32 %v588_v51, %v599_v27 }
 0x2a9   :  { %v629_v33 = vmul.f32 1.442695, %v621_v29 }
 0x2ab   :  { %4302 = vpow2.f32 %v629_v33 }
 0x2ae   :  { %v602_v36 = vpop.xlane.xlu2 %601 }
 0x2af   :  { %v622_v37 = vsub.f32 %v589_v54, %v602_v36 }
 0x2b1   :  { %v5053_v40 = vpop.eup %4302  ;;  %v631_v41 = vmul.f32 1.442695, %v622_v37 }
 0x2b2   :  { %v645_v42 = vsel %vm6134_vm3, %v5053_v40, 0.0 }
 0x2b3   :  { %4304 = vpow2.f32 %v631_v41  ;;  %646 = vadd.xlane.f32.xlu0 %v645_v42 }
 0x2b6   :  { %v605_v43 = vpop.xlane.xlu1 %604 }
 0x2b7   :  { %v623_v45 = vsub.f32 %v590_v59, %v605_v43 }
 0x2b9   :  { %v5057_v46 = vpop.eup %4304  ;;  %v633_v50 = vmul.f32 1.442695, %v623_v45 }
 0x2ba   :  { %v648_v51 = vsel %vm6134_vm3, %v5057_v46, 0.0 }
 0x2bb   :  { %4306 = vpow2.f32 %v633_v50  ;;  %649 = vadd.xlane.f32.xlu0 %v648_v51  ;;  %v366_v50 = vpop.f32.mrf.mxu2 }
 0x2be   :  { %v608_v53 = vpop.xlane.xlu1 %607 }
 0x2bf   :  { %v624_v54 = vsub.f32 %v591_v62, %v608_v53 }
 0x2c1   :  { %v5063_v56 = vpop.eup %4306  ;;  %v635_v58 = vmul.f32 1.442695, %v624_v54 }
 0x2c2   :  { %v651_v60 = vsel %vm6134_vm3, %v5063_v56, 0.0 }
 0x2c3   :  { %4308 = vpow2.f32 %v635_v58  ;;  %652 = vadd.xlane.f32.xlu2 %v651_v60  ;;  %v5116_v58 = vadd.f32 %v366_v50, %v4930_v11  ;;  %v368_v60 = vpop.f32.mrf.mxu2 }
 0x2c6   :  { %v611_v59 = vpop.xlane.xlu0 %610 }
 0x2c7   :  { %v625_v61 = vsub.f32 %v592_v3, %v611_v59 }
 0x2c9   :  { %v5067_v63 = vpop.eup %4308  ;;  %v637_v1 = vmul.f32 1.442695, %v625_v61 }
 0x2ca   :  { %v654_v4 = vsel %vm6134_vm3, %v5067_v63, 0.0 }
 0x2cb   :  { %4310 = vpow2.f32 %v637_v1  ;;  %655 = vadd.xlane.f32.xlu1 %v654_v4  ;;  %v4190_v1 = vpack.i.bf16 %v5015_v44, %v5022_v49  ;;  %v5126_v4 = vadd.f32 %v368_v60, %v4930_v11 }
 0x2ce   :  { %v614_v5 = vpop.xlane.xlu0 %613 }
 0x2cf   :  { %v626_v62 = vsub.f32 %v593_v6, %v614_v5  ;;  %4186 = vrot.lane.b32.xlu0 %v4970_v31, %s4687_s5 }
 0x2d1   :  { %v5073_v8 = vpop.eup %4310  ;;  %v639_v9 = vmul.f32 1.442695, %v626_v62 }
 0x2d2   :  { %v657_v14 = vsel %vm6134_vm3, %v5073_v8, 0.0 }
 0x2d3   :  { %4312 = vpow2.f32 %v639_v9  ;;  %658 = vadd.xlane.f32.xlu2 %v657_v14 }
 0x2d6   :  { %v617_v3 = vpop.xlane.xlu2 %616 }
 0x2d7   :  { %v627_v6 = vsub.f32 %v5033_v12, %v617_v3  ;;  %v4195_v3 = vpack.i.bf16 %v4955_v24, %v5116_v58 }
 0x2d9   :  { %v5077_v17 = vpop.eup %4312  ;;  %v641_v29 = vmul.f32 1.442695, %v627_v6 }
 0x2da   :  { %v660_v23 = vsel %vm6134_vm3, %v5077_v17, 0.0 }
 0x2db   :  { %661 = vadd.xlane.f32.xlu1 %v660_v23  ;;  %4314 = vpow2.f32 %v641_v29 }
 0x2de   :  { %v872_v27 = vpop.permute.xlu2 %871 }
 0x2df   :  { %3984 = vmatpush.xpose.msk.msra.mxu1 %vm374_vm2, %v872_v27 }
 0x2e1   :  { %v5098_v37 = vpop.eup %4314  ;;  %v5104_v12 = vpop.permute.xlu0 %1039 }
 0x2e2   :  { %v663_v42 = vsel %vm6134_vm3, %v5098_v37, 0.0 }
 0x2eb   :  { %1037 = vrot.lane.b32.xlu2 %v4965_v30, %s4687_s5 }
 0x2f3   :  { %983 = vrot.lane.b32.xlu2 %v4949_v22, %s4688_s0 }
 0x2f4   :  { %869 = vrot.lane.b32.xlu1 %v4920_v7, %s4687_s5 }
 0x2fb   :  { %981 = vrot.lane.b32.xlu2 %v4949_v22, %s4687_s5 }
 0x303   :  { %953 = vrot.lane.b32.xlu2 %v4942_v18, %s4687_s5 }
 0x30b   :  { %1065 = vrot.lane.b32.xlu2 %v4978_v34, %s4687_s5 }
 0x313   :  { %1547 = vrot.lane.b32.xlu2 %v4957_v26, %s4689_s3 }
 0x317   :  { %v620_v33 = vpop.xlane.xlu2 %619 }
 0x318   :  { %v628_v36 = vsub.f32 %v5045_v21, %v620_v33 }
 0x31a   :  { %v643_v41 = vmul.f32 1.442695, %v628_v36 }
 0x31b   :  { %1407 = vrot.lane.b32.xlu2 %v4920_v7, %s4689_s3 }
 0x31c   :  { %4316 = vpow2.f32 %v643_v41 }
 0x31e   :  { %664 = vadd.xlane.f32.xlu1 %v663_v42 }
 0x322   :  { %v5106_v43 = vpop.eup %4316 }
 0x323   :  { %1461 = vrot.lane.b32.xlu2 %v4935_v15, %s4690_s19  ;;  %v666_v21 = vsel %vm6134_vm3, %v5106_v43, 0.0 }
 0x324   :  { %667 = vadd.xlane.f32.xlu0 %v666_v21 }
 0x326   :  { %v647_v45 = vpop.xlane.xlu0 %646 }
 0x327   :  { %4318 = vrcp.f32 %v647_v45 }
 0x32b   :  { %1271 = vrot.lane.b32.xlu2 %v4947_v20, %s4687_s5 }
 0x32d   :  { %v4319_v51 = vpop.eup %4318 }
 0x32e   :  { %v677_v53 = vmul.f32 %v4319_v51, %v5053_v40  ;;  %v650_v54 = vpop.xlane.xlu0 %649 }
 0x32f   :  { %4320 = vrcp.f32 %v650_v54 }
 0x330   :  { %3976 = vmatmul.msk.f32.vlgmr.msra.gmra.mxu3 %vm6134_vm3, %v677_v53 }
 0x331   :  { %841 = vmatpush.msra.mxu3 %v5116_v58 }
 0x333   :  { %1405 = vrot.lane.b32.xlu2 %v4920_v7, %s4690_s19 }
 0x335   :  { %v4321_v59 = vpop.eup %4320 }
 0x336   :  { %v653_v61 = vpop.xlane.xlu2 %652  ;;  %v678_v40 = vmul.f32 %v4321_v59, %v5057_v46 }
 0x337   :  { %4322 = vrcp.f32 %v653_v61  ;;  %955 = vrot.lane.b32.xlu1 %v4942_v18, %s4688_s0 }
 0x338   :  { %4191 = vrot.lane.b32.xlu0 %v4190_v1, %s4687_s5  ;;  %3977 = vmatmul.msk.f32.vlgmr.msrb.gmra.mxu0 %vm6134_vm3, %v678_v40 }
 0x339   :  { %864 = vmatpush.msrb.mxu0 %v5126_v4 }
 0x33b   :  { %1519 = vrot.lane.b32.xlu2 %v4949_v22, %s4689_s3 }
 0x33d   :  { %v4323_v5 = vpop.eup %4322 }
 0x33e   :  { %v679_v62 = vmul.f32 %v4323_v5, %v5063_v56  ;;  %v656_v46 = vpop.xlane.xlu1 %655 }
 0x33f   :  { %4324 = vrcp.f32 %v656_v46  ;;  %1067 = vrot.lane.b32.xlu1 %v4978_v34, %s4688_s0 }
 0x340   :  { %1433 = vrot.lane.b32.xlu0 %v4926_v10, %s4690_s19  ;;  %3978 = vmatmul.msk.f32.vlgmr.msrb.gmra.mxu3 %vm6134_vm3, %v679_v62 }
 0x341   :  { %3988 = vmatpush.xpose.msk.msrb.mxu3 %vm374_vm2, %v5051_v35 }
 0x345   :  { %v4325_v11 = vpop.eup %4324 }
 0x346   :  { %v680_v9 = vmul.f32 %v4325_v11, %v5067_v63  ;;  %v659_v14 = vpop.xlane.xlu2 %658 }
 0x347   :  { %4326 = vrcp.f32 %v659_v14  ;;  %1435 = vrot.lane.b32.xlu1 %v4926_v10, %s4689_s3 }
 0x348   :  { %3979 = vmatmul.msk.f32.vlgmr.msra.gmra.mxu0 %vm6134_vm3, %v680_v9 }
 0x34d   :  { %v4327_v56 = vpop.eup %4326 }
 0x34e   :  { %v1038_v23 = vpop.permute.xlu2 %1037  ;;  %v662_v27 = vpop.xlane.xlu1 %661  ;;  %v681_v6 = vmul.f32 %v4327_v56, %v5073_v8 }
 0x34f   :  { %4328 = vrcp.f32 %v662_v27  ;;  %4196 = vrot.lane.b32.xlu1 %v4195_v3, %s4687_s5  ;;  %v4187_v8 = vpop.permute.xlu0 %4186 }
 0x350   :  { %3980 = vmatmul.msk.f32.vlgmr.msrb.gmra.mxu1 %vm6134_vm3, %v681_v6  ;;  %v4188_v33 = vunpack.i.l.bf16 %v4187_v8  ;;  %v4189_v41 = vunpack.i.h.bf16 %v4187_v8 }
 0x355   :  { %v4329_v35 = vpop.eup %4328 }
 0x356   :  { %v984_v63 = vpop.permute.xlu2 %983  ;;  %v682_v29 = vmul.f32 %v4329_v35, %v5077_v17 }
 0x357   :  { %3992 = vmatpush.xpose.msk.msrb.mxu1 %vm374_vm2, %v984_v63  ;;  %1545 = vrot.lane.b32.xlu1 %v4957_v26, %s4690_s19 }
 0x358   :  { %3981 = vmatmul.msk.f32.vlgmr.msrb.gmra.mxu2 %vm6134_vm3, %v682_v29 }
 0x359   :  { %3994 = vmatpush.xpose.msk.msrb.mxu2 %vm374_vm2, %v5041_v16 }
 0x35e   :  { %v982_v17 = vpop.permute.xlu2 %981 }
 0x360   :  { %3987 = vmatmul.msk.f32.vlgmr.msra.gmra.mxu2 %vm374_vm2, %v5043_v19 }
 0x361   :  { %1238 = vmatpush.msra.mxu2 %v4188_v33 }
 0x366   :  { %v870_v36 = vpop.permute.xlu1 %869  ;;  %v954_v42 = vpop.permute.xlu2 %953 }
 0x367   :  { %3985 = vmatmul.msk.f32.vlgmr.msra.gmra.mxu1 %vm374_vm2, %v870_v36 }
 0x368   :  { %3995 = vmatmul.msk.f32.vlgmr.msrb.gmra.mxu2 %vm374_vm2, %v5049_v25 }
 0x369   :  { %1346 = vmatpush.msrb.mxu2 %v4189_v41 }
 0x36e   :  { %v1066_v21 = vpop.permute.xlu2 %1065 }
 0x36f   :  { %3993 = vmatmul.msk.f32.vlgmr.msrb.gmra.mxu1 %vm374_vm2, %v982_v17 }
 0x376   :  { %v5165_v45 = vpop.permute.xlu2 %1547 }
 0x37e   :  { %v5171_v53 = vpop.permute.xlu2 %1407 }
 0x386   :  { %v5177_v60 = vpop.permute.xlu2 %1461 }
 0x391   :  { %v665_v16 = vpop.xlane.xlu1 %664 }
 0x392   :  { %4330 = vrcp.f32 %v665_v16 }
 0x397   :  { %v668_v50 = vpop.xlane.xlu0 %667 }
 0x398   :  { %v4331_v19 = vpop.eup %4330  ;;  %4332 = vrcp.f32 %v668_v50 }
 0x399   :  { %v683_v51 = vmul.f32 %v4331_v19, %v5098_v37 }
 0x39b   :  { %3982 = vmatmul.msk.f32.vlgmr.msra.gmra.mxu3 %vm6134_vm3, %v683_v51 }
 0x39c   :  { %3996 = vmatpush.xpose.msk.msra.mxu3 %vm374_vm2, %v5104_v12 }
 0x39e   :  { %v4333_v25 = vpop.eup %4332 }
 0x39f   :  { %v684_v54 = vmul.f32 %v4333_v25, %v5106_v43  ;;  %v1272_v43 = vpop.permute.xlu2 %1271 }
 0x3a1   :  { %3983 = vmatmul.msk.f32.vlgmr.msrb.gmra.mxu0 %vm6134_vm3, %v684_v54 }
 0x3a3   :  { %3989 = vmatmul.msk.f32.vlgmr.msrb.gmra.mxu3 %vm374_vm2, %v5061_v52 }
 0x3a9   :  { %v956_v59 = vpop.permute.xlu1 %955 }
 0x3aa   :  { %3990 = vmatpush.xpose.msk.msra.mxu0 %vm374_vm2, %v956_v59  ;;  %v4192_v37 = vpop.permute.xlu0 %4191 }
 0x3ab   :  { %v4194_v61 = vunpack.i.h.bf16 %v4192_v37  ;;  %v4193_v1 = vunpack.i.l.bf16 %v4192_v37  ;;  %3997 = vmatmul.msk.f32.vlgmr.msra.gmra.mxu3 %vm374_vm2, %v1038_v23 }
 0x3ad   :  { %3991 = vmatmul.msk.f32.vlgmr.msra.gmra.mxu0 %vm374_vm2, %v954_v42  ;;  %1211 = vmatpush.msra.mxu1 %v4194_v61 }
 0x3ae   :  { %1265 = vmatpush.msrb.mxu3 %v4193_v1 }
 0x3b1   :  { %v1068_v12 = vpop.permute.xlu1 %1067 }
 0x3b2   :  { %3998 = vmatpush.xpose.msk.msrb.mxu0 %vm374_vm2, %v1068_v12 }
 0x3b3   :  { %v5198_v36 = vpop.f32.mrf.mxu3 }
 0x3b5   :  { %3999 = vmatmul.msk.f32.vlgmr.msrb.gmra.mxu0 %vm374_vm2, %v1066_v21  ;;  %v5200_v41 = vpop.f32.mrf.mxu0 }
 0x3b6   :  { %1292 = vmatpush.msra.mxu0 %v1272_v43 }
 0x3b9   :  { %v5184_v52 = vpop.permute.xlu1 %1435 }
 0x3c1   :  { %v4197_v40 = vpop.permute.xlu1 %4196 }
 0x3c2   :  { %v4199_v5 = vunpack.i.h.bf16 %v4197_v40  ;;  %v4198_v62 = vunpack.i.l.bf16 %v4197_v40 }
 0x3c3   :  { %v5202_v17 = vpop.f32.mrf.mxu3 }
 0x3c4   :  { %1319 = vmatpush.msrb.mxu1 %v4199_v5  ;;  %1373 = vmatpush.msra.mxu3 %v4198_v62  ;;  %v5216_v5 = vpop.permute.xlu0 %1433 }
 0x3c5   :  { %v5204_v42 = vpop.f32.mrf.mxu0 }
 0x3cd   :  { %v5188_v11 = vpop.f32.mrf.mxu1 }
 0x3db   :  { %v5186_v46 = vpop.f32.mrf.mxu2 }
 0x3e3   :  { %v922_v9 = vpop.f32.mrf.mxu2 }
 0x3e4   :  { %v894_v14 = vpop.f32.mrf.mxu1  ;;  %v1094_v8 = vmul.f32 0.25, %v922_v9 }
 0x3e5   :  { %v1093_v56 = vmul.f32 0.25, %v894_v14  ;;  %v5220_v14 = vpop.permute.xlu1 %1545 }
 0x3e6   :  { %v1104_v33 = vsel %vm6134_vm3, %v1094_v8, -inf }
 0x3e7   :  { %v1101_v3 = vsel %vm6134_vm3, %v1093_v56, -inf }
 0x3e8   :  { %1102 = vmax.xlane.f32.xlu0 %v1101_v3 }
 0x3eb   :  { %v1034_v23 = vpop.f32.mrf.mxu2 }
 0x3ec   :  { %v1098_v27 = vmul.f32 0.25, %v1034_v23  ;;  %v1006_v6 = vpop.f32.mrf.mxu1 }
 0x3ed   :  { %v1097_v35 = vmul.f32 0.25, %v1006_v6 }
 0x3ee   :  { %v1116_v63 = vsel %vm6134_vm3, %v1098_v27, -inf }
 0x3ef   :  { %1117 = vmax.xlane.f32.xlu1 %v1116_v63  ;;  %v1113_v29 = vsel %vm6134_vm3, %v1097_v35, -inf }
 0x3f0   :  { %1114 = vmax.xlane.f32.xlu0 %v1113_v29 }
 0x3f8   :  { %1105 = vmax.xlane.f32.xlu0 %v1104_v33 }
 0x408   :  { %1463 = vrot.lane.b32.xlu1 %v4935_v15, %s4689_s3 }
 0x40c   :  { %1575 = vrot.lane.b32.xlu0 %v4965_v30, %s4689_s3 }
 0x41e   :  { %v5206_v21 = vpop.f32.mrf.mxu3  ;;  %v5208_v16 = vpop.f32.mrf.mxu0 }
 0x426   :  { %v950_v50 = vpop.f32.mrf.mxu3 }
 0x427   :  { %v1095_v19 = vmul.f32 0.25, %v950_v50 }
 0x429   :  { %v1107_v51 = vsel %vm6134_vm3, %v1095_v19, -inf }
 0x42a   :  { %1108 = vmax.xlane.f32.xlu2 %v1107_v51  ;;  %v978_v25 = vpop.f32.mrf.mxu0 }
 0x42b   :  { %v1096_v54 = vmul.f32 0.25, %v978_v25 }
 0x42d   :  { %v1110_v59 = vsel %vm6134_vm3, %v1096_v54, -inf }
 0x42e   :  { %v1062_v37 = vpop.f32.mrf.mxu3 }
 0x42f   :  { %v1099_v61 = vmul.f32 0.25, %v1062_v37 }
 0x431   :  { %v1119_v1 = vsel %vm6134_vm3, %v1099_v61, -inf }
 0x432   :  { %v1090_v12 = vpop.f32.mrf.mxu0 }
 0x433   :  { %v1100_v43 = vmul.f32 0.25, %v1090_v12 }
 0x435   :  { %v1122_v40 = vsel %vm6134_vm3, %v1100_v43, -inf }
 0x436   :  { %1111 = vmax.xlane.f32.xlu0 %v1110_v59 }
 0x43e   :  { %1120 = vmax.xlane.f32.xlu0 %v1119_v1 }
 0x442   :  { %1573 = vrot.lane.b32.xlu2 %v4965_v30, %s4690_s19 }
 0x446   :  { %1123 = vmax.xlane.f32.xlu0 %v1122_v40 }
 0x45a   :  { %1379 = vrot.lane.b32.xlu0 %v5126_v4, %s4687_s5 }
 0x45b   :  { %v1103_v62 = vpop.xlane.xlu0 %1102 }
 0x45c   :  { %v1125_v9 = vsub.f32 %v1093_v56, %v1103_v62  ;;  %v5238_v62 = vpop.permute.xlu2 %1405 }
 0x45e   :  { %v1133_v3 = vmul.f32 1.442695, %v1125_v9 }
 0x460   :  { %4334 = vpow2.f32 %v1133_v3 }
 0x462   :  { %v1118_v63 = vpop.xlane.xlu1 %1117 }
 0x463   :  { %v1115_v23 = vpop.xlane.xlu0 %1114  ;;  %v1130_v50 = vsub.f32 %v1098_v27, %v1118_v63 }
 0x464   :  { %v1129_v6 = vsub.f32 %v1097_v35, %v1115_v23  ;;  %v1520_v9 = vpop.permute.xlu2 %1519 }
 0x465   :  { %v1143_v37 = vmul.f32 1.442695, %v1130_v50 }
 0x466   :  { %v1141_v29 = vmul.f32 1.442695, %v1129_v6  ;;  %v5222_v33 = vpop.eup %4334 }
 0x467   :  { %v1149_v51 = vsel %vm6134_vm3, %v5222_v33, 0.0 }
 0x468   :  { %4336 = vpow2.f32 %v1141_v29 }
 0x46b   :  { %1150 = vadd.xlane.f32.xlu2 %v1149_v51  ;;  %v1106_v25 = vpop.xlane.xlu0 %1105 }
 0x46c   :  { %v1126_v59 = vsub.f32 %v1094_v8, %v1106_v25 }
 0x46e   :  { %v1135_v56 = vmul.f32 1.442695, %v1126_v59  ;;  %v5226_v1 = vpop.eup %4336 }
 0x46f   :  { %v1161_v35 = vsel %vm6134_vm3, %v5226_v1, 0.0 }
 0x470   :  { %4338 = vpow2.f32 %v1135_v56 }
 0x471   :  { %4340 = vpow2.f32 %v1143_v37 }
 0x473   :  { %1162 = vadd.xlane.f32.xlu2 %v1161_v35 }
 0x476   :  { %v5230_v12 = vpop.eup %4338 }
 0x477   :  { %v5232_v27 = vpop.eup %4340  ;;  %v1152_v40 = vsel %vm6134_vm3, %v5230_v12, 0.0 }
 0x478   :  { %1153 = vadd.xlane.f32.xlu1 %v1152_v40  ;;  %v1164_v8 = vsel %vm6134_vm3, %v5232_v27, 0.0 }
 0x47b   :  { %1165 = vadd.xlane.f32.xlu2 %v1164_v8 }
 0x47e   :  { %v5240_v63 = vpop.permute.xlu0 %1575 }
 0x49d   :  { %v1109_v3 = vpop.xlane.xlu2 %1108 }
 0x49e   :  { %v1127_v23 = vsub.f32 %v1095_v19, %v1109_v3 }
 0x4a0   :  { %v1137_v6 = vmul.f32 1.442695, %v1127_v23 }
 0x4a2   :  { %4342 = vpow2.f32 %v1137_v6 }
 0x4a8   :  { %v5242_v29 = vpop.eup %4342 }
 0x4a9   :  { %v1112_v50 = vpop.xlane.xlu0 %1111  ;;  %v1155_v51 = vsel %vm6134_vm3, %v5242_v29, 0.0 }
 0x4aa   :  { %v1128_v25 = vsub.f32 %v1096_v54, %v1112_v50  ;;  %1156 = vadd.xlane.f32.xlu1 %v1155_v51 }
 0x4ac   :  { %v1139_v59 = vmul.f32 1.442695, %v1128_v25 }
 0x4ae   :  { %4344 = vpow2.f32 %v1139_v59  ;;  %v1464_v59 = vpop.permute.xlu1 %1463 }
 0x4b1   :  { %v1121_v37 = vpop.xlane.xlu0 %1120 }
 0x4b2   :  { %v1131_v56 = vsub.f32 %v1099_v61, %v1121_v37 }
 0x4b4   :  { %v5246_v35 = vpop.eup %4344  ;;  %v1145_v40 = vmul.f32 1.442695, %v1131_v56  ;;  %v4205_v56 = vpack.i.bf16 %v5022_v49, %v5015_v44 }
 0x4b5   :  { %v1158_v19 = vsel %vm6134_vm3, %v5246_v35, 0.0 }
 0x4b6   :  { %4346 = vpow2.f32 %v1145_v40  ;;  %1159 = vadd.xlane.f32.xlu0 %v1158_v19 }
 0x4b9   :  { %v1124_v8 = vpop.xlane.xlu0 %1123 }
 0x4ba   :  { %v1132_v3 = vsub.f32 %v1100_v43, %v1124_v8  ;;  %v5262_v43 = vpop.permute.xlu2 %1573 }
 0x4bc   :  { %v5250_v23 = vpop.eup %4346  ;;  %v1147_v6 = vmul.f32 1.442695, %v1132_v3 }
 0x4bd   :  { %v1167_v54 = vsel %vm6134_vm3, %v5250_v23, 0.0 }
 0x4be   :  { %4348 = vpow2.f32 %v1147_v6  ;;  %1168 = vadd.xlane.f32.xlu2 %v1167_v54  ;;  %v4210_v54 = vpack.i.bf16 %v5116_v58, %v4955_v24 }
 0x4c4   :  { %v5254_v50 = vpop.eup %4348 }
 0x4c5   :  { %v1170_v61 = vsel %vm6134_vm3, %v5254_v50, 0.0 }
 0x4c6   :  { %1171 = vadd.xlane.f32.xlu1 %v1170_v61 }
 0x4ca   :  { %1489 = vrot.lane.b32.xlu0 %v4942_v18, %s4690_s19 }
 0x4cc   :  { %v1380_v51 = vpop.permute.xlu0 %1379 }
 0x4cd   :  { %1400 = vmatpush.msrb.mxu0 %v1380_v51 }
 0x4d2   :  { %1601 = vrot.lane.b32.xlu0 %v4978_v34, %s4690_s19 }
 0x4d6   :  { %1491 = vrot.lane.b32.xlu2 %v4942_v18, %s4689_s3 }
 0x4da   :  { %4201 = vrot.lane.b32.xlu0 %v4970_v31, %s4690_s19 }
 0x4de   :  { %v1151_v25 = vpop.xlane.xlu2 %1150  ;;  %1603 = vrot.lane.b32.xlu2 %v4978_v34, %s4689_s3 }
 0x4df   :  { %4350 = vrcp.f32 %v1151_v25  ;;  %1517 = vrot.lane.b32.xlu1 %v4949_v22, %s4690_s19 }
 0x4e2   :  { %1803 = vrot.lane.b32.xlu0 %v4947_v20, %s4690_s19 }
 0x4e5   :  { %v4351_v37 = vpop.eup %4350 }
 0x4e6   :  { %v1181_v40 = vmul.f32 %v4351_v37, %v5222_v33  ;;  %v1163_v19 = vpop.xlane.xlu2 %1162  ;;  %1963 = vrot.lane.b32.xlu2 %v4926_v10, %s4691_s1 }
 0x4e7   :  { %4352 = vrcp.f32 %v1163_v19  ;;  %4206 = vrot.lane.b32.xlu1 %v4205_v56, %s4690_s19 }
 0x4e8   :  { %4000 = vmatmul.msk.f32.vlgmr.msra.gmra.mxu1 %vm6134_vm3, %v1181_v40 }
 0x4e9   :  { %4008 = vmatpush.xpose.msk.msra.mxu1 %vm374_vm2, %v5171_v53 }
 0x4ea   :  { %1933 = vrot.lane.b32.xlu0 %v4920_v7, %s4692_s21 }
 0x4eb   :  { %v1154_v31 = vpop.xlane.xlu1 %1153 }
 0x4ec   :  { %4354 = vrcp.f32 %v1154_v31 }
 0x4ed   :  { %v4353_v33 = vpop.eup %4352 }
 0x4ee   :  { %v1185_v8 = vmul.f32 %v4353_v33, %v5226_v1  ;;  %v1166_v3 = vpop.xlane.xlu2 %1165 }
 0x4ef   :  { %1961 = vrot.lane.b32.xlu1 %v4926_v10, %s4692_s21  ;;  %4356 = vrcp.f32 %v1166_v3 }
 0x4f0   :  { %4004 = vmatmul.msk.f32.vlgmr.msrb.gmra.mxu1 %vm6134_vm3, %v1185_v8 }
 0x4f1   :  { %4016 = vmatpush.xpose.msk.msrb.mxu1 %vm374_vm2, %v1520_v9 }
 0x4f2   :  { %v4355_v6 = vpop.eup %4354 }
 0x4f3   :  { %v1182_v53 = vmul.f32 %v4355_v6, %v5230_v12 }
 0x4f5   :  { %4001 = vmatmul.msk.f32.vlgmr.msra.gmra.mxu2 %vm6134_vm3, %v1182_v53  ;;  %v4357_v1 = vpop.eup %4356 }
 0x4f6   :  { %4010 = vmatpush.xpose.msk.msra.mxu2 %vm374_vm2, %v5184_v52  ;;  %v1186_v10 = vmul.f32 %v4357_v1, %v5232_v27 }
 0x4f7   :  { %4211 = vrot.lane.b32.xlu1 %v4210_v54, %s4690_s19 }
 0x4f8   :  { %4009 = vmatmul.msk.f32.vlgmr.msra.gmra.mxu1 %vm374_vm2, %v5238_v62 }
 0x4fd   :  { %4005 = vmatmul.msk.f32.vlgmr.msrb.gmra.mxu2 %vm6134_vm3, %v1186_v10 }
 0x4fe   :  { %4018 = vmatpush.xpose.msk.msrb.mxu2 %vm374_vm2, %v5165_v45 }
 0x4ff   :  { %1935 = vrot.lane.b32.xlu1 %v4920_v7, %s4691_s1 }
 0x505   :  { %4011 = vmatmul.msk.f32.vlgmr.msra.gmra.mxu2 %vm374_vm2, %v5216_v5 }
 0x50d   :  { %4019 = vmatmul.msk.f32.vlgmr.msrb.gmra.mxu2 %vm374_vm2, %v5220_v14 }
 0x51d   :  { %v1157_v52 = vpop.xlane.xlu1 %1156 }
 0x51e   :  { %4358 = vrcp.f32 %v1157_v52 }
 0x524   :  { %v4359_v12 = vpop.eup %4358 }
 0x525   :  { %v1183_v62 = vmul.f32 %v4359_v12, %v5242_v29 }
 0x527   :  { %4002 = vmatmul.msk.f32.vlgmr.msrb.gmra.mxu3 %vm6134_vm3, %v1183_v62 }
 0x528   :  { %4012 = vmatpush.xpose.msk.msrb.mxu3 %vm374_vm2, %v1464_v59 }
 0x529   :  { %v1160_v27 = vpop.xlane.xlu0 %1159 }
 0x52a   :  { %4360 = vrcp.f32 %v1160_v27 }
 0x530   :  { %v4361_v45 = vpop.eup %4360 }
 0x531   :  { %v1184_v7 = vmul.f32 %v4361_v45, %v5246_v35  ;;  %v1169_v9 = vpop.xlane.xlu2 %1168 }
 0x532   :  { %4362 = vrcp.f32 %v1169_v9 }
 0x533   :  { %4003 = vmatmul.msk.f32.vlgmr.msra.gmra.mxu0 %vm6134_vm3, %v1184_v7 }
 0x538   :  { %v4363_v5 = vpop.eup %4362 }
 0x539   :  { %v1187_v14 = vmul.f32 %v4363_v5, %v5250_v23  ;;  %v1492_v61 = vpop.permute.xlu2 %1491  ;;  %v1172_v51 = vpop.xlane.xlu1 %1171 }
 0x53a   :  { %4364 = vrcp.f32 %v1172_v51  ;;  %4014 = vmatpush.xpose.msk.msra.mxu0 %vm374_vm2, %v1492_v61 }
 0x53b   :  { %4006 = vmatmul.msk.f32.vlgmr.msra.gmra.mxu3 %vm6134_vm3, %v1187_v14 }
 0x53c   :  { %4020 = vmatpush.xpose.msk.msra.mxu3 %vm374_vm2, %v5240_v63  ;;  %v1490_v29 = vpop.permute.xlu0 %1489 }
 0x540   :  { %v4365_v25 = vpop.eup %4364 }
 0x541   :  { %v1188_v35 = vmul.f32 %v4365_v25, %v5254_v50  ;;  %v1604_v59 = vpop.permute.xlu2 %1603 }
 0x543   :  { %4007 = vmatmul.msk.f32.vlgmr.msrb.gmra.mxu0 %vm6134_vm3, %v1188_v35  ;;  %4013 = vmatmul.msk.f32.vlgmr.msrb.gmra.mxu3 %vm374_vm2, %v5177_v60 }
 0x544   :  { %4022 = vmatpush.xpose.msk.msrb.mxu0 %vm374_vm2, %v1604_v59  ;;  %v1602_v23 = vpop.permute.xlu0 %1601 }
 0x54b   :  { %4015 = vmatmul.msk.f32.vlgmr.msra.gmra.mxu0 %vm374_vm2, %v1490_v29  ;;  %4021 = vmatmul.msk.f32.vlgmr.msra.gmra.mxu3 %vm374_vm2, %v5262_v43 }
 0x54c   :  { %v4202_v37 = vpop.permute.xlu0 %4201 }
 0x54d   :  { %v4204_v63 = vunpack.i.h.bf16 %v4202_v37  ;;  %v4203_v56 = vunpack.i.l.bf16 %v4202_v37 }
 0x54f   :  { %1772 = vmatpush.msra.mxu2 %v4203_v56 }
 0x551   :  { %1876 = vmatpush.msrb.mxu2 %v4204_v63  ;;  %v1518_v50 = vpop.permute.xlu1 %1517 }
 0x552   :  { %4017 = vmatmul.msk.f32.vlgmr.msrb.gmra.mxu1 %vm374_vm2, %v1518_v50 }
 0x553   :  { %4023 = vmatmul.msk.f32.vlgmr.msrb.gmra.mxu0 %vm374_vm2, %v1602_v23 }
 0x554   :  { %v1804_v40 = vpop.permute.xlu0 %1803 }
 0x555   :  { %1824 = vmatpush.msra.mxu0 %v1804_v40 }
 0x559   :  { %v4207_v60 = vpop.permute.xlu1 %4206 }
 0x55a   :  { %v4209_v19 = vunpack.i.h.bf16 %v4207_v60  ;;  %v4208_v31 = vunpack.i.l.bf16 %v4207_v60 }
 0x55c   :  { %1746 = vmatpush.msra.mxu1 %v4208_v31  ;;  %1798 = vmatpush.msrb.mxu3 %v4209_v19 }
 0x561   :  { %v5329_v33 = vpop.permute.xlu1 %1961 }
 0x565   :  { %v5331_v43 = vpop.f32.mrf.mxu1 }
 0x569   :  { %v4212_v8 = vpop.permute.xlu1 %4211 }
 0x56a   :  { %v4214_v3 = vunpack.i.h.bf16 %v4212_v8  ;;  %v4213_v6 = vunpack.i.l.bf16 %v4212_v8 }
 0x56c   :  { %1850 = vmatpush.msrb.mxu1 %v4213_v6  ;;  %1902 = vmatpush.msra.mxu3 %v4214_v3 }
 0x56d   :  { %v5333_v53 = vpop.f32.mrf.mxu1 }
 0x575   :  { %v1430_v54 = vpop.f32.mrf.mxu1 }
 0x576   :  { %v1629_v1 = vmul.f32 0.25, %v1430_v54 }
 0x578   :  { %v5335_v10 = vpop.f32.mrf.mxu2  ;;  %v1637_v52 = vsel %vm6134_vm3, %v1629_v1, -inf }
 0x579   :  { %1638 = vmax.xlane.f32.xlu1 %v1637_v52 }
 0x580   :  { %v5340_v62 = vpop.f32.mrf.mxu2 }
 0x588   :  { %v1458_v45 = vpop.f32.mrf.mxu2 }
 0x589   :  { %v1630_v7 = vmul.f32 0.25, %v1458_v45 }
 0x58b   :  { %v1640_v9 = vsel %vm6134_vm3, %v1630_v7, -inf }
 0x58c   :  { %1641 = vmax.xlane.f32.xlu2 %v1640_v9 }
 0x590   :  { %v1570_v3 = vpop.f32.mrf.mxu2 }
 0x591   :  { %v1634_v6 = vmul.f32 0.25, %v1570_v3 }
 0x593   :  { %v1652_v54 = vsel %vm6134_vm3, %v1634_v6, -inf }
 0x5aa   :  { %v5345_v5 = vpop.f32.mrf.mxu3 }
 0x5b0   :  { %v5347_v14 = vpop.f32.mrf.mxu0 }
 0x5be   :  { %v5351_v51 = vpop.f32.mrf.mxu3 }
 0x5c0   :  { %v5353_v29 = vpop.f32.mrf.mxu0 }
 0x5c6   :  { %v1486_v35 = vpop.f32.mrf.mxu3 }
 0x5c7   :  { %v1631_v59 = vmul.f32 0.25, %v1486_v35  ;;  %v1936_v35 = vpop.permute.xlu1 %1935 }
 0x5c8   :  { %v1514_v23 = vpop.f32.mrf.mxu0 }
 0x5c9   :  { %v5357_v37 = vmul.f32 0.25, %v1514_v23  ;;  %v1643_v63 = vsel %vm6134_vm3, %v1631_v59, -inf }
 0x5ca   :  { %1644 = vmax.xlane.f32.xlu2 %v1643_v63 }
 0x5cb   :  { %v1646_v56 = vsel %vm6134_vm3, %v5357_v37, -inf }
 0x5cc   :  { %1647 = vmax.xlane.f32.xlu1 %v1646_v56 }
 0x5ce   :  { %v1598_v50 = vpop.f32.mrf.mxu3 }
 0x5cf   :  { %v1635_v40 = vmul.f32 0.25, %v1598_v50  ;;  %v1542_v60 = vpop.f32.mrf.mxu1 }
 0x5d0   :  { %v1633_v19 = vmul.f32 0.25, %v1542_v60  ;;  %v1626_v52 = vpop.f32.mrf.mxu0 }
 0x5d1   :  { %v1655_v31 = vsel %vm6134_vm3, %v1635_v40, -inf  ;;  %v5365_v45 = vmul.f32 0.25, %v1626_v52 }
 0x5d2   :  { %1656 = vmax.xlane.f32.xlu2 %v1655_v31  ;;  %v1649_v8 = vsel %vm6134_vm3, %v1633_v19, -inf  ;;  %v5376_v31 = vpop.permute.xlu2 %1963 }
 0x5d3   :  { %1650 = vmax.xlane.f32.xlu0 %v1649_v8  ;;  %v1658_v9 = vsel %vm6134_vm3, %v5365_v45, -inf }
 0x5db   :  { %1653 = vmax.xlane.f32.xlu0 %v1652_v54 }
 0x5e3   :  { %1659 = vmax.xlane.f32.xlu0 %v1658_v9 }
 0x5ec   :  { %v1639_v23 = vpop.xlane.xlu1 %1638 }
 0x5ed   :  { %v1661_v63 = vsub.f32 %v1629_v1, %v1639_v23  ;;  %v5378_v1 = vpop.permute.xlu0 %1933 }
 0x5ef   :  { %v1669_v56 = vmul.f32 1.442695, %v1661_v63 }
 0x5f1   :  { %4366 = vpow2.f32 %v1669_v56 }
 0x5f7   :  { %v4367_v50 = vpop.eup %4366  ;;  %1989 = vrot.lane.b32.xlu0 %v4935_v15, %s4692_s21 }
 0x5f8   :  { %v1685_v60 = vsel %vm6134_vm3, %v4367_v50, 0.0 }
 0x5f9   :  { %1686 = vadd.xlane.f32.xlu2 %v1685_v60 }
 0x5ff   :  { %1907 = vrot.lane.b32.xlu0 %v5126_v4, %s4690_s19  ;;  %v1642_v8 = vpop.xlane.xlu2 %1641  ;;  %s4698_s19 = smov [#allocation11]  }
 0x600   :  { %v1662_v56 = vsub.f32 %v1630_v7, %v1642_v8 }
 0x602   :  { %v1671_v60 = vmul.f32 1.442695, %v1662_v56 }
 0x607   :  { %2017 = vrot.lane.b32.xlu0 %v4942_v18, %s4692_s21 }
 0x63d   :  { %v1645_v3 = vpop.xlane.xlu2 %1644 }
 0x63e   :  { %v1663_v2 = vsub.f32 %v1631_v59, %v1645_v3 }
 0x640   :  { %v1673_v7 = vmul.f32 1.442695, %v1663_v2 }
 0x645   :  { %v1657_v54 = vpop.xlane.xlu2 %1656 }
 0x646   :  { %v1667_v52 = vsub.f32 %v1635_v40, %v1657_v54  ;;  %v1651_v9 = vpop.xlane.xlu0 %1650 }
 0x647   :  { %v1665_v23 = vsub.f32 %v1633_v19, %v1651_v9 }
 0x648   :  { %v1681_v63 = vmul.f32 1.442695, %v1667_v52  ;;  %v1648_v52 = vpop.xlane.xlu1 %1647 }
 0x649   :  { %v1677_v27 = vmul.f32 1.442695, %v1665_v23  ;;  %v1664_v9 = vsub.f32 %v5357_v37, %v1648_v52 }
 0x64a   :  { %4368 = vpow2.f32 %v1681_v63 }
 0x64b   :  { %4370 = vpow2.f32 %v1677_v27  ;;  %v1675_v23 = vmul.f32 1.442695, %v1664_v9 }
 0x64c   :  { %4372 = vpow2.f32 %v1671_v60 }
 0x64e   :  { %v1654_v25 = vpop.xlane.xlu0 %1653 }
 0x64f   :  { %v1666_v61 = vsub.f32 %v1634_v6, %v1654_v25 }
 0x650   :  { %v5380_v32 = vpop.eup %4368 }
 0x651   :  { %v4371_v12 = vpop.eup %4370  ;;  %v1679_v0 = vmul.f32 1.442695, %v1666_v61  ;;  %v1703_v57 = vsel %vm6134_vm3, %v5380_v32, 0.0 }
 0x652   :  { %1704 = vadd.xlane.f32.xlu0 %v1703_v57  ;;  %v1697_v40 = vsel %vm6134_vm3, %v4371_v12, 0.0  ;;  %v4373_v19 = vpop.eup %4372 }
 0x653   :  { %4374 = vpow2.f32 %v1679_v0  ;;  %1698 = vadd.xlane.f32.xlu2 %v1697_v40  ;;  %v1688_v25 = vsel %vm6134_vm3, %v4373_v19, 0.0 }
 0x654   :  { %4376 = vpow2.f32 %v1673_v7 }
 0x656   :  { %v1660_v59 = vpop.xlane.xlu0 %1659 }
 0x657   :  { %v1668_v63 = vsub.f32 %v5365_v45, %v1660_v59 }
 0x659   :  { %v5385_v27 = vpop.eup %4374 }
 0x65a   :  { %v1700_v6 = vsel %vm6134_vm3, %v5385_v27, 0.0  ;;  %v4377_v61 = vpop.eup %4376 }
 0x65b   :  { %1689 = vadd.xlane.f32.xlu2 %v1688_v25  ;;  %1701 = vadd.xlane.f32.xlu1 %v1700_v6  ;;  %v1691_v57 = vsel %vm6134_vm3, %v4377_v61, 0.0 }
 0x663   :  { %1692 = vadd.xlane.f32.xlu1 %v1691_v57 }
 0x666   :  { %2073 = vrot.lane.b32.xlu0 %v4957_v26, %s4692_s21 }
 0x669   :  { %v1990_v0 = vpop.permute.xlu0 %1989 }
 0x66c   :  { %v1687_v2 = vpop.xlane.xlu2 %1686 }
 0x66d   :  { %4378 = vrcp.f32 %v1687_v2 }
 0x66e   :  { %2045 = vrot.lane.b32.xlu0 %v4949_v22, %s4692_s21  ;;  %4380 = vpow2.f32 %v1675_v23 }
 0x671   :  { %v1908_v8 = vpop.permute.xlu0 %1907 }
 0x672   :  { %1928 = vmatpush.msrb.mxu0 %v1908_v8 }
 0x673   :  { %v4379_v3 = vpop.eup %4378  ;;  %1991 = vrot.lane.b32.xlu2 %v4935_v15, %s4691_s1  ;;  %v1683_v15 = vmul.f32 1.442695, %v1668_v63 }
 0x674   :  { %v1717_v54 = vmul.f32 %v4379_v3, %v4367_v50  ;;  %v4381_v56 = vpop.eup %4380 }
 0x675   :  { %v1694_v50 = vsel %vm6134_vm3, %v4381_v56, 0.0  ;;  %4382 = vpow2.f32 %v1683_v15 }
 0x676   :  { %4024 = vmatmul.msk.f32.vlgmr.msra.gmra.mxu1 %vm6134_vm3, %v1717_v54  ;;  %2131 = vrot.lane.b32.xlu0 %v4978_v34, %s4691_s1 }
 0x677   :  { %4032 = vmatpush.xpose.msk.msra.mxu1 %vm374_vm2, %v1936_v35 }
 0x67b   :  { %v4383_v60 = vpop.eup %4382 }
 0x67c   :  { %2019 = vrot.lane.b32.xlu1 %v4942_v18, %s4691_s1  ;;  %v1706_v40 = vsel %vm6134_vm3, %v4383_v60, 0.0 }
 0x69c   :  { %1695 = vadd.xlane.f32.xlu2 %v1694_v50 }
 0x6a6   :  { %1707 = vadd.xlane.f32.xlu1 %v1706_v40 }
 0x6b4   :  { %2075 = vrot.lane.b32.xlu2 %v4957_v26, %s4691_s1  ;;  %v2018_v26 = vpop.permute.xlu0 %2017 }
 0x6bc   :  { %2047 = vrot.lane.b32.xlu2 %v4949_v22, %s4691_s1 }
 0x6bf   :  { %2101 = vrot.lane.b32.xlu1 %v4965_v30, %s4692_s21 }
 0x6c4   :  { %2103 = vrot.lane.b32.xlu2 %v4965_v30, %s4691_s1 }
 0x6c5   :  { %v1705_v30 = vpop.xlane.xlu0 %1704 }
 0x6c6   :  { %v1699_v18 = vpop.xlane.xlu2 %1698 }
 0x6c7   :  { %4384 = vrcp.f32 %v1699_v18 }
 0x6cc   :  { %2129 = vrot.lane.b32.xlu2 %v4978_v34, %s4692_s21 }
 0x6cd   :  { %v4385_v37 = vpop.eup %4384 }
 0x6ce   :  { %v1721_v45 = vmul.f32 %v4385_v37, %v4371_v12  ;;  %v1690_v35 = vpop.xlane.xlu2 %1689  ;;  %v1702_v7 = vpop.xlane.xlu1 %1701 }
 0x6cf   :  { %4386 = vrcp.f32 %v1690_v35 }
 0x6d0   :  { %4028 = vmatmul.msk.f32.vlgmr.msrb.gmra.mxu1 %vm6134_vm3, %v1721_v45  ;;  %4388 = vrcp.f32 %v1702_v7 }
 0x6d5   :  { %v4387_v22 = vpop.eup %4386 }
 0x6d6   :  { %v1718_v25 = vmul.f32 %v4387_v22, %v4373_v19  ;;  %v1693_v6 = vpop.xlane.xlu1 %1692  ;;  %v4389_v34 = vpop.eup %4388 }
 0x6d7   :  { %4390 = vrcp.f32 %v1693_v6  ;;  %v1722_v59 = vmul.f32 %v4389_v34, %v5385_v27  ;;  %v1992_v2 = vpop.permute.xlu2 %1991 }
 0x6d8   :  { %4025 = vmatmul.msk.f32.vlgmr.msra.gmra.mxu2 %vm6134_vm3, %v1718_v25  ;;  %4033 = vmatmul.msk.f32.vlgmr.msra.gmra.mxu1 %vm374_vm2, %v5378_v1  ;;  %4392 = vrcp.f32 %v1705_v30 }
 0x6d9   :  { %4034 = vmatpush.xpose.msk.msra.mxu2 %vm374_vm2, %v5376_v31  ;;  %v2074_v31 = vpop.permute.xlu0 %2073 }
 0x6dd   :  { %v4391_v12 = vpop.eup %4390 }
 0x6de   :  { %v1719_v57 = vmul.f32 %v4391_v12, %v4377_v61  ;;  %v4393_v19 = vpop.eup %4392 }
 0x6df   :  { %v1723_v1 = vmul.f32 %v4393_v19, %v5380_v32 }
 0x6e0   :  { %4026 = vmatmul.msk.f32.vlgmr.msrb.gmra.mxu3 %vm6134_vm3, %v1719_v57  ;;  %4029 = vmatmul.msk.f32.vlgmr.msrb.gmra.mxu2 %vm6134_vm3, %v1722_v59 }
 0x6e1   :  { %4036 = vmatpush.xpose.msk.msrb.mxu3 %vm374_vm2, %v1992_v2  ;;  %v2046_v52 = vpop.permute.xlu0 %2045 }
 0x6e8   :  { %4030 = vmatmul.msk.f32.vlgmr.msra.gmra.mxu3 %vm6134_vm3, %v1723_v1  ;;  %4035 = vmatmul.msk.f32.vlgmr.msra.gmra.mxu2 %vm374_vm2, %v5329_v33 }
 0x6e9   :  { %v2132_v23 = vpop.permute.xlu0 %2131 }
 0x6ee   :  { %v2020_v61 = vpop.permute.xlu1 %2019 }
 0x6f0   :  { %4037 = vmatmul.msk.f32.vlgmr.msrb.gmra.mxu3 %vm374_vm2, %v1990_v0 }
 0x6f3   :  { %v5444_v50 = vpop.f32.mrf.mxu1 }
 0x70f   :  { %v1696_v27 = vpop.xlane.xlu2 %1695 }
 0x710   :  { %4394 = vrcp.f32 %v1696_v27 }
 0x716   :  { %v4395_v8 = vpop.eup %4394 }
 0x717   :  { %v1720_v3 = vmul.f32 %v4395_v8, %v4381_v56  ;;  %v2076_v54 = vpop.permute.xlu2 %2075 }
 0x718   :  { %4042 = vmatpush.xpose.msk.msrb.mxu2 %vm374_vm2, %v2076_v54 }
 0x719   :  { %4027 = vmatmul.msk.f32.vlgmr.msra.gmra.mxu0 %vm6134_vm3, %v1720_v3  ;;  %v1708_v32 = vpop.xlane.xlu1 %1707 }
 0x71a   :  { %4396 = vrcp.f32 %v1708_v32  ;;  %4038 = vmatpush.xpose.msk.msra.mxu0 %vm374_vm2, %v2020_v61 }
 0x71b   :  { %4043 = vmatmul.msk.f32.vlgmr.msrb.gmra.mxu2 %vm374_vm2, %v2074_v31 }
 0x71f   :  { %v2048_v33 = vpop.permute.xlu2 %2047 }
 0x720   :  { %v4397_v0 = vpop.eup %4396  ;;  %4040 = vmatpush.xpose.msk.msrb.mxu1 %vm374_vm2, %v2048_v33 }
 0x721   :  { %v1724_v9 = vmul.f32 %v4397_v0, %v4383_v60 }
 0x723   :  { %4031 = vmatmul.msk.f32.vlgmr.msrb.gmra.mxu0 %vm6134_vm3, %v1724_v9  ;;  %4041 = vmatmul.msk.f32.vlgmr.msrb.gmra.mxu1 %vm374_vm2, %v2046_v52 }
 0x724   :  { %4046 = vmatpush.xpose.msk.msrb.mxu0 %vm374_vm2, %v2132_v23 }
 0x727   :  { %v2104_v63 = vpop.permute.xlu2 %2103 }
 0x728   :  { %4044 = vmatpush.xpose.msk.msra.mxu3 %vm374_vm2, %v2104_v63 }
 0x72b   :  { %4039 = vmatmul.msk.f32.vlgmr.msra.gmra.mxu0 %vm374_vm2, %v2018_v26 }
 0x72f   :  { %v2130_v15 = vpop.permute.xlu2 %2129 }
 0x731   :  { %v2102_v56 = vpop.permute.xlu1 %2101 }
 0x732   :  { %4045 = vmatmul.msk.f32.vlgmr.msra.gmra.mxu3 %vm374_vm2, %v2102_v56 }
 0x733   :  { %4047 = vmatmul.msk.f32.vlgmr.msrb.gmra.mxu0 %vm374_vm2, %v2130_v15 }
 0x74d   :  { %v5446_v60 = vpop.f32.mrf.mxu1 }
 0x755   :  { %v1958_v40 = vpop.f32.mrf.mxu1 }
 0x756   :  { %v2157_v18 = vmul.f32 0.25, %v1958_v40 }
 0x758   :  { %v2165_v37 = vsel %vm6134_vm3, %v2157_v18, -inf }
 0x759   :  { %2166 = vmax.xlane.f32.xlu0 %v2165_v37 }
 0x75b   :  { %v5449_v45 = vpop.f32.mrf.mxu2 }
 0x75c   :  { %v4235_v35 = vpack.i.bf16 %v5449_v45, %v5444_v50 }
 0x763   :  { %v5453_v7 = vpop.f32.mrf.mxu2  ;;  %v5458_v30 = vpop.f32.mrf.mxu3 }
 0x764   :  { %v4265_v26 = vpack.i.bf16 %v5453_v7, %v5446_v60 }
 0x76b   :  { %v1986_v22 = vpop.f32.mrf.mxu2  ;;  %v5464_v57 = vpop.f32.mrf.mxu3 }
 0x76c   :  { %v2158_v25 = vmul.f32 0.25, %v1986_v22 }
 0x76e   :  { %v2168_v6 = vsel %vm6134_vm3, %v2158_v25, -inf }
 0x76f   :  { %2169 = vmax.xlane.f32.xlu1 %v2168_v6 }
 0x773   :  { %v2014_v32 = vpop.f32.mrf.mxu3 }
 0x774   :  { %v2159_v56 = vmul.f32 0.25, %v2014_v32 }
 0x776   :  { %v2171_v40 = vsel %vm6134_vm3, %v2159_v56, -inf }
 0x796   :  { %v5460_v34 = vpop.f32.mrf.mxu0 }
 0x797   :  { %v4250_v12 = vpack.i.bf16 %v5460_v34, %v5458_v30 }
 0x79e   :  { %v2098_v59 = vpop.f32.mrf.mxu2 }
 0x79f   :  { %v2162_v2 = vmul.f32 0.25, %v2098_v59  ;;  %v4220_v59 = vpack.i.bf16 %v4947_v20, %v5022_v49  ;;  %v4215_v20 = vpack.i.bf16 %v5015_v44, %v4933_v13 }
 0x7a0   :  { %v5466_v19 = vpop.f32.mrf.mxu0  ;;  %v2070_v1 = vpop.f32.mrf.mxu1 }
 0x7a1   :  { %v4280_v31 = vpack.i.bf16 %v5466_v19, %v5464_v57  ;;  %v2161_v27 = vmul.f32 0.25, %v2070_v1  ;;  %v2180_v61 = vsel %vm6134_vm3, %v2162_v2, -inf }
 0x7a2   :  { %2181 = vmax.xlane.f32.xlu0 %v2180_v61 }
 0x7a3   :  { %v2177_v8 = vsel %vm6134_vm3, %v2161_v27, -inf }
 0x7a4   :  { %2178 = vmax.xlane.f32.xlu2 %v2177_v8 }
 0x7a8   :  { %v2042_v3 = vpop.f32.mrf.mxu0 }
 0x7a9   :  { %v2160_v54 = vmul.f32 0.25, %v2042_v3 }
 0x7ab   :  { %v2174_v52 = vsel %vm6134_vm3, %v2160_v54, -inf }
 0x7ac   :  { %2175 = vmax.xlane.f32.xlu1 %v2174_v52 }
 0x7b0   :  { %v2154_v33 = vpop.f32.mrf.mxu0 }
 0x7b1   :  { %v5473_v0 = vmul.f32 0.25, %v2154_v33 }
 0x7b3   :  { %v2186_v9 = vsel %vm6134_vm3, %v5473_v0, -inf }
 0x7b4   :  { %2187 = vmax.xlane.f32.xlu2 %v2186_v9 }
 0x7b5   :  { %v2126_v23 = vpop.f32.mrf.mxu3 }
 0x7b6   :  { %v2163_v63 = vmul.f32 0.25, %v2126_v23 }
 0x7b8   :  { %v2183_v15 = vsel %vm6134_vm3, %v2163_v63, -inf }
 0x7b9   :  { %2184 = vmax.xlane.f32.xlu1 %v2183_v15 }
 0x7bc   :  { %2172 = vmax.xlane.f32.xlu2 %v2171_v40 }
 0x7cc   :  { %v2167_v37 = vpop.xlane.xlu0 %2166 }
 0x7cd   :  { %v2189_v22 = vsub.f32 %v2157_v18, %v2167_v37 }
 0x7cf   :  { %v2197_v6 = vmul.f32 1.442695, %v2189_v22 }
 0x7d1   :  { %4398 = vpow2.f32 %v2197_v6 }
 0x7d4   :  { %4221 = vrot.lane.b32.xlu2 %v4220_v59, %s4692_s21 }
 0x7d7   :  { %v5482_v1 = vpop.eup %4398 }
 0x7d8   :  { %v2213_v61 = vsel %vm6134_vm3, %v5482_v1, 0.0 }
 0x7d9   :  { %2214 = vadd.xlane.f32.xlu1 %v2213_v61 }
 0x7e2   :  { %v2170_v8 = vpop.xlane.xlu1 %2169 }
 0x7e3   :  { %v2190_v3 = vsub.f32 %v2158_v25, %v2170_v8 }
 0x7e5   :  { %v2199_v52 = vmul.f32 1.442695, %v2190_v3 }
 0x7e7   :  { %4400 = vpow2.f32 %v2199_v52 }
 0x7ed   :  { %v5486_v32 = vpop.eup %4400 }
 0x7ee   :  { %v2216_v18 = vsel %vm6134_vm3, %v5486_v32, 0.0 }
 0x7ef   :  { %2217 = vadd.xlane.f32.xlu0 %v2216_v18 }
 0x803   :  { %4216 = vrot.lane.b32.xlu0 %v4215_v20, %s4692_s21 }
 0x815   :  { %v2182_v9 = vpop.xlane.xlu0 %2181 }
 0x816   :  { %v2194_v25 = vsub.f32 %v2162_v2, %v2182_v9 }
 0x817   :  { %v2179_v49 = vpop.xlane.xlu2 %2178 }
 0x818   :  { %v2193_v33 = vsub.f32 %v2161_v27, %v2179_v49  ;;  %v2207_v22 = vmul.f32 1.442695, %v2194_v25  ;;  %v6151_v25 = vpack.i.bf16 %v4955_v24, %v4963_v28 }
 0x81a   :  { %v2205_v23 = vmul.f32 1.442695, %v2193_v33 }
 0x81c   :  { %4402 = vpow2.f32 %v2205_v23 }
 0x81f   :  { %v2176_v15 = vpop.xlane.xlu1 %2175 }
 0x820   :  { %v2192_v40 = vsub.f32 %v2160_v54, %v2176_v15 }
 0x822   :  { %v2203_v37 = vmul.f32 1.442695, %v2192_v40  ;;  %v5493_v59 = vpop.eup %4402 }
 0x823   :  { %v2225_v44 = vsel %vm6134_vm3, %v5493_v59, 0.0 }
 0x824   :  { %4404 = vpow2.f32 %v2203_v37 }
 0x825   :  { %4406 = vpow2.f32 %v2207_v22 }
 0x827   :  { %v2188_v6 = vpop.xlane.xlu2 %2187 }
 0x828   :  { %v2196_v37 = vsub.f32 %v5473_v0, %v2188_v6 }
 0x82a   :  { %v4405_v61 = vpop.eup %4404  ;;  %v2211_v22 = vmul.f32 1.442695, %v2196_v37 }
 0x82b   :  { %v2222_v13 = vsel %vm6134_vm3, %v4405_v61, 0.0  ;;  %v5498_v54 = vpop.eup %4406 }
 0x82c   :  { %2223 = vadd.xlane.f32.xlu1 %v2222_v13  ;;  %v2185_v27 = vpop.xlane.xlu1 %2184  ;;  %v2228_v18 = vsel %vm6134_vm3, %v5498_v54, 0.0 }
 0x82d   :  { %2226 = vadd.xlane.f32.xlu0 %v2225_v44  ;;  %v2195_v3 = vsub.f32 %v2163_v63, %v2185_v27 }
 0x82f   :  { %v2173_v8 = vpop.xlane.xlu2 %2172  ;;  %v2209_v20 = vmul.f32 1.442695, %v2195_v3 }
 0x830   :  { %v2191_v2 = vsub.f32 %v2159_v56, %v2173_v8  ;;  %v6150_v56 = vpack.i.bf16 %v5335_v10, %v5331_v43 }
 0x832   :  { %v2201_v52 = vmul.f32 1.442695, %v2191_v2 }
 0x834   :  { %4408 = vpow2.f32 %v2201_v52  ;;  %2229 = vadd.xlane.f32.xlu1 %v2228_v18 }
 0x835   :  { %4410 = vpow2.f32 %v2209_v20 }
 0x836   :  { %4412 = vpow2.f32 %v2211_v22 }
 0x837   :  { %v4222_v49 = vpop.permute.xlu2 %4221 }
 0x838   :  { %v4224_v33 = vunpack.i.h.bf16 %v4222_v49  ;;  %v4223_v9 = vunpack.i.l.bf16 %v4222_v49 }
 0x83a   :  { %v4409_v23 = vpop.eup %4408  ;;  %2326 = vmatpush.msrb.mxu3 %v4223_v9  ;;  %2352 = vmatpush.msra.mxu0 %v4224_v33 }
 0x83b   :  { %v2219_v15 = vsel %vm6134_vm3, %v4409_v23, 0.0  ;;  %v4411_v40 = vpop.eup %4410 }
 0x83c   :  { %2220 = vadd.xlane.f32.xlu2 %v2219_v15  ;;  %v2231_v63 = vsel %vm6134_vm3, %v4411_v40, 0.0  ;;  %v4413_v43 = vpop.eup %4412 }
 0x841   :  { %2409 = vrot.lane.b32.xlu0 %v5116_v58, %s4692_s21  ;;  %v6152_v58 = vpack.i.bf16 %v5347_v14, %v5345_v5  ;;  %v6153_v5 = vpack.i.bf16 %v5353_v29, %v5351_v51 }
 0x844   :  { %2232 = vadd.xlane.f32.xlu2 %v2231_v63 }
 0x849   :  { %4231 = vrot.lane.b32.xlu0 %v6150_v56, %s4691_s1 }
 0x84c   :  { %v2215_v13 = vpop.xlane.xlu1 %2214 }
 0x84d   :  { %4226 = vrot.lane.b32.xlu1 %v6151_v25, %s4692_s21  ;;  %4414 = vrcp.f32 %v2215_v13  ;;  %v4152_v13 = vld [vmem:[#allocation7 + $0x10] sm:$0xff] }
 0x853   :  { %v4415_v10 = vpop.eup %4414 }
 0x854   :  { %v2245_v0 = vmul.f32 %v4415_v10, %v5482_v1 }
 0x85c   :  { %2435 = vrot.lane.b32.xlu2 %v5126_v4, %s4692_s21  ;;  %v2234_v4 = vsel %vm6134_vm3, %v4413_v43, 0.0 }
 0x862   :  { %v2218_v44 = vpop.xlane.xlu0 %2217 }
 0x863   :  { %4416 = vrcp.f32 %v2218_v44  ;;  %v4151_v44 = vld [vmem:[#allocation7 + $0x8] sm:$0xff] }
 0x864   :  { %4246 = vrot.lane.b32.xlu2 %v6152_v58, %s4691_s1 }
 0x869   :  { %v4417_v24 = vpop.eup %4416 }
 0x86a   :  { %v2246_v6 = vmul.f32 %v4417_v24, %v5486_v32 }
 0x875   :  { %v4217_v28 = vpop.permute.xlu0 %4216 }
 0x876   :  { %v4219_v27 = vunpack.i.h.bf16 %v4217_v28  ;;  %v4218_v8 = vunpack.i.l.bf16 %v4217_v28 }
 0x877   :  { %2235 = vadd.xlane.f32.xlu1 %v2234_v4 }
 0x878   :  { %2274 = vmatpush.msra.mxu1 %v4219_v27  ;;  %2300 = vmatpush.msra.mxu2 %v4218_v8 }
 0x879   :  { %4048 = vmatmul.msk.f32.vlgmr.msra.gmra.mxu1 %vm6134_vm3, %v2245_v0  ;;  %4049 = vmatmul.msk.f32.vlgmr.msra.gmra.mxu2 %vm6134_vm3, %v2246_v6 }
 0x890   :  { %4236 = vrot.lane.b32.xlu1 %v4235_v35, %s4689_s3 }
 0x898   :  { %4276 = vrot.lane.b32.xlu1 %v6153_v5, %s4691_s1 }
 0x89f   :  { %v2224_v14 = vpop.xlane.xlu1 %2223 }
 0x8a0   :  { %4418 = vrcp.f32 %v2224_v14  ;;  %v2227_v2 = vpop.xlane.xlu0 %2226 }
 0x8a6   :  { %v4419_v1 = vpop.eup %4418 }
 0x8a7   :  { %v2248_v32 = vmul.f32 %v4419_v1, %v4405_v61  ;;  %v2230_v18 = vpop.xlane.xlu1 %2229 }
 0x8a9   :  { %4051 = vmatmul.msk.f32.vlgmr.msra.gmra.mxu0 %vm6134_vm3, %v2248_v32 }
 0x8af   :  { %v2221_v3 = vpop.xlane.xlu2 %2220 }
 0x8b0   :  { %4420 = vrcp.f32 %v2221_v3 }
 0x8b1   :  { %4422 = vrcp.f32 %v2227_v2 }
 0x8b2   :  { %4424 = vrcp.f32 %v2230_v18 }
 0x8b3   :  { %v2410_v52 = vpop.permute.xlu0 %2409 }
 0x8b4   :  { %2430 = vmatpush.msra.mxu3 %v2410_v52 }
 0x8b6   :  { %v4421_v20 = vpop.eup %4420 }
 0x8b7   :  { %v2247_v50 = vmul.f32 %v4421_v20, %v4409_v23  ;;  %v2233_v45 = vpop.xlane.xlu2 %2232  ;;  %v4423_v51 = vpop.eup %4422 }
 0x8b8   :  { %4426 = vrcp.f32 %v2233_v45  ;;  %v4425_v29 = vpop.eup %4424  ;;  %v2249_v63 = vmul.f32 %v4423_v51, %v5493_v59  ;;  %v6154_v59 = vpack.i.bf16 %v5340_v62, %v5333_v53  ;;  %v4150_v53 = vld [vmem:[#allocation7] sm:$0xff] }
 0x8b9   :  { %4050 = vmatmul.msk.f32.vlgmr.msrb.gmra.mxu3 %vm6134_vm3, %v2247_v50  ;;  %v2250_v56 = vmul.f32 %v4425_v29, %v5498_v54  ;;  %v4153_v54 = vld [vmem:[#allocation7 + $0x18] sm:$0xff] }
 0x8bb   :  { %v4232_v62 = vpop.permute.xlu0 %4231 }
 0x8bc   :  { %v4233_v8 = vunpack.i.l.bf16 %v4232_v62 }
 0x8be   :  { %v4427_v35 = vpop.eup %4426  ;;  %v2557_v5 = vsel %vm374_vm2, %v5198_v36, %v4233_v8 }
 0x8bf   :  { %v2251_v61 = vmul.f32 %v4427_v35, %v4411_v40  ;;  %v2436_v49 = vpop.permute.xlu2 %2435  ;;  %v4227_v33 = vpop.permute.xlu1 %4226 }
 0x8c0   :  { %v4229_v9 = vunpack.i.h.bf16 %v4227_v33  ;;  %v4228_v15 = vunpack.i.l.bf16 %v4227_v33  ;;  %2456 = vmatpush.msrb.mxu0 %v2436_v49 }
 0x8c1   :  { %4054 = vmatmul.msk.f32.vlgmr.msra.gmra.mxu3 %vm6134_vm3, %v2251_v61 }
 0x8c2   :  { %2378 = vmatpush.msrb.mxu1 %v4229_v9  ;;  %2404 = vmatpush.msrb.mxu2 %v4228_v15 }
 0x8c3   :  { %4052 = vmatmul.msk.f32.vlgmr.msrb.gmra.mxu1 %vm6134_vm3, %v2249_v63  ;;  %4053 = vmatmul.msk.f32.vlgmr.msrb.gmra.mxu2 %vm6134_vm3, %v2250_v56 }
 0x8c4   :  { %2638 = vmatpush.bf16.msra.mxu1 %v4153_v54 }
 0x8c7   :  { %v4247_v3 = vpop.permute.xlu2 %4246 }
 0x8c8   :  { %2639 = vmatpush.bf16.msra.mxu1 %v4152_v13  ;;  %v4249_v18 = vunpack.i.h.bf16 %v4247_v3  ;;  %v4248_v36 = vunpack.i.l.bf16 %v4247_v3 }
 0x8ca   :  { %v2560_v51 = vsel %vm374_vm2, %v5204_v42, %v4249_v18  ;;  %v2559_v29 = vsel %vm374_vm2, %v5202_v17, %v4248_v36 }
 0x8cc   :  { %2640 = vmatpush.bf16.msra.mxu1 %v4151_v44 }
 0x8d0   :  { %2641 = vmatpush.bf16.msra.mxu1 %v4150_v53 }
 0x8ea   :  { %v2236_v23 = vpop.xlane.xlu1 %2235 }
 0x8eb   :  { %4428 = vrcp.f32 %v2236_v23 }
 0x8f1   :  { %v4429_v40 = vpop.eup %4428 }
 0x8f2   :  { %v2252_v25 = vmul.f32 %v4429_v40, %v4413_v43 }
 0x8f4   :  { %4055 = vmatmul.msk.f32.vlgmr.msrb.gmra.mxu0 %vm6134_vm3, %v2252_v25 }
 0x8f6   :  { %v2276_v37 = vpop.f32.mrf.mxu1 }
 0x8fc   :  { %v2302_v58 = vpop.f32.mrf.mxu2 }
 0x8fd   :  { %v4240_v22 = vpack.i.bf16 %v2302_v58, %v2276_v37 }
 0x8ff   :  { %4241 = vrot.lane.b32.xlu0 %v4240_v22, %s4688_s0 }
 0x902   :  { %v4237_v34 = vpop.permute.xlu1 %4236 }
 0x903   :  { %v4239_v4 = vunpack.i.h.bf16 %v4237_v34  ;;  %v4238_v0 = vunpack.i.l.bf16 %v4237_v34 }
 0x905   :  { %v2565_v14 = vsel %vm183_vm0, %v2557_v5, %v4238_v0 }
 0x907   :  { %4251 = vrot.lane.b32.xlu0 %v4250_v12, %s4689_s3  ;;  %v4234_v12 = vunpack.i.h.bf16 %v4232_v62 }
 0x909   :  { %v2558_v60 = vsel %vm374_vm2, %v5200_v41, %v4234_v12 }
 0x90a   :  { %v2566_v1 = vsel %vm183_vm0, %v2558_v60, %v4239_v4 }
 0x90f   :  { %4261 = vrot.lane.b32.xlu0 %v6154_v59, %s4691_s1  ;;  %s3878_s1 = sshll.u32 %s4698_s19, 4  ;;  %s3879_s1 = int_to_ptr.vmem [resolvable:$true] %s3878_s1 }
 0x926   :  { %v2354_v43 = vpop.f32.mrf.mxu0 }
 0x93c   :  { %v2328_v10 = vpop.f32.mrf.mxu3 }
 0x93d   :  { %v4255_v24 = vpack.i.bf16 %v2354_v43, %v2328_v10 }
 0x93f   :  { %4256 = vrot.lane.b32.xlu2 %v4255_v24, %s4688_s0 }
 0x940   :  { %v2380_v28 = vpop.f32.mrf.mxu1 }
 0x944   :  { %v2432_v6 = vpop.f32.mrf.mxu3 }
 0x946   :  { %v2406_v27 = vpop.f32.mrf.mxu2 }
 0x947   :  { %v4270_v30 = vpack.i.bf16 %v2406_v27, %v2380_v28  ;;  %4266 = vrot.lane.b32.xlu2 %v4265_v26, %s4689_s3  ;;  %v4277_v28 = vpop.permute.xlu1 %4276 }
 0x949   :  { %4271 = vrot.lane.b32.xlu0 %v4270_v30, %s4688_s0  ;;  %v4279_v30 = vunpack.i.h.bf16 %v4277_v28 }
 0x94b   :  { %v2564_v34 = vsel %vm374_vm2, %v5208_v16, %v4279_v30  ;;  %v4294_v16 = vld [vmem:[%s6117_s7] ss:$0 sm:$0xff] }
 0x94f   :  { %4281 = vrot.lane.b32.xlu2 %v4280_v31, %s4689_s3  ;;  %s4697_s3 = smov 3  }
 0x971   :  { %v2458_v7 = vpop.f32.mrf.mxu0  ;;  %v4242_v26 = vpop.permute.xlu0 %4241 }
 0x972   :  { %v4285_v57 = vpack.i.bf16 %v2458_v7, %v2432_v6  ;;  %v4244_v19 = vunpack.i.h.bf16 %v4242_v26  ;;  %v4243_v31 = vunpack.i.l.bf16 %v4242_v26 }
 0x974   :  { %v2575_v32 = vsel %vm2573_vm4, %v2566_v1, %v4244_v19  ;;  %v2574_v2 = vsel %vm2573_vm4, %v2565_v14, %v4243_v31  ;;  %4286 = vrot.lane.b32.xlu0 %v4285_v57, %s4688_s0  ;;  %s4695_s0 = smov 1  }
 0x975   :  { %v2582_v41 = vpack.c.bf16 %v2575_v32, %v2574_v2 }
 0x977   :  { %4072 = vmatmul.msk.bf16.vlgmr.msra.gmra.mxu1 %vm300_vm1, %v2582_v41 }
 0x979   :  { %v4252_v52 = vpop.permute.xlu0 %4251 }
 0x97a   :  { %v4254_v20 = vunpack.i.h.bf16 %v4252_v52  ;;  %v4253_v50 = vunpack.i.l.bf16 %v4252_v52 }
 0x97c   :  { %v2568_v49 = vsel %vm183_vm0, %v2560_v51, %v4254_v20  ;;  %v2567_v33 = vsel %vm183_vm0, %v2559_v29, %v4253_v50 }
 0x981   :  { %v4262_v56 = vpop.permute.xlu0 %4261 }
 0x982   :  { %v4264_v40 = vunpack.i.h.bf16 %v4262_v56  ;;  %v4263_v42 = vunpack.i.l.bf16 %v4262_v56 }
 0x984   :  { %v2562_v58 = vsel %vm374_vm2, %v5186_v46, %v4264_v40  ;;  %v2561_v22 = vsel %vm374_vm2, %v5188_v11, %v4263_v42  ;;  %v4278_v46 = vunpack.i.l.bf16 %v4277_v28  ;;  %v6156_v42 = vld [vmem:[#allocation17_spill] sm:$0xff]  ;;  %v6157_v28 = vld [vmem:[#allocation18_spill] sm:$0xff] }
 0x986   :  { %v2563_v12 = vsel %vm374_vm2, %v5206_v21, %v4278_v46 }
 0x999   :  { %v4257_v45 = vpop.permute.xlu2 %4256 }
 0x99a   :  { %v4259_v35 = vunpack.i.h.bf16 %v4257_v45  ;;  %v4258_v61 = vunpack.i.l.bf16 %v4257_v45 }
 0x99c   :  { %v2576_v9 = vsel %vm2573_vm4, %v2567_v33, %v4258_v61  ;;  %v2577_v15 = vsel %vm2573_vm4, %v2568_v49, %v4259_v35  ;;  %v4693_v33 = vmov 64.0  }
 0x99d   :  { %v2583_v63 = vpack.c.bf16 %v2577_v15, %v2576_v9  ;;  %4430 = vrcp.f32 %v4693_v33 }
 0x99f   :  { %4073 = vmatmul.msk.bf16.gmra.mxu1 %vm300_vm1, %v2583_v63 }
 0x9a1   :  { %v4267_v23 = vpop.permute.xlu2 %4266 }
 0x9a2   :  { %v4269_v25 = vunpack.i.h.bf16 %v4267_v23  ;;  %v4268_v37 = vunpack.i.l.bf16 %v4267_v23 }
 0x9a4   :  { %v2569_v13 = vsel %vm183_vm0, %v2561_v22, %v4268_v37  ;;  %v2570_v44 = vsel %vm183_vm0, %v2562_v58, %v4269_v25 }
 0x9a9   :  { %v4282_v27 = vpop.permute.xlu2 %4281 }
 0x9aa   :  { %v4284_v53 = vunpack.i.h.bf16 %v4282_v27  ;;  %v4283_v62 = vunpack.i.l.bf16 %v4282_v27 }
 0x9ac   :  { %v2571_v0 = vsel %vm183_vm0, %v2563_v12, %v4283_v62  ;;  %v2572_v6 = vsel %vm183_vm0, %v2564_v34, %v4284_v53 }
 0x9bb   :  { %v4272_v17 = vpop.permute.xlu0 %4271 }
 0x9bc   :  { %v4274_v59 = vunpack.i.h.bf16 %v4272_v17  ;;  %v4273_v54 = vunpack.i.l.bf16 %v4272_v17 }
 0x9be   :  { %v2579_v43 = vsel %vm2573_vm4, %v2570_v44, %v4274_v59  ;;  %v2578_v10 = vsel %vm2573_vm4, %v2569_v13, %v4273_v54 }
 0x9bf   :  { %v2584_v24 = vpack.c.bf16 %v2579_v43, %v2578_v10 }
 0x9c1   :  { %4074 = vmatmul.msk.bf16.gmra.mxu1 %vm300_vm1, %v2584_v24 }
 0x9e6   :  { %v4287_v11 = vpop.permute.xlu0 %4286 }
 0x9e7   :  { %v4289_v8 = vunpack.i.h.bf16 %v4287_v11  ;;  %v4288_v4 = vunpack.i.l.bf16 %v4287_v11 }
 0x9e9   :  { %v2581_v60 = vsel %vm2573_vm4, %v2572_v6, %v4289_v8  ;;  %v2580_v7 = vsel %vm2573_vm4, %v2571_v0, %v4288_v4 }
 0x9ea   :  { %v2585_v26 = vpack.c.bf16 %v2581_v60, %v2580_v7 }
 0x9ec   :  { %4075 = vmatmul.msk.bf16.gmra.mxu1 %vm300_vm1, %v2585_v26 }
 0x9f4   :  { %v2643_v5 = vpop.f32.mrf.mxu1 }
 0x9f5   :  { %v2644_v57 = vadd.f32 %v4294_v16, %v2643_v5 }
 0x9f7   :  { %v2663_v21 = vadd.f32 %v2644_v57, %v4885_v38 }
 0x9f9   :  { %v2671_v19 = vsel %vm300_vm1, %v2663_v21, 0.0 }
 0x9fa   :  { %2672 = vadd.xlane.f32.xlu1 %v2671_v19 }
 0x9fc   :  { %v2645_v31 = vpop.f32.mrf.mxu1 }
 0x9fd   :  { %v2646_v14 = vadd.f32 %v4294_v16, %v2645_v31 }
 0x9ff   :  { %v2664_v1 = vadd.f32 %v2646_v14, %v4887_v39 }
 0xa01   :  { %v2674_v32 = vsel %vm300_vm1, %v2664_v1, 0.0 }
 0xa02   :  { %2675 = vadd.xlane.f32.xlu2 %v2674_v32 }
 0xa1c   :  { %v2648_v2 = vpop.f32.mrf.mxu1 }
 0xa1d   :  { %v2649_v41 = vadd.f32 %v4294_v16, %v2648_v2  ;;  %v4157_v2 = vld [vmem:[#allocation8 + $0x18] sm:$0xff] }
 0xa1e   :  { %2934 = vmatpush.bf16.msra.mxu2 %v4157_v2 }
 0xa1f   :  { %v2665_v3 = vadd.f32 %v2649_v41, %v4893_v47  ;;  %v6155_v47 = vld [vmem:[#allocation16_spill] sm:$0xff] }
 0xa21   :  { %v2677_v52 = vsel %vm300_vm1, %v2665_v3, 0.0 }
 0xa22   :  { %2678 = vadd.xlane.f32.xlu0 %v2677_v52  ;;  %v4156_v52 = vld [vmem:[#allocation8 + $0x10] sm:$0xff] }
 0xa23   :  { %2935 = vmatpush.bf16.msra.mxu2 %v4156_v52 }
 0xa24   :  { %v2650_v18 = vpop.f32.mrf.mxu1 }
 0xa25   :  { %v2651_v36 = vadd.f32 %v4294_v16, %v2650_v18 }
 0xa27   :  { %v2666_v38 = vadd.f32 %v2651_v36, %v4895_v48  ;;  %v4431_v48 = vpop.eup %4430 }
 0xa28   :  { %v2696_v9 = vmul.f32 64.0, %v4431_v48  ;;  %vm2700_vm5 = vweird.f32 %v4431_v48 }
 0xa29   :  { %v2680_v20 = vsel %vm300_vm1, %v2666_v38, 0.0 }
 0xa2a   :  { %2681 = vadd.xlane.f32.xlu1 %v2680_v20  ;;  %v2697_v15 = vsub.f32 1.0, %v2696_v9 }
 0xa2c   :  { %v2698_v63 = vmul.f32 %v4431_v48, %v2697_v15 }
 0xa2e   :  { %v2699_v56 = vadd.f32 %v4431_v48, %v2698_v63 }
 0xa30   :  { %v5613_v40 = vsel %vm2700_vm5, %v4431_v48, %v2699_v56 }
 0xa3e   :  { %v2653_v50 = vpop.f32.mrf.mxu1 }
 0xa3f   :  { %v2654_v45 = vadd.f32 %v4294_v16, %v2653_v50 }
 0xa41   :  { %v2667_v39 = vadd.f32 %v2654_v45, %v4901_v55 }
 0xa43   :  { %v2683_v51 = vsel %vm300_vm1, %v2667_v39, 0.0 }
 0xa44   :  { %2684 = vadd.xlane.f32.xlu2 %v2683_v51  ;;  %v4154_v51 = vld [vmem:[#allocation8] sm:$0xff] }
 0xa46   :  { %v2655_v29 = vpop.f32.mrf.mxu1 }
 0xa47   :  { %v2656_v35 = vadd.f32 %v4294_v16, %v2655_v29 }
 0xa49   :  { %v2668_v61 = vadd.f32 %v2656_v35, %v6155_v47 }
 0xa4b   :  { %v2686_v49 = vsel %vm300_vm1, %v2668_v61, 0.0 }
 0xa4c   :  { %2687 = vadd.xlane.f32.xlu0 %v2686_v49 }
 0xa69   :  { %v2658_v23 = vpop.f32.mrf.mxu1 }
 0xa6a   :  { %v2659_v55 = vadd.f32 %v4294_v16, %v2658_v23 }
 0xa6c   :  { %v2669_v25 = vadd.f32 %v2659_v55, %v6156_v42 }
 0xa6d   :  { %v2673_v37 = vpop.xlane.xlu1 %2672 }
 0xa6e   :  { %v2702_v17 = vmul.f32 %v5613_v40, %v2673_v37  ;;  %v2689_v58 = vsel %vm300_vm1, %v2669_v25, 0.0 }
 0xa6f   :  { %2690 = vadd.xlane.f32.xlu0 %v2689_v58 }
 0xa70   :  { %v5618_v22 = vsub.f32 %v2663_v21, %v2702_v17 }
 0xa71   :  { %v2660_v59 = vpop.f32.mrf.mxu1 }
 0xa72   :  { %v2718_v54 = vmul.f32 %v5618_v22, %v5618_v22  ;;  %v2661_v13 = vadd.f32 %v4294_v16, %v2660_v59 }
 0xa74   :  { %v2726_v44 = vsel %vm300_vm1, %v2718_v54, 0.0  ;;  %v2670_v27 = vadd.f32 %v2661_v13, %v6157_v28  ;;  %v5672_v13 = vld [vmem:[%s6118_s8] ss:$0 sm:$0xff] }
 0xa75   :  { %v2676_v43 = vpop.xlane.xlu2 %2675  ;;  %2727 = vadd.xlane.f32.xlu1 %v2726_v44  ;;  %v5678_v28 = vld [vmem:[%s6119_s9] ss:$0 sm:$0xff] }
 0xa76   :  { %v2703_v10 = vmul.f32 %v5613_v40, %v2676_v43  ;;  %v2692_v46 = vsel %vm300_vm1, %v2670_v27, 0.0 }
 0xa78   :  { %v5624_v24 = vsub.f32 %v2664_v1, %v2703_v10 }
 0xa7a   :  { %v2719_v30 = vmul.f32 %v5624_v24, %v5624_v24 }
 0xa7c   :  { %v2729_v53 = vsel %vm300_vm1, %v2719_v30, 0.0 }
 0xa7d   :  { %2693 = vadd.xlane.f32.xlu1 %v2692_v46  ;;  %2730 = vadd.xlane.f32.xlu2 %v2729_v53 }
 0xa95   :  { %v2679_v62 = vpop.xlane.xlu0 %2678 }
 0xa96   :  { %v2704_v11 = vmul.f32 %v5613_v40, %v2679_v62 }
 0xa98   :  { %v5632_v34 = vsub.f32 %v2665_v3, %v2704_v11 }
 0xa9a   :  { %v2720_v12 = vmul.f32 %v5632_v34, %v5632_v34 }
 0xa9c   :  { %v2732_v8 = vsel %vm300_vm1, %v2720_v12, 0.0 }
 0xa9d   :  { %v2682_v4 = vpop.xlane.xlu1 %2681  ;;  %2733 = vadd.xlane.f32.xlu2 %v2732_v8 }
 0xa9e   :  { %v2705_v0 = vmul.f32 %v5613_v40, %v2682_v4 }
 0xaa0   :  { %v5638_v6 = vsub.f32 %v2666_v38, %v2705_v0  ;;  %v4155_v38 = vld [vmem:[#allocation8 + $0x8] sm:$0xff] }
 0xaa1   :  { %2936 = vmatpush.bf16.msra.mxu2 %v4155_v38 }
 0xaa2   :  { %v2721_v60 = vmul.f32 %v5638_v6, %v5638_v6 }
 0xaa4   :  { %v2735_v7 = vsel %vm300_vm1, %v2721_v60, 0.0 }
 0xaa5   :  { %2736 = vadd.xlane.f32.xlu0 %v2735_v7  ;;  %2937 = vmatpush.bf16.msra.mxu2 %v4154_v51 }
 0xab7   :  { %v2685_v26 = vpop.xlane.xlu2 %2684 }
 0xab8   :  { %v2706_v16 = vmul.f32 %v5613_v40, %v2685_v26 }
 0xaba   :  { %v5644_v5 = vsub.f32 %v2667_v39, %v2706_v16 }
 0xabc   :  { %v2722_v57 = vmul.f32 %v5644_v5, %v5644_v5 }
 0xabe   :  { %v2738_v21 = vsel %vm300_vm1, %v2722_v57, 0.0 }
 0xabf   :  { %v2688_v19 = vpop.xlane.xlu0 %2687  ;;  %2739 = vadd.xlane.f32.xlu1 %v2738_v21 }
 0xac0   :  { %v2707_v31 = vmul.f32 %v5613_v40, %v2688_v19 }
 0xac2   :  { %v5650_v14 = vsub.f32 %v2668_v61, %v2707_v31 }
 0xac4   :  { %v2723_v1 = vmul.f32 %v5650_v14, %v5650_v14 }
 0xac6   :  { %v2741_v32 = vsel %vm300_vm1, %v2723_v1, 0.0 }
 0xac7   :  { %2742 = vadd.xlane.f32.xlu2 %v2741_v32 }
 0xae2   :  { %v2691_v41 = vpop.xlane.xlu0 %2690 }
 0xae3   :  { %v2708_v3 = vmul.f32 %v5613_v40, %v2691_v41 }
 0xae5   :  { %v5656_v18 = vsub.f32 %v2669_v25, %v2708_v3 }
 0xae7   :  { %v2724_v36 = vmul.f32 %v5656_v18, %v5656_v18 }
 0xae8   :  { %v2728_v20 = vpop.xlane.xlu1 %2727 }
 0xae9   :  { %v2750_v50 = vmul.f32 %v2728_v20, %v5613_v40  ;;  %v2744_v45 = vsel %vm300_vm1, %v2724_v36, 0.0 }
 0xaea   :  { %2745 = vadd.xlane.f32.xlu0 %v2744_v45 }
 0xaeb   :  { %v2758_v39 = vadd.f32 1e-05, %v2750_v50 }
 0xaed   :  { %4432 = vrsqrt.f32 %v2758_v39  ;;  %vm2772_vm7 = vweird.f32 %v2758_v39 }
 0xaf0   :  { %v2694_v29 = vpop.xlane.xlu1 %2693  ;;  %v2731_v35 = vpop.xlane.xlu2 %2730 }
 0xaf1   :  { %v2709_v47 = vmul.f32 %v5613_v40, %v2694_v29  ;;  %v2751_v61 = vmul.f32 %v2731_v35, %v5613_v40 }
 0xaf3   :  { %v4433_v49 = vpop.eup %4432  ;;  %v5664_v33 = vsub.f32 %v2670_v27, %v2709_v47  ;;  %v2759_v48 = vadd.f32 1e-05, %v2751_v61 }
 0xaf4   :  { %v2767_v9 = vmul.f32 %v4433_v49, %v2758_v39  ;;  %vm2773_vm6 = vweird.f32 %v4433_v49 }
 0xaf5   :  { %4434 = vrsqrt.f32 %v2759_v48  ;;  %v2725_v15 = vmul.f32 %v5664_v33, %v5664_v33  ;;  %vm2774_vm8 = vmor %vm2772_vm7, %vm2773_vm6  ;;  %vm2782_vm10 = vweird.f32 %v2759_v48 }
 0xaf6   :  { %v2768_v63 = vmul.f32 %v4433_v49, %v2767_v9 }
 0xaf7   :  { %v2747_v56 = vsel %vm300_vm1, %v2725_v15, 0.0 }
 0xaf8   :  { %v2769_v23 = vmul.f32 0.5, %v2768_v63  ;;  %2748 = vadd.xlane.f32.xlu1 %v2747_v56 }
 0xafa   :  { %v2770_v55 = vsub.f32 1.5, %v2769_v23 }
 0xafb   :  { %v4435_v42 = vpop.eup %4434 }
 0xafc   :  { %v2771_v25 = vmul.f32 %v4433_v49, %v2770_v55  ;;  %v2777_v37 = vmul.f32 %v4435_v42, %v2759_v48  ;;  %vm2783_vm9 = vweird.f32 %v4435_v42 }
 0xafd   :  { %vm2784_vm11 = vmor %vm2782_vm10, %vm2783_vm9 }
 0xafe   :  { %v2778_v17 = vmul.f32 %v4435_v42, %v2777_v37  ;;  %v2775_v58 = vsel %vm2774_vm8, %v4433_v49, %v2771_v25 }
 0xaff   :  { %v2846_v44 = vmul.f32 %v2775_v58, %v5618_v22 }
 0xb00   :  { %v2779_v59 = vmul.f32 0.5, %v2778_v17 }
 0xb01   :  { %v2858_v27 = vmul.f32 %v5672_v13, %v2846_v44 }
 0xb02   :  { %v2780_v54 = vsub.f32 1.5, %v2779_v59 }
 0xb03   :  { %v5684_v53 = vadd.f32 %v5678_v28, %v2858_v27 }
 0xb04   :  { %v2781_v43 = vmul.f32 %v4435_v42, %v2780_v54 }
 0xb06   :  { %v2785_v10 = vsel %vm2784_vm11, %v4435_v42, %v2781_v43 }
 0xb07   :  { %v2847_v30 = vmul.f32 %v2785_v10, %v5624_v24 }
 0xb09   :  { %v2859_v46 = vmul.f32 %v5672_v13, %v2847_v30 }
 0xb0b   :  { %v5687_v22 = vadd.f32 %v5678_v28, %v2859_v46 }
 0xb0d   :  { %v2878_v62 = vpack.c.bf16 %v5687_v22, %v5684_v53 }
 0xb0f   :  { %4092 = vmatmul.msk.bf16.vlgmr.msra.gmra.mxu2 %vm300_vm1, %v2878_v62 }
 0xb10   :  { %v2734_v11 = vpop.xlane.xlu2 %2733 }
 0xb11   :  { %v2752_v12 = vmul.f32 %v2734_v11, %v5613_v40 }
 0xb13   :  { %v2760_v8 = vadd.f32 1e-05, %v2752_v12 }
 0xb15   :  { %4436 = vrsqrt.f32 %v2760_v8  ;;  %vm2792_vm13 = vweird.f32 %v2760_v8 }
 0xb18   :  { %v2737_v4 = vpop.xlane.xlu0 %2736 }
 0xb19   :  { %v2753_v24 = vmul.f32 %v2737_v4, %v5613_v40 }
 0xb1b   :  { %v4437_v0 = vpop.eup %4436  ;;  %v2761_v60 = vadd.f32 1e-05, %v2753_v24 }
 0xb1c   :  { %v2787_v7 = vmul.f32 %v4437_v0, %v2760_v8  ;;  %vm2793_vm12 = vweird.f32 %v4437_v0 }
 0xb1d   :  { %4438 = vrsqrt.f32 %v2761_v60  ;;  %vm2794_vm14 = vmor %vm2792_vm13, %vm2793_vm12  ;;  %vm2802_vm0 = vweird.f32 %v2761_v60 }
 0xb1e   :  { %v2788_v26 = vmul.f32 %v4437_v0, %v2787_v7  ;;  %v4161_v7 = vld [vmem:[#allocation10 + $0x18] sm:$0xff] }
 0xb1f   :  { %3023 = vmatpush.bf16.msrb.mxu3 %v4161_v7 }
 0xb20   :  { %v2789_v16 = vmul.f32 0.5, %v2788_v26 }
 0xb22   :  { %v2790_v57 = vsub.f32 1.5, %v2789_v16  ;;  %v4160_v16 = vld [vmem:[#allocation10 + $0x10] sm:$0xff] }
 0xb23   :  { %v4439_v21 = vpop.eup %4438  ;;  %3024 = vmatpush.bf16.msrb.mxu3 %v4160_v16 }
 0xb24   :  { %v2791_v19 = vmul.f32 %v4437_v0, %v2790_v57  ;;  %v2797_v31 = vmul.f32 %v4439_v21, %v2761_v60  ;;  %vm2803_vm15 = vweird.f32 %v4439_v21 }
 0xb25   :  { %vm2804_vm2 = vmor %vm2802_vm0, %vm2803_vm15 }
 0xb26   :  { %v2798_v1 = vmul.f32 %v4439_v21, %v2797_v31  ;;  %v2795_v32 = vsel %vm2794_vm14, %v4437_v0, %v2791_v19 }
 0xb27   :  { %v2848_v3 = vmul.f32 %v2795_v32, %v5632_v34 }
 0xb28   :  { %v2799_v2 = vmul.f32 0.5, %v2798_v1  ;;  %v4159_v1 = vld [vmem:[#allocation10 + $0x8] sm:$0xff] }
 0xb29   :  { %v2860_v20 = vmul.f32 %v5672_v13, %v2848_v3  ;;  %3025 = vmatpush.bf16.msrb.mxu3 %v4159_v1  ;;  %v4158_v3 = vld [vmem:[#allocation10] sm:$0xff] }
 0xb2a   :  { %v2800_v41 = vsub.f32 1.5, %v2799_v2 }
 0xb2b   :  { %v5700_v51 = vadd.f32 %v5678_v28, %v2860_v20 }
 0xb2c   :  { %v2801_v52 = vmul.f32 %v4439_v21, %v2800_v41 }
 0xb2d   :  { %3026 = vmatpush.bf16.msrb.mxu3 %v4158_v3 }
 0xb2e   :  { %v2805_v36 = vsel %vm2804_vm2, %v4439_v21, %v2801_v52 }
 0xb2f   :  { %v2849_v38 = vmul.f32 %v2805_v36, %v5638_v6 }
 0xb31   :  { %v2861_v50 = vmul.f32 %v5672_v13, %v2849_v38 }
 0xb32   :  { %v2740_v45 = vpop.xlane.xlu1 %2739 }
 0xb33   :  { %v2754_v39 = vmul.f32 %v2740_v45, %v5613_v40  ;;  %v5703_v29 = vadd.f32 %v5678_v28, %v2861_v50 }
 0xb35   :  { %v2762_v34 = vadd.f32 1e-05, %v2754_v39  ;;  %v2879_v35 = vpack.c.bf16 %v5703_v29, %v5700_v51 }
 0xb37   :  { %4440 = vrsqrt.f32 %v2762_v34  ;;  %4093 = vmatmul.msk.bf16.gmra.mxu2 %vm300_vm1, %v2879_v35  ;;  %vm2812_vm5 = vweird.f32 %v2762_v34 }
 0xb3a   :  { %v2743_v6 = vpop.xlane.xlu2 %2742 }
 0xb3b   :  { %v2755_v47 = vmul.f32 %v2743_v6, %v5613_v40 }
 0xb3d   :  { %v4441_v61 = vpop.eup %4440  ;;  %v2763_v49 = vadd.f32 1e-05, %v2755_v47 }
 0xb3e   :  { %v2807_v48 = vmul.f32 %v4441_v61, %v2762_v34  ;;  %vm2813_vm4 = vweird.f32 %v4441_v61 }
 0xb3f   :  { %4442 = vrsqrt.f32 %v2763_v49  ;;  %vm2814_vm6 = vmor %vm2812_vm5, %vm2813_vm4  ;;  %vm2822_vm8 = vweird.f32 %v2763_v49 }
 0xb40   :  { %v2808_v9 = vmul.f32 %v4441_v61, %v2807_v48 }
 0xb42   :  { %v2809_v15 = vmul.f32 0.5, %v2808_v9 }
 0xb44   :  { %v2810_v63 = vsub.f32 1.5, %v2809_v15 }
 0xb45   :  { %v4443_v56 = vpop.eup %4442 }
 0xb46   :  { %v2811_v23 = vmul.f32 %v4441_v61, %v2810_v63  ;;  %v2817_v55 = vmul.f32 %v4443_v56, %v2763_v49  ;;  %vm2823_vm7 = vweird.f32 %v4443_v56 }
 0xb47   :  { %vm2824_vm9 = vmor %vm2822_vm8, %vm2823_vm7 }
 0xb48   :  { %v2818_v42 = vmul.f32 %v4443_v56, %v2817_v55  ;;  %v2815_v25 = vsel %vm2814_vm6, %v4441_v61, %v2811_v23 }
 0xb49   :  { %v2850_v58 = vmul.f32 %v2815_v25, %v5644_v5 }
 0xb4a   :  { %v2819_v37 = vmul.f32 0.5, %v2818_v42 }
 0xb4b   :  { %v2862_v43 = vmul.f32 %v5672_v13, %v2850_v58 }
 0xb4c   :  { %v2820_v17 = vsub.f32 1.5, %v2819_v37 }
 0xb4d   :  { %v5714_v27 = vadd.f32 %v5678_v28, %v2862_v43 }
 0xb4e   :  { %v2821_v59 = vmul.f32 %v4443_v56, %v2820_v17 }
 0xb50   :  { %v2825_v54 = vsel %vm2824_vm9, %v4443_v56, %v2821_v59 }
 0xb51   :  { %v2851_v44 = vmul.f32 %v2825_v54, %v5650_v14 }
 0xb53   :  { %v2863_v10 = vmul.f32 %v5672_v13, %v2851_v44 }
 0xb55   :  { %v5717_v30 = vadd.f32 %v5678_v28, %v2863_v10 }
 0xb57   :  { %v2880_v46 = vpack.c.bf16 %v5717_v30, %v5714_v27 }
 0xb59   :  { %4094 = vmatmul.msk.bf16.gmra.mxu2 %vm300_vm1, %v2880_v46 }
 0xb5d   :  { %v2746_v5 = vpop.xlane.xlu0 %2745 }
 0xb5e   :  { %v2756_v62 = vmul.f32 %v2746_v5, %v5613_v40 }
 0xb60   :  { %v2764_v11 = vadd.f32 1e-05, %v2756_v62 }
 0xb62   :  { %4444 = vrsqrt.f32 %v2764_v11  ;;  %vm2832_vm11 = vweird.f32 %v2764_v11 }
 0xb68   :  { %v4445_v14 = vpop.eup %4444 }
 0xb69   :  { %v2827_v12 = vmul.f32 %v4445_v14, %v2764_v11  ;;  %vm2833_vm10 = vweird.f32 %v4445_v14 }
 0xb6a   :  { %vm2834_vm12 = vmor %vm2832_vm11, %vm2833_vm10 }
 0xb6b   :  { %v2828_v8 = vmul.f32 %v4445_v14, %v2827_v12  ;;  %v2749_v4 = vpop.xlane.xlu1 %2748 }
 0xb6c   :  { %v2757_v24 = vmul.f32 %v2749_v4, %v5613_v40 }
 0xb6d   :  { %v2829_v60 = vmul.f32 0.5, %v2828_v8 }
 0xb6e   :  { %v2765_v0 = vadd.f32 1e-05, %v2757_v24 }
 0xb6f   :  { %v2830_v26 = vsub.f32 1.5, %v2829_v60 }
 0xb70   :  { %4446 = vrsqrt.f32 %v2765_v0  ;;  %vm2842_vm14 = vweird.f32 %v2765_v0 }
 0xb71   :  { %v2831_v21 = vmul.f32 %v4445_v14, %v2830_v26 }
 0xb73   :  { %v2835_v32 = vsel %vm2834_vm12, %v4445_v14, %v2831_v21  ;;  %v4298_v14 = vld [vmem:[%s6123_s13] ss:$0 sm:$0xff] }
 0xb74   :  { %v2852_v52 = vmul.f32 %v2835_v32, %v5656_v18 }
 0xb76   :  { %v4447_v57 = vpop.eup %4446  ;;  %v2864_v50 = vmul.f32 %v5672_v13, %v2852_v52 }
 0xb77   :  { %v2837_v19 = vmul.f32 %v4447_v57, %v2765_v0  ;;  %vm2843_vm13 = vweird.f32 %v4447_v57 }
 0xb78   :  { %vm2844_vm15 = vmor %vm2842_vm14, %vm2843_vm13  ;;  %v5729_v39 = vadd.f32 %v5678_v28, %v2864_v50 }
 0xb79   :  { %v2838_v31 = vmul.f32 %v4447_v57, %v2837_v19 }
 0xb7b   :  { %v2839_v2 = vmul.f32 0.5, %v2838_v31 }
 0xb7d   :  { %v2840_v41 = vsub.f32 1.5, %v2839_v2 }
 0xb7f   :  { %v2841_v36 = vmul.f32 %v4447_v57, %v2840_v41 }
 0xb81   :  { %v2845_v38 = vsel %vm2844_vm15, %v4447_v57, %v2841_v36 }
 0xb82   :  { %v2853_v20 = vmul.f32 %v2845_v38, %v5664_v33  ;;  %v4297_v33 = vld [vmem:[%s6121_s11] ss:$0 sm:$0xff] }
 0xb84   :  { %v2865_v45 = vmul.f32 %v5672_v13, %v2853_v20 }
 0xb86   :  { %v5732_v34 = vadd.f32 %v5678_v28, %v2865_v45 }
 0xb88   :  { %v2881_v18 = vpack.c.bf16 %v5732_v34, %v5729_v39 }
 0xb8a   :  { %4095 = vmatmul.msk.bf16.gmra.mxu2 %vm300_vm1, %v2881_v18 }
 0xb92   :  { %v2939_v35 = vpop.f32.mrf.mxu2 }
 0xb93   :  { %v2940_v6 = vadd.f32 %v4297_v33, %v2939_v35 }
 0xb95   :  { %v2959_v13 = vmax.f32 %v2940_v6, 0.0 }
 0xb9a   :  { %v2941_v47 = vpop.f32.mrf.mxu2 }
 0xb9b   :  { %v2942_v61 = vadd.f32 %v4297_v33, %v2941_v47 }
 0xb9d   :  { %v2960_v49 = vmax.f32 %v2942_v61, 0.0 }
 0xb9f   :  { %v2967_v48 = vpack.c.bf16 %v2960_v49, %v2959_v13 }
 0xba1   :  { %4112 = vmatmul.msk.bf16.vlgmr.msrb.gmra.mxu3 %vm300_vm1, %v2967_v48 }
 0xbba   :  { %v2944_v28 = vpop.f32.mrf.mxu2 }
 0xbbb   :  { %v2945_v9 = vadd.f32 %v4297_v33, %v2944_v28 }
 0xbbd   :  { %v2961_v56 = vmax.f32 %v2945_v9, 0.0 }
 0xbc2   :  { %v2946_v15 = vpop.f32.mrf.mxu2 }
 0xbc3   :  { %v2947_v63 = vadd.f32 %v4297_v33, %v2946_v15 }
 0xbc5   :  { %v2962_v23 = vmax.f32 %v2947_v63, 0.0 }
 0xbc7   :  { %v2968_v55 = vpack.c.bf16 %v2962_v23, %v2961_v56 }
 0xbc9   :  { %4113 = vmatmul.msk.bf16.gmra.mxu3 %vm300_vm1, %v2968_v55 }
 0xbdc   :  { %v2949_v42 = vpop.f32.mrf.mxu2 }
 0xbdd   :  { %v2950_v25 = vadd.f32 %v4297_v33, %v2949_v42 }
 0xbdf   :  { %v2963_v58 = vmax.f32 %v2950_v25, 0.0 }
 0xbe4   :  { %v2951_v37 = vpop.f32.mrf.mxu2 }
 0xbe5   :  { %v2952_v17 = vadd.f32 %v4297_v33, %v2951_v37 }
 0xbe7   :  { %v2964_v59 = vmax.f32 %v2952_v17, 0.0 }
 0xbe9   :  { %v2969_v54 = vpack.c.bf16 %v2964_v59, %v2963_v58 }
 0xbeb   :  { %4114 = vmatmul.msk.bf16.gmra.mxu3 %vm300_vm1, %v2969_v54 }
 0xc0d   :  { %v2954_v44 = vpop.f32.mrf.mxu2 }
 0xc0e   :  { %v2955_v43 = vadd.f32 %v4297_v33, %v2954_v44 }
 0xc10   :  { %v2965_v5 = vmax.f32 %v2955_v43, 0.0 }
 0xc15   :  { %v2956_v10 = vpop.f32.mrf.mxu2 }
 0xc16   :  { %v2957_v46 = vadd.f32 %v4297_v33, %v2956_v10 }
 0xc18   :  { %v2966_v62 = vmax.f32 %v2957_v46, 0.0 }
 0xc1a   :  { %v2970_v11 = vpack.c.bf16 %v2966_v62, %v2965_v5 }
 0xc1c   :  { %4115 = vmatmul.msk.bf16.gmra.mxu3 %vm300_vm1, %v2970_v11 }
 0xc24   :  { %v3028_v12 = vpop.f32.mrf.mxu3 }
 0xc25   :  { %v3029_v8 = vadd.f32 %v4298_v14, %v3028_v12  ;;  %v4164_v12 = vld [vmem:[%s6126_s16 + $0x10] sm:$0xff] }
 0xc27   :  { %v3048_v4 = vadd.f32 %v3029_v8, %v5684_v53  ;;  %v4163_v8 = vld [vmem:[%s6126_s16 + $0x8] sm:$0xff] }
 0xc29   :  { %v3056_v24 = vsel %vm300_vm1, %v3048_v4, 0.0 }
 0xc2a   :  { %3057 = vadd.xlane.f32.xlu2 %v3056_v24 }
 0xc2c   :  { %v3030_v0 = vpop.f32.mrf.mxu3 }
 0xc2d   :  { %v3031_v60 = vadd.f32 %v4298_v14, %v3030_v0 }
 0xc2f   :  { %v3049_v7 = vadd.f32 %v3031_v60, %v5687_v22 }
 0xc31   :  { %v3059_v26 = vsel %vm300_vm1, %v3049_v7, 0.0 }
 0xc32   :  { %3060 = vadd.xlane.f32.xlu0 %v3059_v26 }
 0xc4c   :  { %v3033_v16 = vpop.f32.mrf.mxu3 }
 0xc4d   :  { %v3034_v57 = vadd.f32 %v4298_v14, %v3033_v16  ;;  %v4162_v16 = vld [vmem:[%s6126_s16] sm:$0xff] }
 0xc4f   :  { %v3050_v21 = vadd.f32 %v3034_v57, %v5700_v51 }
 0xc51   :  { %v3062_v19 = vsel %vm300_vm1, %v3050_v21, 0.0 }
 0xc52   :  { %3063 = vadd.xlane.f32.xlu1 %v3062_v19 }
 0xc54   :  { %v3035_v31 = vpop.f32.mrf.mxu3 }
 0xc55   :  { %v3036_v1 = vadd.f32 %v4298_v14, %v3035_v31 }
 0xc57   :  { %v3051_v53 = vadd.f32 %v3036_v1, %v5703_v29 }
 0xc59   :  { %v3065_v32 = vsel %vm300_vm1, %v3051_v53, 0.0 }
 0xc5a   :  { %3066 = vadd.xlane.f32.xlu2 %v3065_v32 }
 0xc6e   :  { %v3038_v2 = vpop.f32.mrf.mxu3 }
 0xc6f   :  { %v3039_v41 = vadd.f32 %v4298_v14, %v3038_v2 }
 0xc71   :  { %v3052_v22 = vadd.f32 %v3039_v41, %v5714_v27 }
 0xc73   :  { %v3068_v3 = vsel %vm300_vm1, %v3052_v22, 0.0 }
 0xc74   :  { %3069 = vadd.xlane.f32.xlu0 %v3068_v3 }
 0xc76   :  { %v3040_v52 = vpop.f32.mrf.mxu3 }
 0xc77   :  { %v3041_v36 = vadd.f32 %v4298_v14, %v3040_v52 }
 0xc79   :  { %v3053_v51 = vadd.f32 %v3041_v36, %v5717_v30 }
 0xc7b   :  { %v3071_v38 = vsel %vm300_vm1, %v3053_v51, 0.0 }
 0xc7c   :  { %3072 = vadd.xlane.f32.xlu1 %v3071_v38 }
 0xc9d   :  { %v3058_v20 = vpop.xlane.xlu2 %3057 }
 0xc9e   :  { %v3080_v29 = vmul.f32 %v3058_v20, %v5613_v40 }
 0xc9f   :  { %v3043_v50 = vpop.f32.mrf.mxu3 }
 0xca0   :  { %v5760_v45 = vsub.f32 %v3048_v4, %v3080_v29  ;;  %v3044_v18 = vadd.f32 %v4298_v14, %v3043_v50 }
 0xca2   :  { %v3054_v35 = vadd.f32 %v3044_v18, %v5729_v39  ;;  %v3096_v27 = vmul.f32 %v5760_v45, %v5760_v45 }
 0xca4   :  { %v3074_v33 = vsel %vm300_vm1, %v3054_v35, 0.0  ;;  %v3104_v6 = vsel %vm300_vm1, %v3096_v27, 0.0 }
 0xca5   :  { %v3061_v30 = vpop.xlane.xlu0 %3060  ;;  %3075 = vadd.xlane.f32.xlu1 %v3074_v33  ;;  %3105 = vadd.xlane.f32.xlu2 %v3104_v6  ;;  %v5828_v6 = vld [vmem:[%s6124_s14] ss:$0 sm:$0xff] }
 0xca6   :  { %v3081_v47 = vmul.f32 %v3061_v30, %v5613_v40 }
 0xca7   :  { %v3045_v61 = vpop.f32.mrf.mxu3 }
 0xca8   :  { %v5768_v13 = vsub.f32 %v3049_v7, %v3081_v47  ;;  %v3046_v49 = vadd.f32 %v4298_v14, %v3045_v61  ;;  %v4165_v14 = vld [vmem:[%s6126_s16 + $0x18] sm:$0xff] }
 0xca9   :  { %3308 = vmatpush.bf16.msra.mxu0 %v4165_v14 }
 0xcaa   :  { %v3055_v48 = vadd.f32 %v3046_v49, %v5732_v34  ;;  %v3097_v39 = vmul.f32 %v5768_v13, %v5768_v13  ;;  %v5834_v49 = vld [vmem:[%s6125_s15] ss:$0 sm:$0xff] }
 0xcac   :  { %v3107_v28 = vsel %vm300_vm1, %v3097_v39, 0.0  ;;  %v3077_v9 = vsel %vm300_vm1, %v3055_v48, 0.0 }
 0xcad   :  { %3108 = vadd.xlane.f32.xlu0 %v3107_v28  ;;  %3078 = vadd.xlane.f32.xlu2 %v3077_v9 }
 0xcae   :  { %3309 = vmatpush.bf16.msra.mxu0 %v4164_v12 }
 0xcb2   :  { %3310 = vmatpush.bf16.msra.mxu0 %v4163_v8 }
 0xcb6   :  { %3311 = vmatpush.bf16.msra.mxu0 %v4162_v16 }
 0xcc5   :  { %v3064_v15 = vpop.xlane.xlu1 %3063 }
 0xcc6   :  { %v3082_v63 = vmul.f32 %v3064_v15, %v5613_v40 }
 0xcc8   :  { %v5776_v56 = vsub.f32 %v3050_v21, %v3082_v63 }
 0xcca   :  { %v3098_v23 = vmul.f32 %v5776_v56, %v5776_v56 }
 0xccc   :  { %v3110_v55 = vsel %vm300_vm1, %v3098_v23, 0.0 }
 0xccd   :  { %3111 = vadd.xlane.f32.xlu0 %v3110_v55  ;;  %v3067_v34 = vpop.xlane.xlu2 %3066 }
 0xcce   :  { %v3083_v42 = vmul.f32 %v3067_v34, %v5613_v40 }
 0xcd0   :  { %v5782_v25 = vsub.f32 %v3051_v53, %v3083_v42 }
 0xcd2   :  { %v3099_v37 = vmul.f32 %v5782_v25, %v5782_v25 }
 0xcd4   :  { %v3113_v17 = vsel %vm300_vm1, %v3099_v37, 0.0 }
 0xcd5   :  { %3114 = vadd.xlane.f32.xlu1 %v3113_v17 }
 0xce7   :  { %v3070_v58 = vpop.xlane.xlu0 %3069 }
 0xce8   :  { %v3084_v59 = vmul.f32 %v3070_v58, %v5613_v40 }
 0xcea   :  { %v5788_v54 = vsub.f32 %v3052_v22, %v3084_v59 }
 0xcec   :  { %v3100_v44 = vmul.f32 %v5788_v54, %v5788_v54 }
 0xcee   :  { %v3116_v43 = vsel %vm300_vm1, %v3100_v44, 0.0 }
 0xcef   :  { %v3073_v10 = vpop.xlane.xlu1 %3072  ;;  %3117 = vadd.xlane.f32.xlu2 %v3116_v43 }
 0xcf0   :  { %v3085_v46 = vmul.f32 %v3073_v10, %v5613_v40 }
 0xcf2   :  { %v5794_v5 = vsub.f32 %v3053_v51, %v3085_v46 }
 0xcf4   :  { %v3101_v62 = vmul.f32 %v5794_v5, %v5794_v5 }
 0xcf6   :  { %v3119_v11 = vsel %vm300_vm1, %v3101_v62, 0.0 }
 0xcf7   :  { %3120 = vadd.xlane.f32.xlu0 %v3119_v11 }
 0xd18   :  { %v3076_v4 = vpop.xlane.xlu1 %3075  ;;  %v3106_v24 = vpop.xlane.xlu2 %3105 }
 0xd19   :  { %v3086_v0 = vmul.f32 %v3076_v4, %v5613_v40  ;;  %v3128_v60 = vmul.f32 %v3106_v24, %v5613_v40 }
 0xd1b   :  { %v5810_v7 = vsub.f32 %v3054_v35, %v3086_v0  ;;  %v3136_v26 = vadd.f32 1e-05, %v3128_v60 }
 0xd1d   :  { %4448 = vrsqrt.f32 %v3136_v26  ;;  %v3102_v57 = vmul.f32 %v5810_v7, %v5810_v7  ;;  %vm3150_vm2 = vweird.f32 %v3136_v26 }
 0xd1f   :  { %v3122_v21 = vsel %vm300_vm1, %v3102_v57, 0.0 }
 0xd20   :  { %v3109_v19 = vpop.xlane.xlu0 %3108  ;;  %3123 = vadd.xlane.f32.xlu1 %v3122_v21  ;;  %v3079_v31 = vpop.xlane.xlu2 %3078 }
 0xd21   :  { %v3129_v1 = vmul.f32 %v3109_v19, %v5613_v40  ;;  %v3087_v53 = vmul.f32 %v3079_v31, %v5613_v40 }
 0xd23   :  { %v4449_v32 = vpop.eup %4448  ;;  %v3137_v2 = vadd.f32 1e-05, %v3129_v1  ;;  %v5820_v41 = vsub.f32 %v3055_v48, %v3087_v53 }
 0xd24   :  { %v3145_v22 = vmul.f32 %v4449_v32, %v3136_v26  ;;  %vm3151_vm0 = vweird.f32 %v4449_v32 }
 0xd25   :  { %4450 = vrsqrt.f32 %v3137_v2  ;;  %v3103_v3 = vmul.f32 %v5820_v41, %v5820_v41  ;;  %vm3152_vm4 = vmor %vm3150_vm2, %vm3151_vm0  ;;  %vm3160_vm6 = vweird.f32 %v3137_v2 }
 0xd26   :  { %v3146_v52 = vmul.f32 %v4449_v32, %v3145_v22 }
 0xd27   :  { %v3125_v36 = vsel %vm300_vm1, %v3103_v3, 0.0 }
 0xd28   :  { %v3147_v51 = vmul.f32 0.5, %v3146_v52  ;;  %3126 = vadd.xlane.f32.xlu2 %v3125_v36 }
 0xd2a   :  { %v3148_v38 = vsub.f32 1.5, %v3147_v51 }
 0xd2b   :  { %v4451_v20 = vpop.eup %4450 }
 0xd2c   :  { %v3149_v29 = vmul.f32 %v4449_v32, %v3148_v38  ;;  %v3155_v50 = vmul.f32 %v4451_v20, %v3137_v2  ;;  %vm3161_vm5 = vweird.f32 %v4451_v20 }
 0xd2d   :  { %vm3162_vm7 = vmor %vm3160_vm6, %vm3161_vm5 }
 0xd2e   :  { %v3156_v18 = vmul.f32 %v4451_v20, %v3155_v50  ;;  %v3153_v35 = vsel %vm3152_vm4, %v4449_v32, %v3149_v29 }
 0xd2f   :  { %v3224_v30 = vmul.f32 %v3153_v35, %v5760_v45 }
 0xd30   :  { %v3157_v27 = vmul.f32 0.5, %v3156_v18 }
 0xd31   :  { %v3236_v48 = vmul.f32 %v5828_v6, %v3224_v30 }
 0xd32   :  { %v3158_v33 = vsub.f32 1.5, %v3157_v27 }
 0xd33   :  { %v3248_v9 = vadd.f32 %v5834_v49, %v3236_v48 }
 0xd34   :  { %v3159_v47 = vmul.f32 %v4451_v20, %v3158_v33 }
 0xd36   :  { %v3163_v61 = vsel %vm3162_vm7, %v4451_v20, %v3159_v47 }
 0xd37   :  { %v3225_v39 = vmul.f32 %v3163_v61, %v5768_v13 }
 0xd39   :  { %v3237_v28 = vmul.f32 %v5828_v6, %v3225_v39 }
 0xd3b   :  { %v3249_v15 = vadd.f32 %v5834_v49, %v3237_v28 }
 0xd3d   :  { %v3256_v45 = vpack.c.bf16 %v3249_v15, %v3248_v9 }
 0xd3f   :  { %4132 = vmatmul.msk.bf16.vlgmr.msra.gmra.mxu0 %vm300_vm1, %v3256_v45 }
 0xd40   :  { %v3112_v63 = vpop.xlane.xlu0 %3111 }
 0xd41   :  { %v3130_v23 = vmul.f32 %v3112_v63, %v5613_v40 }
 0xd43   :  { %v3138_v55 = vadd.f32 1e-05, %v3130_v23 }
 0xd45   :  { %4452 = vrsqrt.f32 %v3138_v55  ;;  %vm3170_vm9 = vweird.f32 %v3138_v55 }
 0xd48   :  { %v3115_v34 = vpop.xlane.xlu1 %3114 }
 0xd49   :  { %v3131_v42 = vmul.f32 %v3115_v34, %v5613_v40 }
 0xd4b   :  { %v4453_v37 = vpop.eup %4452  ;;  %v3139_v17 = vadd.f32 1e-05, %v3131_v42 }
 0xd4c   :  { %v3165_v13 = vmul.f32 %v4453_v37, %v3138_v55  ;;  %vm3171_vm8 = vweird.f32 %v4453_v37 }
 0xd4d   :  { %4454 = vrsqrt.f32 %v3139_v17  ;;  %vm3172_vm10 = vmor %vm3170_vm9, %vm3171_vm8  ;;  %vm3180_vm12 = vweird.f32 %v3139_v17 }
 0xd4e   :  { %v3166_v58 = vmul.f32 %v4453_v37, %v3165_v13 }
 0xd50   :  { %v3167_v59 = vmul.f32 0.5, %v3166_v58 }
 0xd52   :  { %v3168_v44 = vsub.f32 1.5, %v3167_v59 }
 0xd53   :  { %v4455_v43 = vpop.eup %4454 }
 0xd54   :  { %v3169_v10 = vmul.f32 %v4453_v37, %v3168_v44  ;;  %v3175_v46 = vmul.f32 %v4455_v43, %v3139_v17  ;;  %vm3181_vm11 = vweird.f32 %v4455_v43 }
 0xd55   :  { %vm3182_vm13 = vmor %vm3180_vm12, %vm3181_vm11  ;;  %vm3333_vm12 = vcmask 7168  }
 0xd56   :  { %v3176_v62 = vmul.f32 %v4455_v43, %v3175_v46  ;;  %v3173_v11 = vsel %vm3172_vm10, %v4453_v37, %v3169_v10 }
 0xd57   :  { %v3226_v8 = vmul.f32 %v3173_v11, %v5776_v56 }
 0xd58   :  { %v3177_v14 = vmul.f32 0.5, %v3176_v62 }
 0xd59   :  { %v3238_v60 = vmul.f32 %v5828_v6, %v3226_v8 }
 0xd5a   :  { %v3178_v12 = vsub.f32 1.5, %v3177_v14 }
 0xd5b   :  { %v3250_v21 = vadd.f32 %v5834_v49, %v3238_v60 }
 0xd5c   :  { %v3179_v4 = vmul.f32 %v4455_v43, %v3178_v12 }
 0xd5e   :  { %v3183_v24 = vsel %vm3182_vm13, %v4455_v43, %v3179_v4  ;;  %vm3614_vm13 = vcmask 1041409  }
 0xd5f   :  { %v3227_v0 = vmul.f32 %v3183_v24, %v5782_v25 }
 0xd61   :  { %v3239_v26 = vmul.f32 %v5828_v6, %v3227_v0 }
 0xd62   :  { %v3118_v16 = vpop.xlane.xlu2 %3117 }
 0xd63   :  { %v3132_v57 = vmul.f32 %v3118_v16, %v5613_v40  ;;  %v3251_v19 = vadd.f32 %v5834_v49, %v3239_v26 }
 0xd65   :  { %v3140_v31 = vadd.f32 1e-05, %v3132_v57  ;;  %v3257_v1 = vpack.c.bf16 %v3251_v19, %v3250_v21 }
 0xd67   :  { %4456 = vrsqrt.f32 %v3140_v31  ;;  %4133 = vmatmul.msk.bf16.gmra.mxu0 %vm300_vm1, %v3257_v1  ;;  %vm3190_vm15 = vweird.f32 %v3140_v31 }
 0xd6a   :  { %v3121_v56 = vpop.xlane.xlu0 %3120 }
 0xd6b   :  { %v3133_v53 = vmul.f32 %v3121_v56, %v5613_v40 }
 0xd6d   :  { %v4457_v25 = vpop.eup %4456  ;;  %v3141_v32 = vadd.f32 1e-05, %v3133_v53  ;;  %v4694_v53 = vmov 0  }
 0xd6e   :  { %v3185_v2 = vmul.f32 %v4457_v25, %v3140_v31  ;;  %vm3191_vm14 = vweird.f32 %v4457_v25  ;;  %4290 = vset.pattern.permute.xlu2 %v4694_v53  ;;  %4291 = vset.pattern.permute.xlu0 %v4694_v53 }
 0xd6f   :  { %4458 = vrsqrt.f32 %v3141_v32  ;;  %vm3192_vm0 = vmor %vm3190_vm15, %vm3191_vm14  ;;  %vm3200_vm4 = vweird.f32 %v3141_v32  ;;  %4292 = vset.pattern.permute.xlu1 %v4694_v53  ;;  %vm3617_vm14 = vcmask 1042434   ;;  %vm6140_vm15 = vcmask 1043459  }
 0xd70   :  { %v3186_v22 = vmul.f32 %v4457_v25, %v3185_v2 }
 0xd72   :  { %v3187_v3 = vmul.f32 0.5, %v3186_v22 }
 0xd74   :  { %v3188_v52 = vsub.f32 1.5, %v3187_v3 }
 0xd75   :  { %v4459_v36 = vpop.eup %4458 }
 0xd76   :  { %v3189_v51 = vmul.f32 %v4457_v25, %v3188_v52  ;;  %v3195_v38 = vmul.f32 %v4459_v36, %v3141_v32  ;;  %vm3201_vm2 = vweird.f32 %v4459_v36 }
 0xd77   :  { %vm3202_vm5 = vmor %vm3200_vm4, %vm3201_vm2  ;;  %vm6138_vm2 = vcmask 1045509   ;;  %vm6137_vm4 = vcmask 1046534  }
 0xd78   :  { %v3196_v20 = vmul.f32 %v4459_v36, %v3195_v38  ;;  %v3193_v29 = vsel %vm3192_vm0, %v4457_v25, %v3189_v51  ;;  %vm6139_vm0 = vcmask 1044484  }
 0xd79   :  { %v3228_v35 = vmul.f32 %v3193_v29, %v5788_v54 }
 0xd7a   :  { %v3197_v50 = vmul.f32 0.5, %v3196_v20 }
 0xd7b   :  { %v3240_v47 = vmul.f32 %v5828_v6, %v3228_v35 }
 0xd7c   :  { %v3198_v18 = vsub.f32 1.5, %v3197_v50 }
 0xd7d   :  { %v3252_v48 = vadd.f32 %v5834_v49, %v3240_v47 }
 0xd7e   :  { %v3199_v27 = vmul.f32 %v4459_v36, %v3198_v18 }
 0xd80   :  { %v3203_v33 = vsel %vm3202_vm5, %v4459_v36, %v3199_v27  ;;  %vm6136_vm5 = vcmask 1047559  }
 0xd81   :  { %v3229_v30 = vmul.f32 %v3203_v33, %v5794_v5 }
 0xd83   :  { %v3241_v61 = vmul.f32 %v5828_v6, %v3229_v30 }
 0xd85   :  { %v3253_v39 = vadd.f32 %v5834_v49, %v3241_v61 }
 0xd87   :  { %v3258_v28 = vpack.c.bf16 %v3253_v39, %v3252_v48 }
 0xd89   :  { %4134 = vmatmul.msk.bf16.gmra.mxu0 %vm300_vm1, %v3258_v28 }
 0xd93   :  { %v3124_v9 = vpop.xlane.xlu1 %3123 }
 0xd94   :  { %v3134_v54 = vmul.f32 %v3124_v9, %v5613_v40 }
 0xd96   :  { %v3142_v15 = vadd.f32 1e-05, %v3134_v54 }
 0xd98   :  { %4460 = vrsqrt.f32 %v3142_v15  ;;  %vm3210_vm7 = vweird.f32 %v3142_v15 }
 0xd9b   :  { %v3127_v45 = vpop.xlane.xlu2 %3126 }
 0xd9c   :  { %v3135_v63 = vmul.f32 %v3127_v45, %v5613_v40 }
 0xd9e   :  { %v4461_v5 = vpop.eup %4460  ;;  %v3143_v23 = vadd.f32 1e-05, %v3135_v63 }
 0xd9f   :  { %v3205_v55 = vmul.f32 %v4461_v5, %v3142_v15  ;;  %vm3211_vm6 = vweird.f32 %v4461_v5 }
 0xda0   :  { %4462 = vrsqrt.f32 %v3143_v23  ;;  %vm3212_vm8 = vmor %vm3210_vm7, %vm3211_vm6  ;;  %vm3220_vm10 = vweird.f32 %v3143_v23  ;;  %vm6135_vm6 = vcmask 31744  }
 0xda1   :  { %v3206_v34 = vmul.f32 %v4461_v5, %v3205_v55 }
 0xda3   :  { %v3207_v42 = vmul.f32 0.5, %v3206_v34 }
 0xda5   :  { %v3208_v37 = vsub.f32 1.5, %v3207_v42 }
 0xda6   :  { %v4463_v17 = vpop.eup %4462 }
 0xda7   :  { %v3209_v13 = vmul.f32 %v4461_v5, %v3208_v37  ;;  %v3215_v58 = vmul.f32 %v4463_v17, %v3143_v23  ;;  %vm3221_vm9 = vweird.f32 %v4463_v17 }
 0xda8   :  { %vm3222_vm11 = vmor %vm3220_vm10, %vm3221_vm9 }
 0xda9   :  { %v3216_v59 = vmul.f32 %v4463_v17, %v3215_v58  ;;  %v3213_v44 = vsel %vm3212_vm8, %v4461_v5, %v3209_v13 }
 0xdaa   :  { %v3230_v40 = vmul.f32 %v3213_v44, %v5810_v7 }
 0xdab   :  { %v3217_v43 = vmul.f32 0.5, %v3216_v59 }
 0xdac   :  { %v3242_v14 = vmul.f32 %v5828_v6, %v3230_v40 }
 0xdad   :  { %v3218_v10 = vsub.f32 1.5, %v3217_v43 }
 0xdae   :  { %v3254_v8 = vadd.f32 %v5834_v49, %v3242_v14 }
 0xdaf   :  { %v3219_v46 = vmul.f32 %v4463_v17, %v3218_v10 }
 0xdb1   :  { %v3223_v62 = vsel %vm3222_vm11, %v4463_v17, %v3219_v46 }
 0xdb2   :  { %v3231_v11 = vmul.f32 %v3223_v62, %v5820_v41 }
 0xdb4   :  { %v3243_v12 = vmul.f32 %v5828_v6, %v3231_v11 }
 0xdb6   :  { %v3255_v4 = vadd.f32 %v5834_v49, %v3243_v12 }
 0xdb8   :  { %v3259_v24 = vpack.c.bf16 %v3255_v4, %v3254_v8 }
 0xdba   :  { %4135 = vmatmul.msk.bf16.gmra.mxu0 %vm300_vm1, %v3259_v24  ;;  %vm3534_vm1 = vcmask 39944  }
 0xdbc   :  { %v5869_v0 = vpop.f32.mrf.mxu0 }
 0xdbd   :  { %v3334_v7 = vsel %vm3333_vm12, %v5869_v0, -inf }
 0xdbe   :  { %v3335_v60 = vrot.slane %v3334_v7, 4 }
 0xdc0   :  { %v3336_v26 = vmax.f32 %v3334_v7, %v3335_v60 }
 0xdc2   :  { %v3337_v41 = vrot.slane %v3336_v26, 2 }
 0xdc4   :  { %v3338_v16 = vmax.f32 %v3336_v26, %v3337_v41  ;;  %v5873_v57 = vpop.f32.mrf.mxu0 }
 0xdc5   :  { %v3341_v6 = vsel %vm3333_vm12, %v5873_v57, -inf }
 0xdc6   :  { %v3339_v21 = vrot.slane %v3338_v16, 1  ;;  %v3342_v49 = vrot.slane %v3341_v6, 4 }
 0xdc8   :  { %v3340_v19 = vmax.f32 %v3338_v16, %v3339_v21  ;;  %v3343_v31 = vmax.f32 %v3341_v6, %v3342_v49 }
 0xdca   :  { %v3390_v1 = vsub.f32 %v5869_v0, %v3340_v19  ;;  %v3344_v56 = vrot.slane %v3343_v31, 2 }
 0xdcc   :  { %v3398_v25 = vmul.f32 1.442695, %v3390_v1  ;;  %v3345_v32 = vmax.f32 %v3343_v31, %v3344_v56 }
 0xdce   :  { %4464 = vpow2.f32 %v3398_v25  ;;  %v3346_v2 = vrot.slane %v3345_v32, 1 }
 0xdd0   :  { %v3347_v22 = vmax.f32 %v3345_v32, %v3346_v2 }
 0xdd2   :  { %v3391_v3 = vsub.f32 %v5873_v57, %v3347_v22 }
 0xdd4   :  { %v4465_v52 = vpop.eup %4464  ;;  %v3400_v36 = vmul.f32 1.442695, %v3391_v3 }
 0xdd5   :  { %v3414_v51 = vsel %vm3333_vm12, %v4465_v52, 0.0 }
 0xdd6   :  { %v3415_v38 = vrot.slane %v3414_v51, 4  ;;  %4466 = vpow2.f32 %v3400_v36 }
 0xdd8   :  { %v3416_v20 = vadd.f32 %v3415_v38, %v3414_v51 }
 0xdda   :  { %v3417_v29 = vrot.slane %v3416_v20, 2 }
 0xddc   :  { %v4467_v50 = vpop.eup %4466  ;;  %v3418_v18 = vadd.f32 %v3417_v29, %v3416_v20 }
 0xddd   :  { %v3421_v35 = vsel %vm3333_vm12, %v4467_v50, 0.0 }
 0xdde   :  { %v3419_v27 = vrot.slane %v3418_v18, 1  ;;  %v3422_v33 = vrot.slane %v3421_v35, 4 }
 0xde0   :  { %v3423_v30 = vadd.f32 %v3422_v33, %v3421_v35  ;;  %v3420_v47 = vadd.f32 %v3419_v27, %v3418_v18 }
 0xde2   :  { %v3424_v61 = vrot.slane %v3423_v30, 2  ;;  %4468 = vrcp.f32 %v3420_v47 }
 0xde4   :  { %v3425_v48 = vadd.f32 %v3424_v61, %v3423_v30  ;;  %v5881_v39 = vpop.f32.mrf.mxu0 }
 0xde5   :  { %v3348_v28 = vsel %vm3333_vm12, %v5881_v39, -inf }
 0xde6   :  { %v3426_v9 = vrot.slane %v3425_v48, 1  ;;  %v3349_v54 = vrot.slane %v3348_v28, 4 }
 0xde8   :  { %v4469_v15 = vpop.eup %4468  ;;  %v3350_v45 = vmax.f32 %v3348_v28, %v3349_v54  ;;  %v3427_v63 = vadd.f32 %v3426_v9, %v3425_v48 }
 0xde9   :  { %v3478_v5 = vmul.f32 %v4469_v15, %v4465_v52 }
 0xdea   :  { %v3351_v23 = vrot.slane %v3350_v45, 2  ;;  %4470 = vrcp.f32 %v3427_v63 }
 0xdeb   :  { %3488 = vperm.xlu2 %4290, %v3478_v5  }
 0xdec   :  { %v3352_v55 = vmax.f32 %v3350_v45, %v3351_v23  ;;  %v5885_v34 = vpop.f32.mrf.mxu0 }
 0xded   :  { %v3355_v42 = vsel %vm3333_vm12, %v5885_v34, -inf }
 0xdee   :  { %v3353_v37 = vrot.slane %v3352_v55, 1  ;;  %v3356_v17 = vrot.slane %v3355_v42, 4 }
 0xdf0   :  { %v4471_v13 = vpop.eup %4470  ;;  %v3354_v58 = vmax.f32 %v3352_v55, %v3353_v37  ;;  %v3357_v59 = vmax.f32 %v3355_v42, %v3356_v17 }
 0xdf1   :  { %v3479_v44 = vmul.f32 %v4471_v13, %v4467_v50 }
 0xdf2   :  { %v3392_v43 = vsub.f32 %v5881_v39, %v3354_v58  ;;  %v3358_v10 = vrot.slane %v3357_v59, 2 }
 0xdf3   :  { %3493 = vperm.xlu0 %4291, %v3479_v44  }
 0xdf4   :  { %v3402_v40 = vmul.f32 1.442695, %v3392_v43  ;;  %v3359_v46 = vmax.f32 %v3357_v59, %v3358_v10 }
 0xdf6   :  { %4472 = vpow2.f32 %v3402_v40  ;;  %v3360_v62 = vrot.slane %v3359_v46, 1 }
 0xdf8   :  { %v3361_v11 = vmax.f32 %v3359_v46, %v3360_v62 }
 0xdfa   :  { %v3393_v14 = vsub.f32 %v5885_v34, %v3361_v11 }
 0xdfc   :  { %v4473_v12 = vpop.eup %4472  ;;  %v3404_v8 = vmul.f32 1.442695, %v3393_v14 }
 0xdfd   :  { %v3428_v4 = vsel %vm3333_vm12, %v4473_v12, 0.0 }
 0xdfe   :  { %v3429_v24 = vrot.slane %v3428_v4, 4  ;;  %4474 = vpow2.f32 %v3404_v8 }
 0xe00   :  { %v3430_v7 = vadd.f32 %v3429_v24, %v3428_v4 }
 0xe02   :  { %v3431_v60 = vrot.slane %v3430_v7, 2 }
 0xe04   :  { %v4475_v26 = vpop.eup %4474  ;;  %v3432_v41 = vadd.f32 %v3431_v60, %v3430_v7 }
 0xe05   :  { %v3435_v16 = vsel %vm3333_vm12, %v4475_v26, 0.0 }
 0xe06   :  { %v3433_v6 = vrot.slane %v3432_v41, 1  ;;  %v3436_v21 = vrot.slane %v3435_v16, 4  ;;  %v5893_v49 = vpop.f32.mrf.mxu0 }
 0xe07   :  { %v3362_v19 = vsel %vm3333_vm12, %v5893_v49, -inf }
 0xe08   :  { %v3437_v31 = vadd.f32 %v3436_v21, %v3435_v16  ;;  %v3363_v1 = vrot.slane %v3362_v19, 4  ;;  %v3434_v56 = vadd.f32 %v3433_v6, %v3432_v41 }
 0xe0a   :  { %v3438_v53 = vrot.slane %v3437_v31, 2  ;;  %v3364_v25 = vmax.f32 %v3362_v19, %v3363_v1  ;;  %4476 = vrcp.f32 %v3434_v56  ;;  %v4301_v19 = vld [vmem:[%s6127_s17] ss:$0 sm:$0xff]  ;;  %s4696_s17 = smov 127  }
 0xe0c   :  { %v3439_v32 = vadd.f32 %v3438_v53, %v3437_v31  ;;  %v3365_v2 = vrot.slane %v3364_v25, 2 }
 0xe0e   :  { %v3440_v22 = vrot.slane %v3439_v32, 1  ;;  %v3366_v3 = vmax.f32 %v3364_v25, %v3365_v2  ;;  %v5897_v52 = vpop.f32.mrf.mxu0 }
 0xe0f   :  { %v3369_v36 = vsel %vm3333_vm12, %v5897_v52, -inf }
 0xe10   :  { %v4477_v51 = vpop.eup %4476  ;;  %v3367_v38 = vrot.slane %v3366_v3, 1  ;;  %v3370_v20 = vrot.slane %v3369_v36, 4  ;;  %v3441_v29 = vadd.f32 %v3440_v22, %v3439_v32 }
 0xe11   :  { %v3480_v50 = vmul.f32 %v4477_v51, %v4473_v12 }
 0xe12   :  { %v3368_v18 = vmax.f32 %v3366_v3, %v3367_v38  ;;  %v3371_v35 = vmax.f32 %v3369_v36, %v3370_v20  ;;  %4478 = vrcp.f32 %v3441_v29 }
 0xe13   :  { %3498 = vperm.xlu1 %4292, %v3480_v50  }
 0xe14   :  { %v3394_v27 = vsub.f32 %v5893_v49, %v3368_v18  ;;  %v3372_v33 = vrot.slane %v3371_v35, 2 }
 0xe16   :  { %v3406_v30 = vmul.f32 1.442695, %v3394_v27  ;;  %v3373_v47 = vmax.f32 %v3371_v35, %v3372_v33 }
 0xe18   :  { %v4479_v61 = vpop.eup %4478  ;;  %4480 = vpow2.f32 %v3406_v30  ;;  %v3374_v48 = vrot.slane %v3373_v47, 1 }
 0xe19   :  { %v3481_v28 = vmul.f32 %v4479_v61, %v4475_v26 }
 0xe1a   :  { %v3375_v9 = vmax.f32 %v3373_v47, %v3374_v48 }
 0xe1b   :  { %3503 = vperm.xlu1 %4292, %v3481_v28  }
 0xe1c   :  { %v3395_v54 = vsub.f32 %v5897_v52, %v3375_v9 }
 0xe1e   :  { %v4481_v15 = vpop.eup %4480  ;;  %v3408_v45 = vmul.f32 1.442695, %v3395_v54 }
 0xe1f   :  { %v3442_v63 = vsel %vm3333_vm12, %v4481_v15, 0.0 }
 0xe20   :  { %v3443_v5 = vrot.slane %v3442_v63, 4  ;;  %4482 = vpow2.f32 %v3408_v45 }
 0xe22   :  { %v3444_v23 = vadd.f32 %v3443_v5, %v3442_v63 }
 0xe24   :  { %v3445_v55 = vrot.slane %v3444_v23, 2 }
 0xe26   :  { %v4483_v42 = vpop.eup %4482  ;;  %v3446_v37 = vadd.f32 %v3445_v55, %v3444_v23 }
 0xe27   :  { %v3449_v17 = vsel %vm3333_vm12, %v4483_v42, 0.0 }
 0xe28   :  { %v3447_v13 = vrot.slane %v3446_v37, 1  ;;  %v3450_v58 = vrot.slane %v3449_v17, 4 }
 0xe2a   :  { %v3451_v59 = vadd.f32 %v3450_v58, %v3449_v17  ;;  %v3448_v44 = vadd.f32 %v3447_v13, %v3446_v37 }
 0xe2c   :  { %v3452_v43 = vrot.slane %v3451_v59, 2  ;;  %4484 = vrcp.f32 %v3448_v44 }
 0xe2e   :  { %v3453_v10 = vadd.f32 %v3452_v43, %v3451_v59 }
 0xe30   :  { %v3454_v40 = vrot.slane %v3453_v10, 1 }
 0xe32   :  { %v4485_v46 = vpop.eup %4484  ;;  %v3455_v62 = vadd.f32 %v3454_v40, %v3453_v10 }
 0xe33   :  { %v3482_v11 = vmul.f32 %v4485_v46, %v4481_v15 }
 0xe34   :  { %4486 = vrcp.f32 %v3455_v62 }
 0xe35   :  { %3508 = vperm.xlu2 %4290, %v3482_v11  }
 0xe37   :  { %v5905_v14 = vpop.f32.mrf.mxu0 }
 0xe38   :  { %v3376_v12 = vsel %vm3333_vm12, %v5905_v14, -inf }
 0xe39   :  { %v3377_v8 = vrot.slane %v3376_v12, 4 }
 0xe3a   :  { %v4487_v4 = vpop.eup %4486 }
 0xe3b   :  { %v3378_v24 = vmax.f32 %v3376_v12, %v3377_v8  ;;  %v3483_v7 = vmul.f32 %v4487_v4, %v4483_v42 }
 0xe3d   :  { %v3379_v60 = vrot.slane %v3378_v24, 2  ;;  %3513 = vperm.xlu1 %4292, %v3483_v7  }
 0xe3f   :  { %v3380_v26 = vmax.f32 %v3378_v24, %v3379_v60  ;;  %v5909_v41 = vpop.f32.mrf.mxu0 }
 0xe40   :  { %v3383_v16 = vsel %vm3333_vm12, %v5909_v41, -inf }
 0xe41   :  { %v3381_v6 = vrot.slane %v3380_v26, 1  ;;  %v3384_v21 = vrot.slane %v3383_v16, 4 }
 0xe43   :  { %v3382_v31 = vmax.f32 %v3380_v26, %v3381_v6  ;;  %v3385_v1 = vmax.f32 %v3383_v16, %v3384_v21 }
 0xe45   :  { %v3396_v56 = vsub.f32 %v5905_v14, %v3382_v31  ;;  %v3386_v53 = vrot.slane %v3385_v1, 2  ;;  %3594 = vrot.lane.b32.xlu1 %v4301_v19, %s4695_s0  ;;  %v3489_v55 = vpop.permute.xlu2 %3488 }
 0xe46   :  { %v3526_v43 = vmul.f32 %v3489_v55, %v5869_v0 }
 0xe47   :  { %v3410_v25 = vmul.f32 1.442695, %v3396_v56  ;;  %v3387_v32 = vmax.f32 %v3385_v1, %v3386_v53 }
 0xe49   :  { %4488 = vpow2.f32 %v3410_v25  ;;  %v3388_v2 = vrot.slane %v3387_v32, 1 }
 0xe4b   :  { %v3389_v22 = vmax.f32 %v3387_v32, %v3388_v2 }
 0xe4d   :  { %v3397_v3 = vsub.f32 %v5909_v41, %v3389_v22 }
 0xe4f   :  { %v4489_v36 = vpop.eup %4488  ;;  %v3412_v51 = vmul.f32 1.442695, %v3397_v3 }
 0xe50   :  { %v3456_v38 = vsel %vm3333_vm12, %v4489_v36, 0.0 }
 0xe51   :  { %v3457_v20 = vrot.slane %v3456_v38, 4  ;;  %4490 = vpow2.f32 %v3412_v51 }
 0xe53   :  { %v3458_v29 = vadd.f32 %v3457_v20, %v3456_v38 }
 0xe55   :  { %v3459_v50 = vrot.slane %v3458_v29, 2 }
 0xe57   :  { %v4491_v18 = vpop.eup %4490  ;;  %v3460_v35 = vadd.f32 %v3459_v50, %v3458_v29 }
 0xe58   :  { %v3463_v27 = vsel %vm3333_vm12, %v4491_v18, 0.0 }
 0xe59   :  { %v3461_v33 = vrot.slane %v3460_v35, 1  ;;  %v3464_v30 = vrot.slane %v3463_v27, 4 }
 0xe5b   :  { %v3465_v47 = vadd.f32 %v3464_v30, %v3463_v27  ;;  %v3462_v61 = vadd.f32 %v3461_v33, %v3460_v35 }
 0xe5d   :  { %v3466_v48 = vrot.slane %v3465_v47, 2  ;;  %4492 = vrcp.f32 %v3462_v61 }
 0xe5f   :  { %v3467_v28 = vadd.f32 %v3466_v48, %v3465_v47 }
 0xe61   :  { %v3468_v9 = vrot.slane %v3467_v28, 1 }
 0xe63   :  { %v4493_v54 = vpop.eup %4492  ;;  %v3469_v15 = vadd.f32 %v3468_v9, %v3467_v28 }
 0xe64   :  { %v3484_v45 = vmul.f32 %v4493_v54, %v4489_v36 }
 0xe65   :  { %4494 = vrcp.f32 %v3469_v15  ;;  %v3494_v42 = vpop.permute.xlu0 %3493 }
 0xe66   :  { %3518 = vperm.xlu2 %4290, %v3484_v45   ;;  %v3527_v13 = vmul.f32 %v3494_v42, %v5873_v57  ;;  %v3535_v57 = vsel %vm3534_vm1, %v3526_v43, 0.0 }
 0xe67   :  { %v3536_v7 = vrot.slane %v3535_v57, 4 }
 0xe68   :  { %v3542_v59 = vsel %vm3534_vm1, %v3527_v13, 0.0 }
 0xe69   :  { %v3543_v40 = vrot.slane %v3542_v59, 4  ;;  %v3537_v21 = vadd.f32 %v3536_v7, %v3535_v57 }
 0xe6b   :  { %v4495_v63 = vpop.eup %4494  ;;  %v3544_v4 = vadd.f32 %v3543_v40, %v3542_v59  ;;  %v3538_v25 = vrot.slane %v3537_v21, 2 }
 0xe6c   :  { %v3485_v5 = vmul.f32 %v4495_v63, %v4491_v18 }
 0xe6d   :  { %v3545_v16 = vrot.slane %v3544_v4, 2  ;;  %v3539_v38 = vadd.f32 %v3538_v25, %v3537_v21 }
 0xe6e   :  { %3523 = vperm.xlu0 %4291, %v3485_v5  }
 0xe6f   :  { %v3546_v1 = vadd.f32 %v3545_v16, %v3544_v4  ;;  %v3540_v30 = vrot.slane %v3539_v38, 1 }
 0xe71   :  { %v3547_v22 = vrot.slane %v3546_v1, 1 }
 0xe73   :  { %v3548_v18 = vadd.f32 %v3547_v22, %v3546_v1 }
 0xe85   :  { %v3499_v23 = vpop.permute.xlu1 %3498 }
 0xe86   :  { %v3528_v58 = vmul.f32 %v3499_v23, %v5881_v39  ;;  %v3541_v23 = vadd.f32 %v3540_v30, %v3539_v38 }
 0xe88   :  { %v3549_v46 = vsel %vm3534_vm1, %v3528_v58, 0.0 }
 0xe89   :  { %v3550_v8 = vrot.slane %v3549_v46, 4 }
 0xe8b   :  { %v3551_v26 = vadd.f32 %v3550_v8, %v3549_v46 }
 0xe8d   :  { %v3504_v37 = vpop.permute.xlu1 %3503  ;;  %v3552_v19 = vrot.slane %v3551_v26, 2 }
 0xe8e   :  { %v3529_v62 = vmul.f32 %v3504_v37, %v5885_v34 }
 0xe8f   :  { %v3509_v17 = vpop.permute.xlu2 %3508  ;;  %v3553_v32 = vadd.f32 %v3552_v19, %v3551_v26 }
 0xe90   :  { %v3530_v39 = vmul.f32 %v3509_v17, %v5893_v49  ;;  %v3556_v24 = vsel %vm3534_vm1, %v3529_v62, 0.0 }
 0xe91   :  { %v3557_v34 = vrot.slane %v3556_v24, 4  ;;  %v3554_v20 = vrot.slane %v3553_v32, 1 }
 0xe93   :  { %v3558_v56 = vadd.f32 %v3557_v34, %v3556_v24  ;;  %v3555_v48 = vadd.f32 %v3554_v20, %v3553_v32 }
 0xe95   :  { %v3559_v3 = vrot.slane %v3558_v56, 2 }
 0xe97   :  { %v3560_v35 = vadd.f32 %v3559_v3, %v3558_v56 }
 0xe99   :  { %v3561_v54 = vrot.slane %v3560_v35, 1 }
 0xe9b   :  { %v3562_v17 = vadd.f32 %v3561_v54, %v3560_v35 }
 0xeaf   :  { %v3514_v44 = vpop.permute.xlu1 %3513 }
 0xeb0   :  { %v3531_v11 = vmul.f32 %v3514_v44, %v5897_v52  ;;  %v3563_v52 = vsel %vm3534_vm1, %v3530_v39, 0.0 }
 0xeb1   :  { %v3564_v31 = vrot.slane %v3563_v52, 4 }
 0xeb2   :  { %v3570_v0 = vsel %vm3534_vm1, %v3531_v11, 0.0 }
 0xeb3   :  { %v3571_v6 = vrot.slane %v3570_v0, 4  ;;  %v3565_v2 = vadd.f32 %v3564_v31, %v3563_v52 }
 0xeb5   :  { %v3572_v49 = vadd.f32 %v3571_v6, %v3570_v0  ;;  %v3566_v29 = vrot.slane %v3565_v2, 2 }
 0xeb7   :  { %v3573_v36 = vrot.slane %v3572_v49, 2  ;;  %v3595_v50 = vpop.permute.xlu1 %3594  ;;  %v3567_v28 = vadd.f32 %v3566_v29, %v3565_v2 }
 0xeb8   :  { %v3598_v47 = vadd.f32 %v3595_v50, %v3548_v18  ;;  %v3599_v45 = vadd.f32 %v3595_v50, %v3555_v48  ;;  %v3597_v58 = vadd.f32 %v3595_v50, %v3541_v23  ;;  %v3600_v40 = vadd.f32 %v3595_v50, %v3562_v17 }
 0xeb9   :  { %v3574_v27 = vadd.f32 %v3573_v36, %v3572_v49  ;;  %v3568_v37 = vrot.slane %v3567_v28, 1 }
 0xeba   :  { %v3613_v42 = vrot.slane %v3598_v47, 7  ;;  %v3616_v43 = vrot.slane %v3599_v45, 6  ;;  %v3619_v39 = vrot.slane %v3600_v40, 5 }
 0xebb   :  { %v3575_v15 = vrot.slane %v3574_v27, 1  ;;  %v3569_v46 = vadd.f32 %v3568_v37, %v3567_v28 }
 0xebd   :  { %v3576_v13 = vadd.f32 %v3575_v15, %v3574_v27  ;;  %v3601_v57 = vadd.f32 %v3595_v50, %v3569_v46 }
 0xebf   :  { %v3602_v11 = vadd.f32 %v3595_v50, %v3576_v13 }
 0xec0   :  { %v3519_v10 = vpop.permute.xlu2 %3518 }
 0xec1   :  { %v3532_v12 = vmul.f32 %v3519_v10, %v5905_v14  ;;  %v3625_v7 = vrot.slane %v3602_v11, 3 }
 0xec3   :  { %v3577_v60 = vsel %vm3534_vm1, %v3532_v12, 0.0 }
 0xec4   :  { %v3578_v14 = vrot.slane %v3577_v60, 4 }
 0xec6   :  { %v3579_v53 = vadd.f32 %v3578_v14, %v3577_v60  ;;  %v3622_v60 = vrot.slane %v3601_v57, 4 }
 0xec8   :  { %v3580_v51 = vrot.slane %v3579_v53, 2 }
 0xeca   :  { %v3581_v33 = vadd.f32 %v3580_v51, %v3579_v53 }
 0xecc   :  { %v3582_v63 = vrot.slane %v3581_v33, 1 }
 0xece   :  { %v3583_v44 = vadd.f32 %v3582_v63, %v3581_v33 }
 0xed0   :  { %v3603_v12 = vadd.f32 %v3595_v50, %v3583_v44 }
 0xed2   :  { %v3628_v26 = vrot.slane %v3603_v12, 2 }
 0xee0   :  { %v3524_v61 = vpop.permute.xlu0 %3523 }
 0xee1   :  { %v3533_v9 = vmul.f32 %v3524_v61, %v5909_v41  ;;  %v3615_v41 = vsel %vm3614_vm13, %v3613_v42, %v3597_v58 }
 0xee2   :  { %v3618_v8 = vsel %vm3617_vm14, %v3616_v43, %v3615_v41 }
 0xee3   :  { %v3584_v5 = vsel %vm3534_vm1, %v3533_v9, 0.0  ;;  %v3621_v0 = vsel %vm6140_vm15, %v3619_v39, %v3618_v8 }
 0xee4   :  { %v3585_v55 = vrot.slane %v3584_v5, 4  ;;  %v3624_v34 = vsel %vm6139_vm0, %v3622_v60, %v3621_v0 }
 0xee5   :  { %v3627_v52 = vsel %vm6138_vm2, %v3625_v7, %v3624_v34 }
 0xee6   :  { %v3586_v59 = vadd.f32 %v3585_v55, %v3584_v5  ;;  %v3630_v14 = vsel %vm6137_vm4, %v3628_v26, %v3627_v52 }
 0xee8   :  { %v3587_v10 = vrot.slane %v3586_v59, 2 }
 0xeea   :  { %v3588_v62 = vadd.f32 %v3587_v10, %v3586_v59 }
 0xeec   :  { %v3589_v4 = vrot.slane %v3588_v62, 1 }
 0xeee   :  { %v3590_v24 = vadd.f32 %v3589_v4, %v3588_v62 }
 0xef0   :  { %v3604_v16 = vadd.f32 %v3595_v50, %v3590_v24 }
 0xef2   :  { %v3631_v6 = vrot.slane %v3604_v16, 1 }
 0xef4   :  { %v3633_v21 = vsel %vm6136_vm5, %v3631_v6, %v3630_v14 }
 0xef5   :  { %v3635_v19 = vsel %vm3534_vm1, %v3633_v21, -inf }
 0xef6   :  { %3636 = vmax.xlane.f32.xlu2 %v3635_v19 }
 0xf69   :  { %v3637_v31 = vpop.xlane.xlu2 %3636 }
 0xf6a   :  { %v3639_v1 = vrot.slane %v3637_v31, 1  ;;  %v3640_v56 = vrot.slane %v3637_v31, 2  ;;  %v3641_v49 = vrot.slane %v3637_v31, 3  ;;  %v3642_v53 = vrot.slane %v3637_v31, 4 }
 0xf6b   :  { %v3643_v25 = vrot.slane %v3637_v31, 5  ;;  %v3644_v32 = vrot.slane %v3637_v31, 6  ;;  %v3645_v2 = vrot.slane %v3637_v31, 7  ;;  %v3654_v22 = vsub.f32 %v3597_v58, %v3637_v31 }
 0xf6c   :  { %v3655_v3 = vsub.f32 %v3598_v47, %v3639_v1  ;;  %v3656_v36 = vsub.f32 %v3599_v45, %v3640_v56  ;;  %v3657_v51 = vsub.f32 %v3600_v40, %v3641_v49  ;;  %v3658_v38 = vsub.f32 %v3601_v57, %v3642_v53 }
 0xf6d   :  { %v3659_v20 = vsub.f32 %v3602_v11, %v3643_v25  ;;  %v3660_v29 = vsub.f32 %v3603_v12, %v3644_v32  ;;  %v3662_v50 = vmul.f32 1.442695, %v3654_v22  ;;  %v3661_v33 = vsub.f32 %v3604_v16, %v3645_v2 }
 0xf6e   :  { %v3664_v18 = vmul.f32 1.442695, %v3655_v3  ;;  %v3666_v35 = vmul.f32 1.442695, %v3656_v36  ;;  %v3668_v27 = vmul.f32 1.442695, %v3657_v51 }
 0xf6f   :  { %4496 = vpow2.f32 %v3662_v50  ;;  %v3670_v30 = vmul.f32 1.442695, %v3658_v38  ;;  %v3672_v61 = vmul.f32 1.442695, %v3659_v20  ;;  %v3674_v48 = vmul.f32 1.442695, %v3660_v29 }
 0xf70   :  { %4498 = vpow2.f32 %v3664_v18  ;;  %v3676_v28 = vmul.f32 1.442695, %v3661_v33 }
 0xf71   :  { %4500 = vpow2.f32 %v3666_v35 }
 0xf72   :  { %4502 = vpow2.f32 %v3668_v27 }
 0xf73   :  { %4504 = vpow2.f32 %v3670_v30 }
 0xf74   :  { %4506 = vpow2.f32 %v3672_v61 }
 0xf75   :  { %v5944_v47 = vpop.eup %4496  ;;  %4508 = vpow2.f32 %v3674_v48 }
 0xf76   :  { %v5946_v9 = vpop.eup %4498  ;;  %4510 = vpow2.f32 %v3676_v28 }
 0xf77   :  { %v5948_v54 = vpop.eup %4500  ;;  %v3686_v15 = vrot.slane %v5946_v9, 7 }
 0xf78   :  { %v5951_v45 = vpop.eup %4502  ;;  %v3688_v63 = vrot.slane %v5948_v54, 6 }
 0xf79   :  { %v5954_v5 = vpop.eup %4504  ;;  %v3687_v23 = vsel %vm3614_vm13, %v3686_v15, %v5944_v47  ;;  %v3690_v55 = vrot.slane %v5951_v45, 5 }
 0xf7a   :  { %v5959_v42 = vpop.eup %4506  ;;  %v3689_v37 = vsel %vm3617_vm14, %v3688_v63, %v3687_v23  ;;  %v3692_v17 = vrot.slane %v5954_v5, 4 }
 0xf7b   :  { %v5963_v13 = vpop.eup %4508  ;;  %v3691_v58 = vsel %vm6140_vm15, %v3690_v55, %v3689_v37  ;;  %v3694_v59 = vrot.slane %v5959_v42, 3 }
 0xf7c   :  { %v5967_v44 = vpop.eup %4510  ;;  %v3693_v43 = vsel %vm6139_vm0, %v3692_v17, %v3691_v58  ;;  %v3696_v10 = vrot.slane %v5963_v13, 2 }
 0xf7d   :  { %v3695_v40 = vsel %vm6138_vm2, %v3694_v59, %v3693_v43  ;;  %v3698_v41 = vrot.slane %v5967_v44, 1 }
 0xf7e   :  { %v3697_v46 = vsel %vm6137_vm4, %v3696_v10, %v3695_v40 }
 0xf7f   :  { %v3699_v62 = vsel %vm6136_vm5, %v3698_v41, %v3697_v46 }
 0xf80   :  { %3700 = vrot.lane.b32.xlu0 %v3699_v62, %s4696_s17 }
 0xf88   :  { %3843 = vrot.lane.b32.xlu0 %v3633_v21, %s4696_s17 }
 0xff2   :  { %v3701_v11 = vpop.permute.xlu0 %3700 }
 0xff3   :  { %v3704_v12 = vsel %vm6135_vm6, %v3701_v11, 0.0 }
 0xff4   :  { %3705 = vadd.xlane.f32.xlu1 %v3704_v12 }
0x1067   :  { %v3706_v57 = vpop.xlane.xlu1 %3705 }
0x1068   :  { %v3708_v8 = vrot.slane %v3706_v57, 1  ;;  %v5976_v4 = vrot.slane %v3706_v57, 2  ;;  %4512 = vrcp.f32 %v3706_v57  ;;  %v5978_v39 = vrot.slane %v3706_v57, 3 }
0x1069   :  { %v5981_v24 = vrot.slane %v3706_v57, 4  ;;  %v3734_v0 = vand.u32 2147483648, %v3706_v57  ;;  %v5986_v16 = vrot.slane %v3706_v57, 5  ;;  %v5988_v34 = vrot.slane %v3706_v57, 6 }
0x106a   :  { %4514 = vrcp.f32 %v3708_v8  ;;  %v3747_v7 = vand.u32 2147483647, %v3708_v8  ;;  %v3749_v60 = vand.u32 2147483648, %v3708_v8  ;;  %v5990_v52 = vrot.slane %v3706_v57, 7 }
0x106b   :  { %4516 = vrcp.f32 %v5976_v4  ;;  %v3762_v6 = vand.u32 2147483647, %v5976_v4  ;;  %vm3728_vm7 = vweird.f32 %v3706_v57  ;;  %v3732_v21 = vand.u32 2147483647, %v3706_v57 }
0x106c   :  { %4518 = vrcp.f32 %v5978_v39  ;;  %v5995_v31 = vor.u32 1.1754944e-38, %v3734_v0  ;;  %vm3743_vm8 = vweird.f32 %v3708_v8  ;;  %vm3758_vm9 = vweird.f32 %v5976_v4 }
0x106d   :  { %4520 = vrcp.f32 %v5981_v24  ;;  %v3764_v1 = vand.u32 2147483648, %v5976_v4  ;;  %vm5999_vm10 = vcmp.eq.f32.partialorder %v3747_v7, 8.507059e+37  ;;  %v3750_v32 = vor.u32 1.1754944e-38, %v3749_v60 }
0x106e   :  { %v5984_v26 = vpop.eup %4512  ;;  %vm6004_vm11 = vcmp.eq.f32.partialorder %v3762_v6, 8.507059e+37  ;;  %vm3773_vm12 = vweird.f32 %v5978_v39  ;;  %4522 = vrcp.f32 %v5986_v16  ;;  %v3777_v38 = vand.u32 2147483647, %v5978_v39 }
0x106f   :  { %v3724_v14 = vmul.f32 %v5984_v26, %v3706_v57  ;;  %v3779_v20 = vand.u32 2147483648, %v5978_v39  ;;  %vm3729_vm1 = vweird.f32 %v5984_v26  ;;  %vm6014_vm3 = vcmp.eq.f32.partialorder %v3732_v21, 8.507059e+37 }
0x1070   :  { %v4515_v19 = vpop.eup %4514  ;;  %v3765_v18 = vor.u32 1.1754944e-38, %v3764_v1  ;;  %4524 = vrcp.f32 %v5988_v34  ;;  %vm6026_vm4 = vmor %vm3728_vm7, %vm3729_vm1  ;;  %vm6030_vm2 = vcmp.eq.f32.partialorder %v3777_v38, 8.507059e+37  ;;  %v3792_v37 = vand.u32 2147483647, %v5981_v24 }
0x1071   :  { %v4517_v56 = vpop.eup %4516  ;;  %v3725_v49 = vsub.f32 1.0, %v3724_v14  ;;  %v3739_v53 = vmul.f32 %v4515_v19, %v3708_v8  ;;  %vm3744_vm6 = vweird.f32 %v4515_v19  ;;  %v3780_v55 = vor.u32 1.1754944e-38, %v3779_v20 }
0x1072   :  { %v3754_v2 = vmul.f32 %v4517_v56, %v5976_v4  ;;  %v4519_v3 = vpop.eup %4518  ;;  %vm3759_vm5 = vweird.f32 %v4517_v56  ;;  %vm3745_vm0 = vmor %vm3743_vm8, %vm3744_vm6  ;;  %v3794_v41 = vand.u32 2147483648, %v5981_v24  ;;  %vm6054_vm6 = vcmp.eq.f32.partialorder %v3792_v37, 8.507059e+37 }
0x1073   :  { %v3726_v36 = vmul.f32 %v5984_v26, %v3725_v49  ;;  %v3740_v51 = vsub.f32 1.0, %v3739_v53  ;;  %v3769_v35 = vmul.f32 %v4519_v3, %v5978_v39  ;;  %v6019_v27 = vpop.eup %4520  ;;  %vm3774_vm15 = vweird.f32 %v4519_v3  ;;  %vm3760_vm7 = vmor %vm3758_vm9, %vm3759_vm5 }
0x1074   :  { %v3755_v50 = vsub.f32 1.0, %v3754_v2  ;;  %v3784_v28 = vmul.f32 %v6019_v27, %v5981_v24  ;;  %v4523_v17 = vpop.eup %4522  ;;  %vm3789_vm5 = vweird.f32 %v6019_v27  ;;  %v3795_v21 = vor.u32 1.1754944e-38, %v3794_v41 }
0x1075   :  { %v3727_v33 = vadd.f32 %v5984_v26, %v3726_v36  ;;  %v3741_v30 = vmul.f32 %v4515_v19, %v3740_v51  ;;  %v3770_v48 = vsub.f32 1.0, %v3769_v35  ;;  %v3799_v46 = vmul.f32 %v4523_v17, %v5986_v16 }
0x1076   :  { %v3756_v61 = vmul.f32 %v4517_v56, %v3755_v50  ;;  %v3785_v43 = vsub.f32 1.0, %v3784_v28  ;;  %v4525_v8 = vpop.eup %4524  ;;  %vm3804_vm8 = vweird.f32 %v4523_v17  ;;  %4526 = vrcp.f32 %v5990_v52 }
0x1077   :  { %v3742_v63 = vadd.f32 %v4515_v19, %v3741_v30  ;;  %v3771_v59 = vmul.f32 %v4519_v3, %v3770_v48  ;;  %v3731_v10 = vsel %vm6026_vm4, %v5984_v26, %v3727_v33  ;;  %vm3788_vm4 = vweird.f32 %v5981_v24 }
0x1078   :  { %v3757_v58 = vadd.f32 %v4517_v56, %v3756_v61  ;;  %v3786_v57 = vmul.f32 %v6019_v27, %v3785_v43  ;;  %v3800_v4 = vsub.f32 1.0, %v3799_v46  ;;  %v3814_v6 = vmul.f32 %v4525_v8, %v5988_v34 }
0x1079   :  { %v3746_v40 = vsel %vm3745_vm0, %v4515_v19, %v3742_v63  ;;  %v3772_v12 = vadd.f32 %v4519_v3, %v3771_v59  ;;  %vm3775_vm0 = vmor %vm3773_vm12, %vm3774_vm15  ;;  %v3736_v14 = vsel %vm6014_vm3, %v5995_v31, %v3731_v10  ;;  %vm3803_vm3 = vweird.f32 %v5986_v16 }
0x107a   :  { %v3751_v62 = vsel %vm5999_vm10, %v3750_v32, %v3746_v40  ;;  %v3761_v11 = vsel %vm3760_vm7, %v4517_v56, %v3757_v58  ;;  %v3787_v60 = vadd.f32 %v6019_v27, %v3786_v57  ;;  %v3801_v24 = vmul.f32 %v4523_v17, %v3800_v4  ;;  %vm6066_vm15 = vmor %vm3788_vm4, %vm3789_vm5  ;;  %v3844_v57 = vpop.permute.xlu0 %3843 }
0x107b   :  { %v3766_v0 = vsel %vm6004_vm11, %v3765_v18, %v3761_v11  ;;  %v3776_v7 = vsel %vm3775_vm0, %v4519_v3, %v3772_v12  ;;  %v3752_v39 = vmul.f32 %v5946_v9, %v3751_v62  ;;  %v3815_v49 = vsub.f32 1.0, %v3814_v6 }
0x107c   :  { %v3767_v19 = vmul.f32 %v5948_v54, %v3766_v0  ;;  %v3781_v1 = vsel %vm6030_vm2, %v3780_v55, %v3776_v7  ;;  %v3791_v53 = vsel %vm6066_vm15, %v6019_v27, %v3787_v60  ;;  %v3802_v31 = vadd.f32 %v4523_v17, %v3801_v24  ;;  %vm6079_vm2 = vmor %vm3803_vm3, %vm3804_vm8  ;;  %v4527_v50 = vpop.eup %4526 }
0x107d   :  { %v3809_v9 = vand.u32 2147483648, %v5986_v16  ;;  %v3737_v54 = vmul.f32 %v5944_v47, %v3736_v14  ;;  %v3807_v25 = vand.u32 2147483647, %v5986_v16  ;;  %v3816_v32 = vmul.f32 %v4525_v8, %v3815_v49 }
0x107e   :  { %v3782_v2 = vmul.f32 %v5951_v45, %v3781_v1  ;;  %vm3819_vm9 = vweird.f32 %v4525_v8  ;;  %v3824_v3 = vand.u32 2147483648, %v5988_v34  ;;  %v3854_v36 = vrot.slane %v3752_v39, 7 }
0x107f   :  { %v3796_v51 = vsel %vm6054_vm6, %v3795_v21, %v3791_v53  ;;  %v3806_v47 = vsel %vm6079_vm2, %v4523_v17, %v3802_v31  ;;  %v3817_v38 = vadd.f32 %v4525_v8, %v3816_v32  ;;  %v3856_v20 = vrot.slane %v3767_v19, 6 }
0x1080   :  { %v3810_v16 = vor.u32 1.1754944e-38, %v3809_v9  ;;  %vm3818_vm10 = vweird.f32 %v5988_v34  ;;  %v3822_v45 = vand.u32 2147483647, %v5988_v34  ;;  %v3855_v29 = vsel %vm3614_vm13, %v3854_v36, %v3737_v54 }
0x1081   :  { %vm3808_vm11 = vcmp.eq.f32.partialorder %v3807_v25, 8.507059e+37  ;;  %vm3820_vm12 = vmor %vm3818_vm10, %vm3819_vm9  ;;  %v3797_v18 = vmul.f32 %v5954_v5, %v3796_v51  ;;  %v3857_v33 = vsel %vm3617_vm14, %v3856_v20, %v3855_v29  ;;  %v3825_v30 = vor.u32 1.1754944e-38, %v3824_v3 }
0x1082   :  { %v3811_v35 = vsel %vm3808_vm11, %v3810_v16, %v3806_v47  ;;  %v3821_v27 = vsel %vm3820_vm12, %v4525_v8, %v3817_v38  ;;  %v3829_v61 = vmul.f32 %v4527_v50, %v5990_v52  ;;  %v3858_v48 = vrot.slane %v3782_v2, 5 }
0x1083   :  { %vm3823_vm1 = vcmp.eq.f32.partialorder %v3822_v45, 8.507059e+37  ;;  %v3812_v28 = vmul.f32 %v5959_v42, %v3811_v35  ;;  %vm6174_vm7 = vcmask 1043459   ;;  %v3839_v23 = vand.u32 2147483648, %v5990_v52 }
0x1084   :  { %v3826_v15 = vsel %vm3823_vm1, %v3825_v30, %v3821_v27  ;;  %v3830_v34 = vsub.f32 1.0, %v3829_v61  ;;  %v3859_v63 = vsel %vm6174_vm7, %v3858_v48, %v3857_v33  ;;  %v3860_v55 = vrot.slane %v3797_v18, 4 }
0x1085   :  { %vm3834_vm13 = vweird.f32 %v4527_v50  ;;  %v3837_v5 = vand.u32 2147483647, %v5990_v52  ;;  %v3827_v17 = vmul.f32 %v5963_v13, %v3826_v15  ;;  %vm6175_vm14 = vcmask 1044484  }
0x1086   :  { %v3831_v37 = vmul.f32 %v4527_v50, %v3830_v34  ;;  %v3861_v58 = vsel %vm6175_vm14, %v3860_v55, %v3859_v63  ;;  %vm3833_vm0 = vweird.f32 %v5990_v52  ;;  %v3862_v43 = vrot.slane %v3812_v28, 3 }
0x1087   :  { %vm3835_vm4 = vmor %vm3833_vm0, %vm3834_vm13  ;;  %v3840_v42 = vor.u32 1.1754944e-38, %v3839_v23  ;;  %vm3838_vm5 = vcmp.eq.f32.partialorder %v3837_v5, 8.507059e+37  ;;  %vm6176_vm6 = vcmask 1045509   ;;  %v3864_v46 = vrot.slane %v3827_v17, 2 }
0x1088   :  { %v3832_v59 = vadd.f32 %v4527_v50, %v3831_v37  ;;  %v3863_v40 = vsel %vm6176_vm6, %v3862_v43, %v3861_v58  ;;  %vm6177_vm15 = vcmask 1046534   ;;  %vm6178_vm8 = vcmask 1047559  }
0x1089   :  { %v3865_v11 = vsel %vm6177_vm15, %v3864_v46, %v3863_v40  ;;  %vm6179_vm3 = vcmask 31744   ;;  %vm6180_vm2 = vcmask 64512  }
0x108a   :  { %v3836_v10 = vsel %vm3835_vm4, %v4527_v50, %v3832_v59 }
0x108b   :  { %v3841_v41 = vsel %vm3838_vm5, %v3840_v42, %v3836_v10 }
0x108c   :  { %v3842_v62 = vmul.f32 %v5967_v44, %v3841_v41 }
0x108e   :  { %v3866_v12 = vrot.slane %v3842_v62, 1 }
0x1090   :  { %v3867_v13 = vsel %vm6178_vm8, %v3866_v12, %v3865_v11 }
0x1091   :  { %3868 = vrot.lane.b32.xlu0 %v3867_v13, %s4697_s3 }
0x1103   :  { %v3869_v52 = vpop.permute.xlu0 %3868 }
0x1104   :  { %v3871_v8 = vsel %vm6179_vm3, %v3844_v57, %v3869_v52 }
0x1105   :  { %3872 = vst.msk [vmem:[#allocation11] sm:$0xff] %vm6180_vm2, %v3871_v8 }
0x1106   :  { %3883 = dma.vmem_to_hbm [thread:$0]  %s3879_s1, 128, %s3881_s20, [#allocation4]  }
0x1107   :  { %4678 = dma.done.wait [#allocation4], 128  }
0x1108   :  { %4679 = vsyncadd [#allocation4], 4294967168 }
0x1109   :  { %3888 = vsyncpa [#allocation3], 1 }
0x110a   :  { %3889 = vsyncpa [#allocation6], 1 }
0x110b   :  { %3890 = vsyncpa [#allocation9], 1 }
0x110c   :  { %3891 = vsyncpa [#allocation4], 1 }

</bundles_post_ra>
